<compile_context>
chip_gen: v7x
topology: tpu7x:2x2x1
jax: 0.10.0
libtpu: 0.0.40
codegen_flags: <defaults>
</compile_context>

<pallas_src>
import functools

import numpy as np
import jax
import jax.numpy as jnp
from jax.experimental import pallas as pl
from jax.experimental.pallas import tpu as pltpu

DATA_SIZE = 3
LATENT_SIZE = 4
CONTEXT_SIZE = 16
HIDDEN_SIZE = 32


def _softplus(x):
    # max + log(1+exp(-|x|)): only max/abs/exp/log, all Mosaic-native.
    return jnp.maximum(x, 0.0) + jnp.log(1.0 + jnp.exp(-jnp.abs(x)))


def _sigmoid(x):
    return 1.0 / (1.0 + jnp.exp(-x))


# ---------------------------------------------------------------------------
# Fused kernel: GRU encoder + ctx Linear + qz0 + Euler-Maruyama SDE + logqp +
# projector Gaussian log-likelihood.  Single invocation, no grid.
# ---------------------------------------------------------------------------
def _latent_sde_kernel(scal_ref, xs_ref, eps_ref, dw_ref,
                       wi_ref, bi_ref, wh_ref, bh_ref, wlin_ref, blin_ref,
                       qw_ref, qb_ref,
                       w1y_ref, w1c_ref, b1_ref, w2_ref, b2_ref, w3_ref, b3_ref,
                       es_ref, gb1_ref, gw2_ref, gb2_ref, pw_ref, pb_ref,
                       qz0_ref, acc_ref,
                       *, seq_len, hidden, latent, b_pad):
    T, H, L = seq_len, hidden, latent
    D = xs_ref.shape[2]
    dt = scal_ref[0]                                    # SMEM scalar (jit-safe)

    # ---- Stage 1: GRU over reversed time (fully unrolled recurrence) -------
    Wi, Bi = wi_ref[...], bi_ref[...]                   # (D, 3H), (1, 3H)
    Wh, Bh = wh_ref[...], bh_ref[...]                   # (H, 3H), (1, 3H)

    # Hoisted non-recurrent input matmul: one (T*B, D) x (D, 3H) MXU op
    # instead of T tiny matmuls on the serial chain.
    xs2d = xs_ref[...].reshape(T * b_pad, D)
    gi_all = jnp.dot(xs2d, Wi, preferred_element_type=jnp.float32) + Bi   # (T*B, 3H)

    h = jnp.zeros((b_pad, H), jnp.float32)
    hs = [None] * T
    for s in range(T):                                  # full unroll, static slices
        idx = T - 1 - s                                 # encoder consumes flip(xs, 0)
        gi = gi_all[idx * b_pad:(idx + 1) * b_pad]      # (B, 3H)
        gh = jnp.dot(h, Wh, preferred_element_type=jnp.float32) + Bh
        r = _sigmoid(gi[:, 0 * H:1 * H] + gh[:, 0 * H:1 * H])
        zg = _sigmoid(gi[:, 1 * H:2 * H] + gh[:, 1 * H:2 * H])
        n = jnp.tanh(gi[:, 2 * H:3 * H] + r * gh[:, 2 * H:3 * H])
        h = (1.0 - zg) * n + zg * h
        hs[idx] = h                                     # un-reversed (time-major) order

    # ---- Stage 2: deferred context Linear + hoisted drift-context matmul ---
    h_all = jnp.concatenate(hs, axis=0)                                        # (T*B, H)
    ctx_all = (jnp.dot(h_all, wlin_ref[...], preferred_element_type=jnp.float32)
               + blin_ref[...])                                                # (T*B, C)
    # ctx does not depend on z, so its first-layer drift contribution (and the
    # layer-1 bias of both f_net|h_net halves) is computed once, off the
    # serial Euler chain.
    c1_all = (jnp.dot(ctx_all, w1c_ref[...], preferred_element_type=jnp.float32)
              + b1_ref[...])                                                   # (T*B, 2H)

    # ---- Stage 3: q(z0) Linear + reparameterized initial sample ------------
    qz0 = (jnp.dot(ctx_all[0:b_pad], qw_ref[...], preferred_element_type=jnp.float32)
           + qb_ref[...])                                                      # (B, 2L)
    qz0_ref[...] = qz0
    z = qz0[:, 0:L] + jnp.exp(qz0[:, L:2 * L]) * eps_ref[...]                  # (B, L)

    # ---- Stage 4: fused Euler-Maruyama + logqp + projector log-lik ---------
    W1y = w1y_ref[...]                                   # (L, 2H)   [f|h] layer-1 on y
    W2, B2 = w2_ref[...], b2_ref[...]                    # block-diag (2H, 2H)
    W3, B3 = w3_ref[...], b3_ref[...]                    # block-diag (2H, 2L)
    Es, Gb1 = es_ref[...], gb1_ref[...]                  # (L, L*H) selector*gw1, (1, L*H)
    Gw2, Gb2 = gw2_ref[...], gb2_ref[...]                # (L*H, L), (1, L)
    Pw, Pb = pw_ref[...], pb_ref[...]                    # (L, D), (1, D)

    def sq_err(zt, xt):                                  # sum_d (x - proj(z))^2 per row
        d = xt - (jnp.dot(zt, Pw, preferred_element_type=jnp.float32) + Pb)
        return jnp.sum(d * d, axis=1, keepdims=True)     # (B, 1)

    # Raw accumulators; noise_std / dt scaling applied once in the wrapper.
    sum_d2 = sq_err(z, xs_ref[0])
    sum_u2 = jnp.zeros_like(sum_d2)

    for k in range(T - 1):                               # full unroll, static slices
        # ctx[min(searchsorted(ts, t, right=True), T-1)] == ctx[k+1]
        # TODO(synk): assumes uniform ts spacing equal to the sdeint dt
        #             (one Euler step per interval; no sub-stepping).
        c1 = c1_all[(k + 1) * b_pad:(k + 2) * b_pad]     # (B, 2H)
        # f_net / h_net fused: [f|h] carried as one (B, 2H) activation.
        a1 = _softplus(jnp.dot(z, W1y, preferred_element_type=jnp.float32) + c1)
        a2 = _softplus(jnp.dot(a1, W2, preferred_element_type=jnp.float32) + B2)
        a3 = jnp.dot(a2, W3, preferred_element_type=jnp.float32) + B3          # (B, 2L)
        f_val = a3[:, 0:L]
        h_val = a3[:, L:2 * L]
        # per-latent g_nets as lane-dense matmuls over L*H = 128 lanes; the
        # first-layer weight is pre-folded into the selector (Es).
        ge = _softplus(jnp.dot(z, Es, preferred_element_type=jnp.float32) + Gb1)
        g_val = _sigmoid(jnp.dot(ge, Gw2, preferred_element_type=jnp.float32) + Gb2)
        u = (f_val - h_val) / g_val                      # exact divide (squared in logqp)
        sum_u2 = sum_u2 + jnp.sum(u * u, axis=1, keepdims=True)
        z = z + f_val * dt + g_val * dw_ref[k]
        sum_d2 = sum_d2 + sq_err(z, xs_ref[k + 1])

    # Merge both per-row accumulators into a single small output.
    acc_ref[...] = jnp.concatenate([sum_d2, sum_u2], axis=1)   # (B_pad, 2)


# ---------------------------------------------------------------------------
# One-time weight packing (kept out of the per-call forward).
# ---------------------------------------------------------------------------
def _block_diag(a, b):
    za = jnp.zeros((a.shape[0], b.shape[1]), jnp.float32)
    zb = jnp.zeros((b.shape[0], a.shape[1]), jnp.float32)
    return jnp.concatenate([jnp.concatenate([a, za], axis=1),
                            jnp.concatenate([zb, b], axis=1)], axis=0)


def pack_params(p):
    L, C, H = LATENT_SIZE, CONTEXT_SIZE, HIDDEN_SIZE
    packed = {
        # Encoder GRU, gates packed (r|z|n) -> 2 matmuls / step.
        "wi": jnp.concatenate([p["wir"], p["wiz"], p["win"]], axis=1),   # (D, 3H)
        "bi": jnp.concatenate([p["bir"], p["biz"], p["bin"]], axis=1),   # (1, 3H)
        "wh": jnp.concatenate([p["whr"], p["whz"], p["whn"]], axis=1),   # (H, 3H)
        "bh": jnp.concatenate([p["bhr"], p["bhz"], p["bhn"]], axis=1),   # (1, 3H)
        "wlin": p["wlin"], "blin": p["blin"],
        "qw": p["qw"], "qb": p["qb"],
        # f_net / h_net fused as one block-diagonal MLP ([f|h] halves).
        "w1y": jnp.concatenate([p["fw1y"], p["hw1"]], axis=1),                   # (L, 2H)
        "w1c": jnp.concatenate([p["fw1c"], jnp.zeros((C, H), jnp.float32)], 1),  # (C, 2H)
        "b1": jnp.concatenate([p["fb1"], p["hb1"]], axis=1),                     # (1, 2H)
        "w2": _block_diag(p["fw2"], p["hw2"]),                                   # (2H, 2H)
        "b2": jnp.concatenate([p["fb2"], p["hb2"]], axis=1),                     # (1, 2H)
        "w3": _block_diag(p["fw3"], p["hw3"]),                                   # (2H, 2L)
        "b3": jnp.concatenate([p["fb3"], p["hb3"]], axis=1),                     # (1, 2L)
        # per-latent g_nets as lane-dense matmuls over L*H lanes; first-layer
        # weight folded into the 0/1 selector once.
        "es": (jnp.kron(jnp.eye(L, dtype=jnp.float32), jnp.ones((1, H), jnp.float32))
               * p["gw1"].reshape(1, L * H)),                                    # (L, L*H)
        "gb1": p["gb1"].reshape(1, L * H),                                       # (1, L*H)
        "gw2bd": (jnp.repeat(jnp.eye(L, dtype=jnp.float32), H, axis=0)
                  * p["gw2"].reshape(L * H, 1)),                                 # (L*H, L)
        "gb2": p["gb2"],                                                         # (1, L)
        "pw": p["pw"], "pb": p["pb"],
        "pz0_mean": p["pz0_mean"], "pz0_logstd": p["pz0_logstd"],
    }
    return packed


# ---------------------------------------------------------------------------
# Forward pass wrapper (one pallas_call + tiny scalar / KL glue)
# ---------------------------------------------------------------------------
def latent_sde_forward(packed, xs, ts, noise_std, key):
    T, B, D = xs.shape
    L, C, H = LATENT_SIZE, CONTEXT_SIZE, HIDDEN_SIZE
    B_pad = ((B + 7) // 8) * 8                  # sublane-align batch
    pad = B_pad - B
    xs_p = jnp.pad(xs, ((0, 0), (0, pad), (0, 0))) if pad else xs

    k_eps, k_bm = jax.random.split(key)
    eps = jax.random.normal(k_eps, (B_pad, L), jnp.float32)
    dt = (ts[1] - ts[0]).astype(jnp.float32)
    dW = jnp.sqrt(dt) * jax.random.normal(k_bm, (T - 1, B_pad, L), jnp.float32)

    vmem = pl.BlockSpec(memory_space=pltpu.MemorySpace.VMEM)
    smem = pl.BlockSpec(memory_space=pltpu.MemorySpace.SMEM)

    qz0, acc = pl.pallas_call(
        functools.partial(_latent_sde_kernel,
                          seq_len=T, hidden=H, latent=L, b_pad=B_pad),
        out_shape=(jax.ShapeDtypeStruct((B_pad, 2 * L), jnp.float32),   # qz0 (mean|logstd)
                   jax.ShapeDtypeStruct((B_pad, 2), jnp.float32)),      # [sum_d2 | sum_u2]
        in_specs=[smem] + [vmem] * 24,
        out_specs=(vmem, vmem),
    )(dt.reshape(1), xs_p, eps, dW,
      packed["wi"], packed["bi"], packed["wh"], packed["bh"],
      packed["wlin"], packed["blin"],
      packed["qw"], packed["qb"],
      packed["w1y"], packed["w1c"], packed["b1"], packed["w2"], packed["b2"],
      packed["w3"], packed["b3"],
      packed["es"], packed["gb1"], packed["gw2bd"], packed["gb2"],
      packed["pw"], packed["pb"])

    # ---- final scaling of the raw accumulators (scalar glue, once) ----
    noise_std = jnp.asarray(noise_std, jnp.float32)
    inv_2var = 0.5 / (noise_std * noise_std)
    logc = -jnp.log(noise_std) - 0.5 * jnp.log(2.0 * jnp.pi)

    mean_d2 = jnp.sum(acc[:B, 0]) / B           # mean over batch of sum over (time, data)
    mean_u2 = jnp.sum(acc[:B, 1]) / B
    log_pxs = -inv_2var * mean_d2 + T * D * logc
    logqp_path = 0.5 * dt * mean_u2

    # ---- KL(q(z0) || p(z0)) (tiny; plain JAX glue) ----
    qz0_mean, qz0_logstd = qz0[:B, :L], qz0[:B, L:]
    pz0_mean, pz0_logstd = packed["pz0_mean"], packed["pz0_logstd"]
    q_var = jnp.exp(2.0 * qz0_logstd)
    p_var = jnp.exp(2.0 * pz0_logstd)
    kl = (pz0_logstd - qz0_logstd
          + (q_var + (qz0_mean - pz0_mean) ** 2) / (2.0 * p_var) - 0.5)
    logqp0 = jnp.mean(jnp.sum(kl, axis=1))
    return log_pxs, logqp0 + logqp_path


# ---------------------------------------------------------------------------
# Deterministic parameter init (matches the module's __init__ shapes)
# ---------------------------------------------------------------------------
def init_params(key):
    D, L, C, H = DATA_SIZE, LATENT_SIZE, CONTEXT_SIZE, HIDDEN_SIZE
    keys = iter(jax.random.split(key, 64))

    def u(shape, fan_in):
        b = 1.0 / np.sqrt(fan_in)
        return jax.random.uniform(next(keys), shape, jnp.float32, -b, b)

    p = {}
    # Encoder GRU (gate order r, z, n), stored transposed (in, out)
    for name, shape in [("wir", (D, H)), ("wiz", (D, H)), ("win", (D, H)),
                        ("whr", (H, H)), ("whz", (H, H)), ("whn", (H, H)),
                        ("bir", (1, H)), ("biz", (1, H)), ("bin", (1, H)),
                        ("bhr", (1, H)), ("bhz", (1, H)), ("bhn", (1, H))]:
        p[name] = u(shape, H)
    p["wlin"] = u((H, C), H); p["blin"] = u((1, C), H)
    # qz0_net: Linear(context -> 2*latent)
    p["qw"] = u((C, 2 * L), C); p["qb"] = u((1, 2 * L), C)
    # f_net: Linear(L+C,H), Softplus, Linear(H,H), Softplus, Linear(H,L)
    p["fw1y"] = u((L, H), L + C); p["fw1c"] = u((C, H), L + C); p["fb1"] = u((1, H), L + C)
    p["fw2"] = u((H, H), H); p["fb2"] = u((1, H), H)
    p["fw3"] = u((H, L), H); p["fb3"] = u((1, L), H)
    # h_net: Linear(L,H), Softplus, Linear(H,H), Softplus, Linear(H,L)
    p["hw1"] = u((L, H), L); p["hb1"] = u((1, H), L)
    p["hw2"] = u((H, H), H); p["hb2"] = u((1, H), H)
    p["hw3"] = u((H, L), H); p["hb3"] = u((1, L), H)
    # g_nets: L x [Linear(1,H), Softplus, Linear(H,1), Sigmoid], stacked over latent dim
    p["gw1"] = u((L, H), 1); p["gb1"] = u((L, H), 1)
    p["gw2"] = u((L, H), H); p["gb2"] = u((1, L), H)
    # projector
    p["pw"] = u((L, D), L); p["pb"] = u((1, D), L)
    # prior
    p["pz0_mean"] = jnp.zeros((1, L), jnp.float32)
    p["pz0_logstd"] = jnp.zeros((1, L), jnp.float32)
    return p


if __name__ == "__main__":
    key = jax.random.PRNGKey(0)
    k_param, k_data, k_fwd = jax.random.split(key, 3)
    params = init_params(k_param)
    packed = pack_params(params)                     # one-time weight packing

    T, B = 8, 4
    ts = jnp.arange(T, dtype=jnp.float32) * 0.01     # spacing == sdeint dt (0.01)
    xs = jax.random.normal(k_data, (T, B, DATA_SIZE), jnp.float32)
    noise_std = 0.01

    fwd = jax.jit(latent_sde_forward)
    log_pxs, log_ratio = fwd(packed, xs, ts, noise_std, k_fwd)
    jax.block_until_ready((log_pxs, log_ratio))
    print("KERNEL_OK")
</pallas_src>

<mosaic_0001>
module attributes {stable_mosaic.version = 11 : i64} {
  func.func @_latent_sde_kernel(%arg0: memref<1xf32, #tpu.memory_space<smem>>, %arg1: memref<8x8x3xf32, #tpu.memory_space<vmem>>, %arg2: memref<8x4xf32, #tpu.memory_space<vmem>>, %arg3: memref<7x8x4xf32, #tpu.memory_space<vmem>>, %arg4: memref<3x96xf32, #tpu.memory_space<vmem>>, %arg5: memref<1x96xf32, #tpu.memory_space<vmem>>, %arg6: memref<32x96xf32, #tpu.memory_space<vmem>>, %arg7: memref<1x96xf32, #tpu.memory_space<vmem>>, %arg8: memref<32x16xf32, #tpu.memory_space<vmem>>, %arg9: memref<1x16xf32, #tpu.memory_space<vmem>>, %arg10: memref<16x8xf32, #tpu.memory_space<vmem>>, %arg11: memref<1x8xf32, #tpu.memory_space<vmem>>, %arg12: memref<4x64xf32, #tpu.memory_space<vmem>>, %arg13: memref<16x64xf32, #tpu.memory_space<vmem>>, %arg14: memref<1x64xf32, #tpu.memory_space<vmem>>, %arg15: memref<64x64xf32, #tpu.memory_space<vmem>>, %arg16: memref<1x64xf32, #tpu.memory_space<vmem>>, %arg17: memref<64x8xf32, #tpu.memory_space<vmem>>, %arg18: memref<1x8xf32, #tpu.memory_space<vmem>>, %arg19: memref<4x128xf32, #tpu.memory_space<vmem>>, %arg20: memref<1x128xf32, #tpu.memory_space<vmem>>, %arg21: memref<128x4xf32, #tpu.memory_space<vmem>>, %arg22: memref<1x4xf32, #tpu.memory_space<vmem>>, %arg23: memref<4x3xf32, #tpu.memory_space<vmem>>, %arg24: memref<1x3xf32, #tpu.memory_space<vmem>>, %arg25: memref<8x8xf32, #tpu.memory_space<vmem>>, %arg26: memref<8x2xf32, #tpu.memory_space<vmem>>) attributes {dimension_semantics = [], scalar_prefetch = 0 : i64, scratch_operands = 0 : i64, tpu.core_type = #tpu.core_type<tc>} {
    %c0 = arith.constant 0 : index
    %0 = memref.load %arg0[%c0] : memref<1xf32, #tpu.memory_space<smem>>
    %c0_0 = arith.constant 0 : index
    %c0_1 = arith.constant 0 : index
    %1 = vector.load %arg4[%c0_0, %c0_1] : memref<3x96xf32, #tpu.memory_space<vmem>>, vector<3x96xf32>
    %c0_2 = arith.constant 0 : index
    %c0_3 = arith.constant 0 : index
    %2 = vector.load %arg5[%c0_2, %c0_3] : memref<1x96xf32, #tpu.memory_space<vmem>>, vector<1x96xf32>
    %c0_4 = arith.constant 0 : index
    %c0_5 = arith.constant 0 : index
    %3 = vector.load %arg6[%c0_4, %c0_5] : memref<32x96xf32, #tpu.memory_space<vmem>>, vector<32x96xf32>
    %c0_6 = arith.constant 0 : index
    %c0_7 = arith.constant 0 : index
    %4 = vector.load %arg7[%c0_6, %c0_7] : memref<1x96xf32, #tpu.memory_space<vmem>>, vector<1x96xf32>
    %c0_8 = arith.constant 0 : index
    %c0_9 = arith.constant 0 : index
    %c0_10 = arith.constant 0 : index
    %5 = vector.load %arg1[%c0_8, %c0_9, %c0_10] : memref<8x8x3xf32, #tpu.memory_space<vmem>>, vector<8x8x3xf32>
    %6 = vector.shape_cast %5 : vector<8x8x3xf32> to vector<64x3xf32>
    %cst = arith.constant dense<0.000000e+00> : vector<64x96xf32>
    %7 = tpu.matmul %6, %1, %cst {dimension_numbers = #tpu.dot_dimension_numbers<[1], [0], [0], [1], [0, 0, 1, 1], [], []>} : vector<64x3xf32>, vector<3x96xf32>, vector<64x96xf32> -> vector<64x96xf32>
    %8 = vector.broadcast %2 : vector<1x96xf32> to vector<64x96xf32>
    %9 = arith.addf %7, %8 : vector<64x96xf32>
    %cst_11 = arith.constant 0.000000e+00 : f32
    %10 = vector.broadcast %cst_11 : f32 to vector<8x32xf32>
    %11 = vector.extract_strided_slice %9 {offsets = [56, 0], sizes = [8, 96], strides = [1, 1]} : vector<64x96xf32> to vector<8x96xf32>
    %cst_12 = arith.constant dense<0.000000e+00> : vector<8x96xf32>
    %12 = tpu.matmul %10, %3, %cst_12 {dimension_numbers = #tpu.dot_dimension_numbers<[1], [0], [0], [1], [0, 0, 1, 1], [], []>} : vector<8x32xf32>, vector<32x96xf32>, vector<8x96xf32> -> vector<8x96xf32>
    %13 = vector.broadcast %4 : vector<1x96xf32> to vector<8x96xf32>
    %14 = arith.addf %12, %13 : vector<8x96xf32>
    %15 = vector.extract_strided_slice %11 {offsets = [0, 0], sizes = [8, 32], strides = [1, 1]} : vector<8x96xf32> to vector<8x32xf32>
    %16 = vector.extract_strided_slice %14 {offsets = [0, 0], sizes = [8, 32], strides = [1, 1]} : vector<8x96xf32> to vector<8x32xf32>
    %17 = arith.addf %15, %16 : vector<8x32xf32>
    %cst_13 = arith.constant 0.000000e+00 : f32
    %18 = vector.broadcast %cst_13 : f32 to vector<8x32xf32>
    %19 = arith.subf %18, %17 : vector<8x32xf32>
    %20 = math.exp %19 : vector<8x32xf32>
    %cst_14 = arith.constant 1.000000e+00 : f32
    %21 = vector.broadcast %cst_14 : f32 to vector<8x32xf32>
    %22 = arith.addf %21, %20 : vector<8x32xf32>
    %cst_15 = arith.constant 1.000000e+00 : f32
    %23 = vector.broadcast %cst_15 : f32 to vector<8x32xf32>
    %24 = arith.divf %23, %22 : vector<8x32xf32>
    %25 = vector.extract_strided_slice %11 {offsets = [0, 32], sizes = [8, 32], strides = [1, 1]} : vector<8x96xf32> to vector<8x32xf32>
    %26 = vector.extract_strided_slice %14 {offsets = [0, 32], sizes = [8, 32], strides = [1, 1]} : vector<8x96xf32> to vector<8x32xf32>
    %27 = arith.addf %25, %26 : vector<8x32xf32>
    %cst_16 = arith.constant 0.000000e+00 : f32
    %28 = vector.broadcast %cst_16 : f32 to vector<8x32xf32>
    %29 = arith.subf %28, %27 : vector<8x32xf32>
    %30 = math.exp %29 : vector<8x32xf32>
    %cst_17 = arith.constant 1.000000e+00 : f32
    %31 = vector.broadcast %cst_17 : f32 to vector<8x32xf32>
    %32 = arith.addf %31, %30 : vector<8x32xf32>
    %cst_18 = arith.constant 1.000000e+00 : f32
    %33 = vector.broadcast %cst_18 : f32 to vector<8x32xf32>
    %34 = arith.divf %33, %32 : vector<8x32xf32>
    %35 = vector.extract_strided_slice %11 {offsets = [0, 64], sizes = [8, 32], strides = [1, 1]} : vector<8x96xf32> to vector<8x32xf32>
    %36 = vector.extract_strided_slice %14 {offsets = [0, 64], sizes = [8, 32], strides = [1, 1]} : vector<8x96xf32> to vector<8x32xf32>
    %37 = arith.mulf %24, %36 : vector<8x32xf32>
    %38 = arith.addf %35, %37 : vector<8x32xf32>
    %39 = math.tanh %38 : vector<8x32xf32>
    %cst_19 = arith.constant 1.000000e+00 : f32
    %40 = vector.broadcast %cst_19 : f32 to vector<8x32xf32>
    %41 = arith.subf %40, %34 : vector<8x32xf32>
    %42 = arith.mulf %41, %39 : vector<8x32xf32>
    %43 = arith.mulf %34, %10 : vector<8x32xf32>
    %44 = arith.addf %42, %43 : vector<8x32xf32>
    %45 = vector.extract_strided_slice %9 {offsets = [48, 0], sizes = [8, 96], strides = [1, 1]} : vector<64x96xf32> to vector<8x96xf32>
    %cst_20 = arith.constant dense<0.000000e+00> : vector<8x96xf32>
    %46 = tpu.matmul %44, %3, %cst_20 {dimension_numbers = #tpu.dot_dimension_numbers<[1], [0], [0], [1], [0, 0, 1, 1], [], []>} : vector<8x32xf32>, vector<32x96xf32>, vector<8x96xf32> -> vector<8x96xf32>
    %47 = vector.broadcast %4 : vector<1x96xf32> to vector<8x96xf32>
    %48 = arith.addf %46, %47 : vector<8x96xf32>
    %49 = vector.extract_strided_slice %45 {offsets = [0, 0], sizes = [8, 32], strides = [1, 1]} : vector<8x96xf32> to vector<8x32xf32>
    %50 = vector.extract_strided_slice %48 {offsets = [0, 0], sizes = [8, 32], strides = [1, 1]} : vector<8x96xf32> to vector<8x32xf32>
    %51 = arith.addf %49, %50 : vector<8x32xf32>
    %cst_21 = arith.constant 0.000000e+00 : f32
    %52 = vector.broadcast %cst_21 : f32 to vector<8x32xf32>
    %53 = arith.subf %52, %51 : vector<8x32xf32>
    %54 = math.exp %53 : vector<8x32xf32>
    %cst_22 = arith.constant 1.000000e+00 : f32
    %55 = vector.broadcast %cst_22 : f32 to vector<8x32xf32>
    %56 = arith.addf %55, %54 : vector<8x32xf32>
    %cst_23 = arith.constant 1.000000e+00 : f32
    %57 = vector.broadcast %cst_23 : f32 to vector<8x32xf32>
    %58 = arith.divf %57, %56 : vector<8x32xf32>
    %59 = vector.extract_strided_slice %45 {offsets = [0, 32], sizes = [8, 32], strides = [1, 1]} : vector<8x96xf32> to vector<8x32xf32>
    %60 = vector.extract_strided_slice %48 {offsets = [0, 32], sizes = [8, 32], strides = [1, 1]} : vector<8x96xf32> to vector<8x32xf32>
    %61 = arith.addf %59, %60 : vector<8x32xf32>
    %cst_24 = arith.constant 0.000000e+00 : f32
    %62 = vector.broadcast %cst_24 : f32 to vector<8x32xf32>
    %63 = arith.subf %62, %61 : vector<8x32xf32>
    %64 = math.exp %63 : vector<8x32xf32>
    %cst_25 = arith.constant 1.000000e+00 : f32
    %65 = vector.broadcast %cst_25 : f32 to vector<8x32xf32>
    %66 = arith.addf %65, %64 : vector<8x32xf32>
    %cst_26 = arith.constant 1.000000e+00 : f32
    %67 = vector.broadcast %cst_26 : f32 to vector<8x32xf32>
    %68 = arith.divf %67, %66 : vector<8x32xf32>
    %69 = vector.extract_strided_slice %45 {offsets = [0, 64], sizes = [8, 32], strides = [1, 1]} : vector<8x96xf32> to vector<8x32xf32>
    %70 = vector.extract_strided_slice %48 {offsets = [0, 64], sizes = [8, 32], strides = [1, 1]} : vector<8x96xf32> to vector<8x32xf32>
    %71 = arith.mulf %58, %70 : vector<8x32xf32>
    %72 = arith.addf %69, %71 : vector<8x32xf32>
    %73 = math.tanh %72 : vector<8x32xf32>
    %cst_27 = arith.constant 1.000000e+00 : f32
    %74 = vector.broadcast %cst_27 : f32 to vector<8x32xf32>
    %75 = arith.subf %74, %68 : vector<8x32xf32>
    %76 = arith.mulf %75, %73 : vector<8x32xf32>
    %77 = arith.mulf %68, %44 : vector<8x32xf32>
    %78 = arith.addf %76, %77 : vector<8x32xf32>
    %79 = vector.extract_strided_slice %9 {offsets = [40, 0], sizes = [8, 96], strides = [1, 1]} : vector<64x96xf32> to vector<8x96xf32>
    %cst_28 = arith.constant dense<0.000000e+00> : vector<8x96xf32>
    %80 = tpu.matmul %78, %3, %cst_28 {dimension_numbers = #tpu.dot_dimension_numbers<[1], [0], [0], [1], [0, 0, 1, 1], [], []>} : vector<8x32xf32>, vector<32x96xf32>, vector<8x96xf32> -> vector<8x96xf32>
    %81 = vector.broadcast %4 : vector<1x96xf32> to vector<8x96xf32>
    %82 = arith.addf %80, %81 : vector<8x96xf32>
    %83 = vector.extract_strided_slice %79 {offsets = [0, 0], sizes = [8, 32], strides = [1, 1]} : vector<8x96xf32> to vector<8x32xf32>
    %84 = vector.extract_strided_slice %82 {offsets = [0, 0], sizes = [8, 32], strides = [1, 1]} : vector<8x96xf32> to vector<8x32xf32>
    %85 = arith.addf %83, %84 : vector<8x32xf32>
    %cst_29 = arith.constant 0.000000e+00 : f32
    %86 = vector.broadcast %cst_29 : f32 to vector<8x32xf32>
    %87 = arith.subf %86, %85 : vector<8x32xf32>
    %88 = math.exp %87 : vector<8x32xf32>
    %cst_30 = arith.constant 1.000000e+00 : f32
    %89 = vector.broadcast %cst_30 : f32 to vector<8x32xf32>
    %90 = arith.addf %89, %88 : vector<8x32xf32>
    %cst_31 = arith.constant 1.000000e+00 : f32
    %91 = vector.broadcast %cst_31 : f32 to vector<8x32xf32>
    %92 = arith.divf %91, %90 : vector<8x32xf32>
    %93 = vector.extract_strided_slice %79 {offsets = [0, 32], sizes = [8, 32], strides = [1, 1]} : vector<8x96xf32> to vector<8x32xf32>
    %94 = vector.extract_strided_slice %82 {offsets = [0, 32], sizes = [8, 32], strides = [1, 1]} : vector<8x96xf32> to vector<8x32xf32>
    %95 = arith.addf %93, %94 : vector<8x32xf32>
    %cst_32 = arith.constant 0.000000e+00 : f32
    %96 = vector.broadcast %cst_32 : f32 to vector<8x32xf32>
    %97 = arith.subf %96, %95 : vector<8x32xf32>
    %98 = math.exp %97 : vector<8x32xf32>
    %cst_33 = arith.constant 1.000000e+00 : f32
    %99 = vector.broadcast %cst_33 : f32 to vector<8x32xf32>
    %100 = arith.addf %99, %98 : vector<8x32xf32>
    %cst_34 = arith.constant 1.000000e+00 : f32
    %101 = vector.broadcast %cst_34 : f32 to vector<8x32xf32>
    %102 = arith.divf %101, %100 : vector<8x32xf32>
    %103 = vector.extract_strided_slice %79 {offsets = [0, 64], sizes = [8, 32], strides = [1, 1]} : vector<8x96xf32> to vector<8x32xf32>
    %104 = vector.extract_strided_slice %82 {offsets = [0, 64], sizes = [8, 32], strides = [1, 1]} : vector<8x96xf32> to vector<8x32xf32>
    %105 = arith.mulf %92, %104 : vector<8x32xf32>
    %106 = arith.addf %103, %105 : vector<8x32xf32>
    %107 = math.tanh %106 : vector<8x32xf32>
    %cst_35 = arith.constant 1.000000e+00 : f32
    %108 = vector.broadcast %cst_35 : f32 to vector<8x32xf32>
    %109 = arith.subf %108, %102 : vector<8x32xf32>
    %110 = arith.mulf %109, %107 : vector<8x32xf32>
    %111 = arith.mulf %102, %78 : vector<8x32xf32>
    %112 = arith.addf %110, %111 : vector<8x32xf32>
    %113 = vector.extract_strided_slice %9 {offsets = [32, 0], sizes = [8, 96], strides = [1, 1]} : vector<64x96xf32> to vector<8x96xf32>
    %cst_36 = arith.constant dense<0.000000e+00> : vector<8x96xf32>
    %114 = tpu.matmul %112, %3, %cst_36 {dimension_numbers = #tpu.dot_dimension_numbers<[1], [0], [0], [1], [0, 0, 1, 1], [], []>} : vector<8x32xf32>, vector<32x96xf32>, vector<8x96xf32> -> vector<8x96xf32>
    %115 = vector.broadcast %4 : vector<1x96xf32> to vector<8x96xf32>
    %116 = arith.addf %114, %115 : vector<8x96xf32>
    %117 = vector.extract_strided_slice %113 {offsets = [0, 0], sizes = [8, 32], strides = [1, 1]} : vector<8x96xf32> to vector<8x32xf32>
    %118 = vector.extract_strided_slice %116 {offsets = [0, 0], sizes = [8, 32], strides = [1, 1]} : vector<8x96xf32> to vector<8x32xf32>
    %119 = arith.addf %117, %118 : vector<8x32xf32>
    %cst_37 = arith.constant 0.000000e+00 : f32
    %120 = vector.broadcast %cst_37 : f32 to vector<8x32xf32>
    %121 = arith.subf %120, %119 : vector<8x32xf32>
    %122 = math.exp %121 : vector<8x32xf32>
    %cst_38 = arith.constant 1.000000e+00 : f32
    %123 = vector.broadcast %cst_38 : f32 to vector<8x32xf32>
    %124 = arith.addf %123, %122 : vector<8x32xf32>
    %cst_39 = arith.constant 1.000000e+00 : f32
    %125 = vector.broadcast %cst_39 : f32 to vector<8x32xf32>
    %126 = arith.divf %125, %124 : vector<8x32xf32>
    %127 = vector.extract_strided_slice %113 {offsets = [0, 32], sizes = [8, 32], strides = [1, 1]} : vector<8x96xf32> to vector<8x32xf32>
    %128 = vector.extract_strided_slice %116 {offsets = [0, 32], sizes = [8, 32], strides = [1, 1]} : vector<8x96xf32> to vector<8x32xf32>
    %129 = arith.addf %127, %128 : vector<8x32xf32>
    %cst_40 = arith.constant 0.000000e+00 : f32
    %130 = vector.broadcast %cst_40 : f32 to vector<8x32xf32>
    %131 = arith.subf %130, %129 : vector<8x32xf32>
    %132 = math.exp %131 : vector<8x32xf32>
    %cst_41 = arith.constant 1.000000e+00 : f32
    %133 = vector.broadcast %cst_41 : f32 to vector<8x32xf32>
    %134 = arith.addf %133, %132 : vector<8x32xf32>
    %cst_42 = arith.constant 1.000000e+00 : f32
    %135 = vector.broadcast %cst_42 : f32 to vector<8x32xf32>
    %136 = arith.divf %135, %134 : vector<8x32xf32>
    %137 = vector.extract_strided_slice %113 {offsets = [0, 64], sizes = [8, 32], strides = [1, 1]} : vector<8x96xf32> to vector<8x32xf32>
    %138 = vector.extract_strided_slice %116 {offsets = [0, 64], sizes = [8, 32], strides = [1, 1]} : vector<8x96xf32> to vector<8x32xf32>
    %139 = arith.mulf %126, %138 : vector<8x32xf32>
    %140 = arith.addf %137, %139 : vector<8x32xf32>
    %141 = math.tanh %140 : vector<8x32xf32>
    %cst_43 = arith.constant 1.000000e+00 : f32
    %142 = vector.broadcast %cst_43 : f32 to vector<8x32xf32>
    %143 = arith.subf %142, %136 : vector<8x32xf32>
    %144 = arith.mulf %143, %141 : vector<8x32xf32>
    %145 = arith.mulf %136, %112 : vector<8x32xf32>
    %146 = arith.addf %144, %145 : vector<8x32xf32>
    %147 = vector.extract_strided_slice %9 {offsets = [24, 0], sizes = [8, 96], strides = [1, 1]} : vector<64x96xf32> to vector<8x96xf32>
    %cst_44 = arith.constant dense<0.000000e+00> : vector<8x96xf32>
    %148 = tpu.matmul %146, %3, %cst_44 {dimension_numbers = #tpu.dot_dimension_numbers<[1], [0], [0], [1], [0, 0, 1, 1], [], []>} : vector<8x32xf32>, vector<32x96xf32>, vector<8x96xf32> -> vector<8x96xf32>
    %149 = vector.broadcast %4 : vector<1x96xf32> to vector<8x96xf32>
    %150 = arith.addf %148, %149 : vector<8x96xf32>
    %151 = vector.extract_strided_slice %147 {offsets = [0, 0], sizes = [8, 32], strides = [1, 1]} : vector<8x96xf32> to vector<8x32xf32>
    %152 = vector.extract_strided_slice %150 {offsets = [0, 0], sizes = [8, 32], strides = [1, 1]} : vector<8x96xf32> to vector<8x32xf32>
    %153 = arith.addf %151, %152 : vector<8x32xf32>
    %cst_45 = arith.constant 0.000000e+00 : f32
    %154 = vector.broadcast %cst_45 : f32 to vector<8x32xf32>
    %155 = arith.subf %154, %153 : vector<8x32xf32>
    %156 = math.exp %155 : vector<8x32xf32>
    %cst_46 = arith.constant 1.000000e+00 : f32
    %157 = vector.broadcast %cst_46 : f32 to vector<8x32xf32>
    %158 = arith.addf %157, %156 : vector<8x32xf32>
    %cst_47 = arith.constant 1.000000e+00 : f32
    %159 = vector.broadcast %cst_47 : f32 to vector<8x32xf32>
    %160 = arith.divf %159, %158 : vector<8x32xf32>
    %161 = vector.extract_strided_slice %147 {offsets = [0, 32], sizes = [8, 32], strides = [1, 1]} : vector<8x96xf32> to vector<8x32xf32>
    %162 = vector.extract_strided_slice %150 {offsets = [0, 32], sizes = [8, 32], strides = [1, 1]} : vector<8x96xf32> to vector<8x32xf32>
    %163 = arith.addf %161, %162 : vector<8x32xf32>
    %cst_48 = arith.constant 0.000000e+00 : f32
    %164 = vector.broadcast %cst_48 : f32 to vector<8x32xf32>
    %165 = arith.subf %164, %163 : vector<8x32xf32>
    %166 = math.exp %165 : vector<8x32xf32>
    %cst_49 = arith.constant 1.000000e+00 : f32
    %167 = vector.broadcast %cst_49 : f32 to vector<8x32xf32>
    %168 = arith.addf %167, %166 : vector<8x32xf32>
    %cst_50 = arith.constant 1.000000e+00 : f32
    %169 = vector.broadcast %cst_50 : f32 to vector<8x32xf32>
    %170 = arith.divf %169, %168 : vector<8x32xf32>
    %171 = vector.extract_strided_slice %147 {offsets = [0, 64], sizes = [8, 32], strides = [1, 1]} : vector<8x96xf32> to vector<8x32xf32>
    %172 = vector.extract_strided_slice %150 {offsets = [0, 64], sizes = [8, 32], strides = [1, 1]} : vector<8x96xf32> to vector<8x32xf32>
    %173 = arith.mulf %160, %172 : vector<8x32xf32>
    %174 = arith.addf %171, %173 : vector<8x32xf32>
    %175 = math.tanh %174 : vector<8x32xf32>
    %cst_51 = arith.constant 1.000000e+00 : f32
    %176 = vector.broadcast %cst_51 : f32 to vector<8x32xf32>
    %177 = arith.subf %176, %170 : vector<8x32xf32>
    %178 = arith.mulf %177, %175 : vector<8x32xf32>
    %179 = arith.mulf %170, %146 : vector<8x32xf32>
    %180 = arith.addf %178, %179 : vector<8x32xf32>
    %181 = vector.extract_strided_slice %9 {offsets = [16, 0], sizes = [8, 96], strides = [1, 1]} : vector<64x96xf32> to vector<8x96xf32>
    %cst_52 = arith.constant dense<0.000000e+00> : vector<8x96xf32>
    %182 = tpu.matmul %180, %3, %cst_52 {dimension_numbers = #tpu.dot_dimension_numbers<[1], [0], [0], [1], [0, 0, 1, 1], [], []>} : vector<8x32xf32>, vector<32x96xf32>, vector<8x96xf32> -> vector<8x96xf32>
    %183 = vector.broadcast %4 : vector<1x96xf32> to vector<8x96xf32>
    %184 = arith.addf %182, %183 : vector<8x96xf32>
    %185 = vector.extract_strided_slice %181 {offsets = [0, 0], sizes = [8, 32], strides = [1, 1]} : vector<8x96xf32> to vector<8x32xf32>
    %186 = vector.extract_strided_slice %184 {offsets = [0, 0], sizes = [8, 32], strides = [1, 1]} : vector<8x96xf32> to vector<8x32xf32>
    %187 = arith.addf %185, %186 : vector<8x32xf32>
    %cst_53 = arith.constant 0.000000e+00 : f32
    %188 = vector.broadcast %cst_53 : f32 to vector<8x32xf32>
    %189 = arith.subf %188, %187 : vector<8x32xf32>
    %190 = math.exp %189 : vector<8x32xf32>
    %cst_54 = arith.constant 1.000000e+00 : f32
    %191 = vector.broadcast %cst_54 : f32 to vector<8x32xf32>
    %192 = arith.addf %191, %190 : vector<8x32xf32>
    %cst_55 = arith.constant 1.000000e+00 : f32
    %193 = vector.broadcast %cst_55 : f32 to vector<8x32xf32>
    %194 = arith.divf %193, %192 : vector<8x32xf32>
    %195 = vector.extract_strided_slice %181 {offsets = [0, 32], sizes = [8, 32], strides = [1, 1]} : vector<8x96xf32> to vector<8x32xf32>
    %196 = vector.extract_strided_slice %184 {offsets = [0, 32], sizes = [8, 32], strides = [1, 1]} : vector<8x96xf32> to vector<8x32xf32>
    %197 = arith.addf %195, %196 : vector<8x32xf32>
    %cst_56 = arith.constant 0.000000e+00 : f32
    %198 = vector.broadcast %cst_56 : f32 to vector<8x32xf32>
    %199 = arith.subf %198, %197 : vector<8x32xf32>
    %200 = math.exp %199 : vector<8x32xf32>
    %cst_57 = arith.constant 1.000000e+00 : f32
    %201 = vector.broadcast %cst_57 : f32 to vector<8x32xf32>
    %202 = arith.addf %201, %200 : vector<8x32xf32>
    %cst_58 = arith.constant 1.000000e+00 : f32
    %203 = vector.broadcast %cst_58 : f32 to vector<8x32xf32>
    %204 = arith.divf %203, %202 : vector<8x32xf32>
    %205 = vector.extract_strided_slice %181 {offsets = [0, 64], sizes = [8, 32], strides = [1, 1]} : vector<8x96xf32> to vector<8x32xf32>
    %206 = vector.extract_strided_slice %184 {offsets = [0, 64], sizes = [8, 32], strides = [1, 1]} : vector<8x96xf32> to vector<8x32xf32>
    %207 = arith.mulf %194, %206 : vector<8x32xf32>
    %208 = arith.addf %205, %207 : vector<8x32xf32>
    %209 = math.tanh %208 : vector<8x32xf32>
    %cst_59 = arith.constant 1.000000e+00 : f32
    %210 = vector.broadcast %cst_59 : f32 to vector<8x32xf32>
    %211 = arith.subf %210, %204 : vector<8x32xf32>
    %212 = arith.mulf %211, %209 : vector<8x32xf32>
    %213 = arith.mulf %204, %180 : vector<8x32xf32>
    %214 = arith.addf %212, %213 : vector<8x32xf32>
    %215 = vector.extract_strided_slice %9 {offsets = [8, 0], sizes = [8, 96], strides = [1, 1]} : vector<64x96xf32> to vector<8x96xf32>
    %cst_60 = arith.constant dense<0.000000e+00> : vector<8x96xf32>
    %216 = tpu.matmul %214, %3, %cst_60 {dimension_numbers = #tpu.dot_dimension_numbers<[1], [0], [0], [1], [0, 0, 1, 1], [], []>} : vector<8x32xf32>, vector<32x96xf32>, vector<8x96xf32> -> vector<8x96xf32>
    %217 = vector.broadcast %4 : vector<1x96xf32> to vector<8x96xf32>
    %218 = arith.addf %216, %217 : vector<8x96xf32>
    %219 = vector.extract_strided_slice %215 {offsets = [0, 0], sizes = [8, 32], strides = [1, 1]} : vector<8x96xf32> to vector<8x32xf32>
    %220 = vector.extract_strided_slice %218 {offsets = [0, 0], sizes = [8, 32], strides = [1, 1]} : vector<8x96xf32> to vector<8x32xf32>
    %221 = arith.addf %219, %220 : vector<8x32xf32>
    %cst_61 = arith.constant 0.000000e+00 : f32
    %222 = vector.broadcast %cst_61 : f32 to vector<8x32xf32>
    %223 = arith.subf %222, %221 : vector<8x32xf32>
    %224 = math.exp %223 : vector<8x32xf32>
    %cst_62 = arith.constant 1.000000e+00 : f32
    %225 = vector.broadcast %cst_62 : f32 to vector<8x32xf32>
    %226 = arith.addf %225, %224 : vector<8x32xf32>
    %cst_63 = arith.constant 1.000000e+00 : f32
    %227 = vector.broadcast %cst_63 : f32 to vector<8x32xf32>
    %228 = arith.divf %227, %226 : vector<8x32xf32>
    %229 = vector.extract_strided_slice %215 {offsets = [0, 32], sizes = [8, 32], strides = [1, 1]} : vector<8x96xf32> to vector<8x32xf32>
    %230 = vector.extract_strided_slice %218 {offsets = [0, 32], sizes = [8, 32], strides = [1, 1]} : vector<8x96xf32> to vector<8x32xf32>
    %231 = arith.addf %229, %230 : vector<8x32xf32>
    %cst_64 = arith.constant 0.000000e+00 : f32
    %232 = vector.broadcast %cst_64 : f32 to vector<8x32xf32>
    %233 = arith.subf %232, %231 : vector<8x32xf32>
    %234 = math.exp %233 : vector<8x32xf32>
    %cst_65 = arith.constant 1.000000e+00 : f32
    %235 = vector.broadcast %cst_65 : f32 to vector<8x32xf32>
    %236 = arith.addf %235, %234 : vector<8x32xf32>
    %cst_66 = arith.constant 1.000000e+00 : f32
    %237 = vector.broadcast %cst_66 : f32 to vector<8x32xf32>
    %238 = arith.divf %237, %236 : vector<8x32xf32>
    %239 = vector.extract_strided_slice %215 {offsets = [0, 64], sizes = [8, 32], strides = [1, 1]} : vector<8x96xf32> to vector<8x32xf32>
    %240 = vector.extract_strided_slice %218 {offsets = [0, 64], sizes = [8, 32], strides = [1, 1]} : vector<8x96xf32> to vector<8x32xf32>
    %241 = arith.mulf %228, %240 : vector<8x32xf32>
    %242 = arith.addf %239, %241 : vector<8x32xf32>
    %243 = math.tanh %242 : vector<8x32xf32>
    %cst_67 = arith.constant 1.000000e+00 : f32
    %244 = vector.broadcast %cst_67 : f32 to vector<8x32xf32>
    %245 = arith.subf %244, %238 : vector<8x32xf32>
    %246 = arith.mulf %245, %243 : vector<8x32xf32>
    %247 = arith.mulf %238, %214 : vector<8x32xf32>
    %248 = arith.addf %246, %247 : vector<8x32xf32>
    %249 = vector.extract_strided_slice %9 {offsets = [0, 0], sizes = [8, 96], strides = [1, 1]} : vector<64x96xf32> to vector<8x96xf32>
    %cst_68 = arith.constant dense<0.000000e+00> : vector<8x96xf32>
    %250 = tpu.matmul %248, %3, %cst_68 {dimension_numbers = #tpu.dot_dimension_numbers<[1], [0], [0], [1], [0, 0, 1, 1], [], []>} : vector<8x32xf32>, vector<32x96xf32>, vector<8x96xf32> -> vector<8x96xf32>
    %251 = vector.broadcast %4 : vector<1x96xf32> to vector<8x96xf32>
    %252 = arith.addf %250, %251 : vector<8x96xf32>
    %253 = vector.extract_strided_slice %249 {offsets = [0, 0], sizes = [8, 32], strides = [1, 1]} : vector<8x96xf32> to vector<8x32xf32>
    %254 = vector.extract_strided_slice %252 {offsets = [0, 0], sizes = [8, 32], strides = [1, 1]} : vector<8x96xf32> to vector<8x32xf32>
    %255 = arith.addf %253, %254 : vector<8x32xf32>
    %cst_69 = arith.constant 0.000000e+00 : f32
    %256 = vector.broadcast %cst_69 : f32 to vector<8x32xf32>
    %257 = arith.subf %256, %255 : vector<8x32xf32>
    %258 = math.exp %257 : vector<8x32xf32>
    %cst_70 = arith.constant 1.000000e+00 : f32
    %259 = vector.broadcast %cst_70 : f32 to vector<8x32xf32>
    %260 = arith.addf %259, %258 : vector<8x32xf32>
    %cst_71 = arith.constant 1.000000e+00 : f32
    %261 = vector.broadcast %cst_71 : f32 to vector<8x32xf32>
    %262 = arith.divf %261, %260 : vector<8x32xf32>
    %263 = vector.extract_strided_slice %249 {offsets = [0, 32], sizes = [8, 32], strides = [1, 1]} : vector<8x96xf32> to vector<8x32xf32>
    %264 = vector.extract_strided_slice %252 {offsets = [0, 32], sizes = [8, 32], strides = [1, 1]} : vector<8x96xf32> to vector<8x32xf32>
    %265 = arith.addf %263, %264 : vector<8x32xf32>
    %cst_72 = arith.constant 0.000000e+00 : f32
    %266 = vector.broadcast %cst_72 : f32 to vector<8x32xf32>
    %267 = arith.subf %266, %265 : vector<8x32xf32>
    %268 = math.exp %267 : vector<8x32xf32>
    %cst_73 = arith.constant 1.000000e+00 : f32
    %269 = vector.broadcast %cst_73 : f32 to vector<8x32xf32>
    %270 = arith.addf %269, %268 : vector<8x32xf32>
    %cst_74 = arith.constant 1.000000e+00 : f32
    %271 = vector.broadcast %cst_74 : f32 to vector<8x32xf32>
    %272 = arith.divf %271, %270 : vector<8x32xf32>
    %273 = vector.extract_strided_slice %249 {offsets = [0, 64], sizes = [8, 32], strides = [1, 1]} : vector<8x96xf32> to vector<8x32xf32>
    %274 = vector.extract_strided_slice %252 {offsets = [0, 64], sizes = [8, 32], strides = [1, 1]} : vector<8x96xf32> to vector<8x32xf32>
    %275 = arith.mulf %262, %274 : vector<8x32xf32>
    %276 = arith.addf %273, %275 : vector<8x32xf32>
    %277 = math.tanh %276 : vector<8x32xf32>
    %cst_75 = arith.constant 1.000000e+00 : f32
    %278 = vector.broadcast %cst_75 : f32 to vector<8x32xf32>
    %279 = arith.subf %278, %272 : vector<8x32xf32>
    %280 = arith.mulf %279, %277 : vector<8x32xf32>
    %281 = arith.mulf %272, %248 : vector<8x32xf32>
    %282 = arith.addf %280, %281 : vector<8x32xf32>
    %283 = tpu.concatenate %282, %248, %214, %180, %146, %112, %78, %44 in 0 : vector<8x32xf32>, vector<8x32xf32>, vector<8x32xf32>, vector<8x32xf32>, vector<8x32xf32>, vector<8x32xf32>, vector<8x32xf32>, vector<8x32xf32> -> vector<64x32xf32>
    %c0_76 = arith.constant 0 : index
    %c0_77 = arith.constant 0 : index
    %284 = vector.load %arg8[%c0_76, %c0_77] : memref<32x16xf32, #tpu.memory_space<vmem>>, vector<32x16xf32>
    %cst_78 = arith.constant dense<0.000000e+00> : vector<64x16xf32>
    %285 = tpu.matmul %283, %284, %cst_78 {dimension_numbers = #tpu.dot_dimension_numbers<[1], [0], [0], [1], [0, 0, 1, 1], [], []>} : vector<64x32xf32>, vector<32x16xf32>, vector<64x16xf32> -> vector<64x16xf32>
    %c0_79 = arith.constant 0 : index
    %c0_80 = arith.constant 0 : index
    %286 = vector.load %arg9[%c0_79, %c0_80] : memref<1x16xf32, #tpu.memory_space<vmem>>, vector<1x16xf32>
    %287 = vector.broadcast %286 : vector<1x16xf32> to vector<64x16xf32>
    %288 = arith.addf %285, %287 : vector<64x16xf32>
    %c0_81 = arith.constant 0 : index
    %c0_82 = arith.constant 0 : index
    %289 = vector.load %arg13[%c0_81, %c0_82] : memref<16x64xf32, #tpu.memory_space<vmem>>, vector<16x64xf32>
    %cst_83 = arith.constant dense<0.000000e+00> : vector<64x64xf32>
    %290 = tpu.matmul %288, %289, %cst_83 {dimension_numbers = #tpu.dot_dimension_numbers<[1], [0], [0], [1], [0, 0, 1, 1], [], []>} : vector<64x16xf32>, vector<16x64xf32>, vector<64x64xf32> -> vector<64x64xf32>
    %c0_84 = arith.constant 0 : index
    %c0_85 = arith.constant 0 : index
    %291 = vector.load %arg14[%c0_84, %c0_85] : memref<1x64xf32, #tpu.memory_space<vmem>>, vector<1x64xf32>
    %292 = vector.broadcast %291 : vector<1x64xf32> to vector<64x64xf32>
    %293 = arith.addf %290, %292 : vector<64x64xf32>
    %294 = vector.extract_strided_slice %288 {offsets = [0, 0], sizes = [8, 16], strides = [1, 1]} : vector<64x16xf32> to vector<8x16xf32>
    %c0_86 = arith.constant 0 : index
    %c0_87 = arith.constant 0 : index
    %295 = vector.load %arg10[%c0_86, %c0_87] : memref<16x8xf32, #tpu.memory_space<vmem>>, vector<16x8xf32>
    %cst_88 = arith.constant dense<0.000000e+00> : vector<8x8xf32>
    %296 = tpu.matmul %294, %295, %cst_88 {dimension_numbers = #tpu.dot_dimension_numbers<[1], [0], [0], [1], [0, 0, 1, 1], [], []>} : vector<8x16xf32>, vector<16x8xf32>, vector<8x8xf32> -> vector<8x8xf32>
    %c0_89 = arith.constant 0 : index
    %c0_90 = arith.constant 0 : index
    %297 = vector.load %arg11[%c0_89, %c0_90] : memref<1x8xf32, #tpu.memory_space<vmem>>, vector<1x8xf32>
    %298 = vector.broadcast %297 : vector<1x8xf32> to vector<8x8xf32>
    %299 = arith.addf %296, %298 : vector<8x8xf32>
    %c0_91 = arith.constant 0 : index
    %c0_92 = arith.constant 0 : index
    %300 = vector.load %arg25[%c0_91, %c0_92] : memref<8x8xf32, #tpu.memory_space<vmem>>, vector<8x8xf32>
    tpu.vector_store %arg25[%c0_91, %c0_92], %299 {strides = array<i32>} : memref<8x8xf32, #tpu.memory_space<vmem>>, vector<8x8xf32>,
    %301 = vector.extract_strided_slice %299 {offsets = [0, 0], sizes = [8, 4], strides = [1, 1]} : vector<8x8xf32> to vector<8x4xf32>
    %302 = vector.extract_strided_slice %299 {offsets = [0, 4], sizes = [8, 4], strides = [1, 1]} : vector<8x8xf32> to vector<8x4xf32>
    %303 = math.exp %302 : vector<8x4xf32>
    %c0_93 = arith.constant 0 : index
    %c0_94 = arith.constant 0 : index
    %304 = vector.load %arg2[%c0_93, %c0_94] : memref<8x4xf32, #tpu.memory_space<vmem>>, vector<8x4xf32>
    %305 = arith.mulf %303, %304 : vector<8x4xf32>
    %306 = arith.addf %301, %305 : vector<8x4xf32>
    %c0_95 = arith.constant 0 : index
    %c0_96 = arith.constant 0 : index
    %307 = vector.load %arg12[%c0_95, %c0_96] : memref<4x64xf32, #tpu.memory_space<vmem>>, vector<4x64xf32>
    %c0_97 = arith.constant 0 : index
    %c0_98 = arith.constant 0 : index
    %308 = vector.load %arg15[%c0_97, %c0_98] : memref<64x64xf32, #tpu.memory_space<vmem>>, vector<64x64xf32>
    %c0_99 = arith.constant 0 : index
    %c0_100 = arith.constant 0 : index
    %309 = vector.load %arg16[%c0_99, %c0_100] : memref<1x64xf32, #tpu.memory_space<vmem>>, vector<1x64xf32>
    %c0_101 = arith.constant 0 : index
    %c0_102 = arith.constant 0 : index
    %310 = vector.load %arg17[%c0_101, %c0_102] : memref<64x8xf32, #tpu.memory_space<vmem>>, vector<64x8xf32>
    %c0_103 = arith.constant 0 : index
    %c0_104 = arith.constant 0 : index
    %311 = vector.load %arg18[%c0_103, %c0_104] : memref<1x8xf32, #tpu.memory_space<vmem>>, vector<1x8xf32>
    %c0_105 = arith.constant 0 : index
    %c0_106 = arith.constant 0 : index
    %312 = vector.load %arg19[%c0_105, %c0_106] : memref<4x128xf32, #tpu.memory_space<vmem>>, vector<4x128xf32>
    %c0_107 = arith.constant 0 : index
    %c0_108 = arith.constant 0 : index
    %313 = vector.load %arg20[%c0_107, %c0_108] : memref<1x128xf32, #tpu.memory_space<vmem>>, vector<1x128xf32>
    %c0_109 = arith.constant 0 : index
    %c0_110 = arith.constant 0 : index
    %314 = vector.load %arg21[%c0_109, %c0_110] : memref<128x4xf32, #tpu.memory_space<vmem>>, vector<128x4xf32>
    %c0_111 = arith.constant 0 : index
    %c0_112 = arith.constant 0 : index
    %315 = vector.load %arg22[%c0_111, %c0_112] : memref<1x4xf32, #tpu.memory_space<vmem>>, vector<1x4xf32>
    %c0_113 = arith.constant 0 : index
    %c0_114 = arith.constant 0 : index
    %316 = vector.load %arg23[%c0_113, %c0_114] : memref<4x3xf32, #tpu.memory_space<vmem>>, vector<4x3xf32>
    %c0_115 = arith.constant 0 : index
    %c0_116 = arith.constant 0 : index
    %317 = vector.load %arg24[%c0_115, %c0_116] : memref<1x3xf32, #tpu.memory_space<vmem>>, vector<1x3xf32>
    %c0_117 = arith.constant 0 : index
    %c0_118 = arith.constant 0 : index
    %c0_119 = arith.constant 0 : index
    %318 = vector.load %arg1[%c0_117, %c0_118, %c0_119] : memref<8x8x3xf32, #tpu.memory_space<vmem>>, vector<1x8x3xf32>
    %319 = vector.shape_cast %318 : vector<1x8x3xf32> to vector<8x3xf32>
    %cst_120 = arith.constant dense<0.000000e+00> : vector<8x3xf32>
    %320 = tpu.matmul %306, %316, %cst_120 {dimension_numbers = #tpu.dot_dimension_numbers<[1], [0], [0], [1], [0, 0, 1, 1], [], []>} : vector<8x4xf32>, vector<4x3xf32>, vector<8x3xf32> -> vector<8x3xf32>
    %321 = vector.broadcast %317 : vector<1x3xf32> to vector<8x3xf32>
    %322 = arith.addf %320, %321 : vector<8x3xf32>
    %323 = arith.subf %319, %322 : vector<8x3xf32>
    %324 = arith.mulf %323, %323 : vector<8x3xf32>
    %cst_121 = arith.constant dense<0.000000e+00> : vector<8xf32>
    %325 = vector.multi_reduction <add>, %324, %cst_121 [1] : vector<8x3xf32> to vector<8xf32>
    %326 = vector.shape_cast %325 : vector<8xf32> to vector<8x1xf32>
    %cst_122 = arith.constant 0.000000e+00 : f32
    %327 = vector.broadcast %cst_122 : f32 to vector<8x1xf32>
    %328 = vector.extract_strided_slice %293 {offsets = [8, 0], sizes = [8, 64], strides = [1, 1]} : vector<64x64xf32> to vector<8x64xf32>
    %cst_123 = arith.constant dense<0.000000e+00> : vector<8x64xf32>
    %329 = tpu.matmul %306, %307, %cst_123 {dimension_numbers = #tpu.dot_dimension_numbers<[1], [0], [0], [1], [0, 0, 1, 1], [], []>} : vector<8x4xf32>, vector<4x64xf32>, vector<8x64xf32> -> vector<8x64xf32>
    %330 = arith.addf %329, %328 : vector<8x64xf32>
    %cst_124 = arith.constant 0.000000e+00 : f32
    %331 = vector.broadcast %cst_124 : f32 to vector<8x64xf32>
    %332 = arith.maximumf %330, %331 : vector<8x64xf32>
    %333 = math.absf %330 : vector<8x64xf32>
    %cst_125 = arith.constant 0.000000e+00 : f32
    %334 = vector.broadcast %cst_125 : f32 to vector<8x64xf32>
    %335 = arith.subf %334, %333 : vector<8x64xf32>
    %336 = math.exp %335 : vector<8x64xf32>
    %cst_126 = arith.constant 1.000000e+00 : f32
    %337 = vector.broadcast %cst_126 : f32 to vector<8x64xf32>
    %338 = arith.addf %337, %336 : vector<8x64xf32>
    %339 = math.log %338 : vector<8x64xf32>
    %340 = arith.addf %332, %339 : vector<8x64xf32>
    %cst_127 = arith.constant dense<0.000000e+00> : vector<8x64xf32>
    %341 = tpu.matmul %340, %308, %cst_127 {dimension_numbers = #tpu.dot_dimension_numbers<[1], [0], [0], [1], [0, 0, 1, 1], [], []>} : vector<8x64xf32>, vector<64x64xf32>, vector<8x64xf32> -> vector<8x64xf32>
    %342 = vector.broadcast %309 : vector<1x64xf32> to vector<8x64xf32>
    %343 = arith.addf %341, %342 : vector<8x64xf32>
    %cst_128 = arith.constant 0.000000e+00 : f32
    %344 = vector.broadcast %cst_128 : f32 to vector<8x64xf32>
    %345 = arith.maximumf %343, %344 : vector<8x64xf32>
    %346 = math.absf %343 : vector<8x64xf32>
    %cst_129 = arith.constant 0.000000e+00 : f32
    %347 = vector.broadcast %cst_129 : f32 to vector<8x64xf32>
    %348 = arith.subf %347, %346 : vector<8x64xf32>
    %349 = math.exp %348 : vector<8x64xf32>
    %cst_130 = arith.constant 1.000000e+00 : f32
    %350 = vector.broadcast %cst_130 : f32 to vector<8x64xf32>
    %351 = arith.addf %350, %349 : vector<8x64xf32>
    %352 = math.log %351 : vector<8x64xf32>
    %353 = arith.addf %345, %352 : vector<8x64xf32>
    %cst_131 = arith.constant dense<0.000000e+00> : vector<8x8xf32>
    %354 = tpu.matmul %353, %310, %cst_131 {dimension_numbers = #tpu.dot_dimension_numbers<[1], [0], [0], [1], [0, 0, 1, 1], [], []>} : vector<8x64xf32>, vector<64x8xf32>, vector<8x8xf32> -> vector<8x8xf32>
    %355 = vector.broadcast %311 : vector<1x8xf32> to vector<8x8xf32>
    %356 = arith.addf %354, %355 : vector<8x8xf32>
    %357 = vector.extract_strided_slice %356 {offsets = [0, 0], sizes = [8, 4], strides = [1, 1]} : vector<8x8xf32> to vector<8x4xf32>
    %358 = vector.extract_strided_slice %356 {offsets = [0, 4], sizes = [8, 4], strides = [1, 1]} : vector<8x8xf32> to vector<8x4xf32>
    %cst_132 = arith.constant dense<0.000000e+00> : vector<8x128xf32>
    %359 = tpu.matmul %306, %312, %cst_132 {dimension_numbers = #tpu.dot_dimension_numbers<[1], [0], [0], [1], [0, 0, 1, 1], [], []>} : vector<8x4xf32>, vector<4x128xf32>, vector<8x128xf32> -> vector<8x128xf32>
    %360 = vector.broadcast %313 : vector<1x128xf32> to vector<8x128xf32>
    %361 = arith.addf %359, %360 : vector<8x128xf32>
    %cst_133 = arith.constant 0.000000e+00 : f32
    %362 = vector.broadcast %cst_133 : f32 to vector<8x128xf32>
    %363 = arith.maximumf %361, %362 : vector<8x128xf32>
    %364 = math.absf %361 : vector<8x128xf32>
    %cst_134 = arith.constant 0.000000e+00 : f32
    %365 = vector.broadcast %cst_134 : f32 to vector<8x128xf32>
    %366 = arith.subf %365, %364 : vector<8x128xf32>
    %367 = math.exp %366 : vector<8x128xf32>
    %cst_135 = arith.constant 1.000000e+00 : f32
    %368 = vector.broadcast %cst_135 : f32 to vector<8x128xf32>
    %369 = arith.addf %368, %367 : vector<8x128xf32>
    %370 = math.log %369 : vector<8x128xf32>
    %371 = arith.addf %363, %370 : vector<8x128xf32>
    %cst_136 = arith.constant dense<0.000000e+00> : vector<8x4xf32>
    %372 = tpu.matmul %371, %314, %cst_136 {dimension_numbers = #tpu.dot_dimension_numbers<[1], [0], [0], [1], [0, 0, 1, 1], [], []>} : vector<8x128xf32>, vector<128x4xf32>, vector<8x4xf32> -> vector<8x4xf32>
    %373 = vector.broadcast %315 : vector<1x4xf32> to vector<8x4xf32>
    %374 = arith.addf %372, %373 : vector<8x4xf32>
    %cst_137 = arith.constant 0.000000e+00 : f32
    %375 = vector.broadcast %cst_137 : f32 to vector<8x4xf32>
    %376 = arith.subf %375, %374 : vector<8x4xf32>
    %377 = math.exp %376 : vector<8x4xf32>
    %cst_138 = arith.constant 1.000000e+00 : f32
    %378 = vector.broadcast %cst_138 : f32 to vector<8x4xf32>
    %379 = arith.addf %378, %377 : vector<8x4xf32>
    %cst_139 = arith.constant 1.000000e+00 : f32
    %380 = vector.broadcast %cst_139 : f32 to vector<8x4xf32>
    %381 = arith.divf %380, %379 : vector<8x4xf32>
    %382 = arith.subf %357, %358 : vector<8x4xf32>
    %383 = arith.divf %382, %381 : vector<8x4xf32>
    %384 = arith.mulf %383, %383 : vector<8x4xf32>
    %cst_140 = arith.constant dense<0.000000e+00> : vector<8xf32>
    %385 = vector.multi_reduction <add>, %384, %cst_140 [1] : vector<8x4xf32> to vector<8xf32>
    %386 = vector.shape_cast %385 : vector<8xf32> to vector<8x1xf32>
    %387 = arith.addf %327, %386 : vector<8x1xf32>
    %388 = vector.broadcast %0 : f32 to vector<8x4xf32>
    %389 = arith.mulf %357, %388 : vector<8x4xf32>
    %390 = arith.addf %306, %389 : vector<8x4xf32>
    %c0_141 = arith.constant 0 : index
    %c0_142 = arith.constant 0 : index
    %c0_143 = arith.constant 0 : index
    %391 = vector.load %arg3[%c0_141, %c0_142, %c0_143] : memref<7x8x4xf32, #tpu.memory_space<vmem>>, vector<1x8x4xf32>
    %392 = vector.shape_cast %391 : vector<1x8x4xf32> to vector<8x4xf32>
    %393 = arith.mulf %381, %392 : vector<8x4xf32>
    %394 = arith.addf %390, %393 : vector<8x4xf32>
    %c1 = arith.constant 1 : index
    %c0_144 = arith.constant 0 : index
    %c0_145 = arith.constant 0 : index
    %395 = vector.load %arg1[%c1, %c0_144, %c0_145] : memref<8x8x3xf32, #tpu.memory_space<vmem>>, vector<1x8x3xf32>
    %396 = vector.shape_cast %395 : vector<1x8x3xf32> to vector<8x3xf32>
    %cst_146 = arith.constant dense<0.000000e+00> : vector<8x3xf32>
    %397 = tpu.matmul %394, %316, %cst_146 {dimension_numbers = #tpu.dot_dimension_numbers<[1], [0], [0], [1], [0, 0, 1, 1], [], []>} : vector<8x4xf32>, vector<4x3xf32>, vector<8x3xf32> -> vector<8x3xf32>
    %398 = vector.broadcast %317 : vector<1x3xf32> to vector<8x3xf32>
    %399 = arith.addf %397, %398 : vector<8x3xf32>
    %400 = arith.subf %396, %399 : vector<8x3xf32>
    %401 = arith.mulf %400, %400 : vector<8x3xf32>
    %cst_147 = arith.constant dense<0.000000e+00> : vector<8xf32>
    %402 = vector.multi_reduction <add>, %401, %cst_147 [1] : vector<8x3xf32> to vector<8xf32>
    %403 = vector.shape_cast %402 : vector<8xf32> to vector<8x1xf32>
    %404 = arith.addf %326, %403 : vector<8x1xf32>
    %405 = vector.extract_strided_slice %293 {offsets = [16, 0], sizes = [8, 64], strides = [1, 1]} : vector<64x64xf32> to vector<8x64xf32>
    %cst_148 = arith.constant dense<0.000000e+00> : vector<8x64xf32>
    %406 = tpu.matmul %394, %307, %cst_148 {dimension_numbers = #tpu.dot_dimension_numbers<[1], [0], [0], [1], [0, 0, 1, 1], [], []>} : vector<8x4xf32>, vector<4x64xf32>, vector<8x64xf32> -> vector<8x64xf32>
    %407 = arith.addf %406, %405 : vector<8x64xf32>
    %cst_149 = arith.constant 0.000000e+00 : f32
    %408 = vector.broadcast %cst_149 : f32 to vector<8x64xf32>
    %409 = arith.maximumf %407, %408 : vector<8x64xf32>
    %410 = math.absf %407 : vector<8x64xf32>
    %cst_150 = arith.constant 0.000000e+00 : f32
    %411 = vector.broadcast %cst_150 : f32 to vector<8x64xf32>
    %412 = arith.subf %411, %410 : vector<8x64xf32>
    %413 = math.exp %412 : vector<8x64xf32>
    %cst_151 = arith.constant 1.000000e+00 : f32
    %414 = vector.broadcast %cst_151 : f32 to vector<8x64xf32>
    %415 = arith.addf %414, %413 : vector<8x64xf32>
    %416 = math.log %415 : vector<8x64xf32>
    %417 = arith.addf %409, %416 : vector<8x64xf32>
    %cst_152 = arith.constant dense<0.000000e+00> : vector<8x64xf32>
    %418 = tpu.matmul %417, %308, %cst_152 {dimension_numbers = #tpu.dot_dimension_numbers<[1], [0], [0], [1], [0, 0, 1, 1], [], []>} : vector<8x64xf32>, vector<64x64xf32>, vector<8x64xf32> -> vector<8x64xf32>
    %419 = vector.broadcast %309 : vector<1x64xf32> to vector<8x64xf32>
    %420 = arith.addf %418, %419 : vector<8x64xf32>
    %cst_153 = arith.constant 0.000000e+00 : f32
    %421 = vector.broadcast %cst_153 : f32 to vector<8x64xf32>
    %422 = arith.maximumf %420, %421 : vector<8x64xf32>
    %423 = math.absf %420 : vector<8x64xf32>
    %cst_154 = arith.constant 0.000000e+00 : f32
    %424 = vector.broadcast %cst_154 : f32 to vector<8x64xf32>
    %425 = arith.subf %424, %423 : vector<8x64xf32>
    %426 = math.exp %425 : vector<8x64xf32>
    %cst_155 = arith.constant 1.000000e+00 : f32
    %427 = vector.broadcast %cst_155 : f32 to vector<8x64xf32>
    %428 = arith.addf %427, %426 : vector<8x64xf32>
    %429 = math.log %428 : vector<8x64xf32>
    %430 = arith.addf %422, %429 : vector<8x64xf32>
    %cst_156 = arith.constant dense<0.000000e+00> : vector<8x8xf32>
    %431 = tpu.matmul %430, %310, %cst_156 {dimension_numbers = #tpu.dot_dimension_numbers<[1], [0], [0], [1], [0, 0, 1, 1], [], []>} : vector<8x64xf32>, vector<64x8xf32>, vector<8x8xf32> -> vector<8x8xf32>
    %432 = vector.broadcast %311 : vector<1x8xf32> to vector<8x8xf32>
    %433 = arith.addf %431, %432 : vector<8x8xf32>
    %434 = vector.extract_strided_slice %433 {offsets = [0, 0], sizes = [8, 4], strides = [1, 1]} : vector<8x8xf32> to vector<8x4xf32>
    %435 = vector.extract_strided_slice %433 {offsets = [0, 4], sizes = [8, 4], strides = [1, 1]} : vector<8x8xf32> to vector<8x4xf32>
    %cst_157 = arith.constant dense<0.000000e+00> : vector<8x128xf32>
    %436 = tpu.matmul %394, %312, %cst_157 {dimension_numbers = #tpu.dot_dimension_numbers<[1], [0], [0], [1], [0, 0, 1, 1], [], []>} : vector<8x4xf32>, vector<4x128xf32>, vector<8x128xf32> -> vector<8x128xf32>
    %437 = vector.broadcast %313 : vector<1x128xf32> to vector<8x128xf32>
    %438 = arith.addf %436, %437 : vector<8x128xf32>
    %cst_158 = arith.constant 0.000000e+00 : f32
    %439 = vector.broadcast %cst_158 : f32 to vector<8x128xf32>
    %440 = arith.maximumf %438, %439 : vector<8x128xf32>
    %441 = math.absf %438 : vector<8x128xf32>
    %cst_159 = arith.constant 0.000000e+00 : f32
    %442 = vector.broadcast %cst_159 : f32 to vector<8x128xf32>
    %443 = arith.subf %442, %441 : vector<8x128xf32>
    %444 = math.exp %443 : vector<8x128xf32>
    %cst_160 = arith.constant 1.000000e+00 : f32
    %445 = vector.broadcast %cst_160 : f32 to vector<8x128xf32>
    %446 = arith.addf %445, %444 : vector<8x128xf32>
    %447 = math.log %446 : vector<8x128xf32>
    %448 = arith.addf %440, %447 : vector<8x128xf32>
    %cst_161 = arith.constant dense<0.000000e+00> : vector<8x4xf32>
    %449 = tpu.matmul %448, %314, %cst_161 {dimension_numbers = #tpu.dot_dimension_numbers<[1], [0], [0], [1], [0, 0, 1, 1], [], []>} : vector<8x128xf32>, vector<128x4xf32>, vector<8x4xf32> -> vector<8x4xf32>
    %450 = vector.broadcast %315 : vector<1x4xf32> to vector<8x4xf32>
    %451 = arith.addf %449, %450 : vector<8x4xf32>
    %cst_162 = arith.constant 0.000000e+00 : f32
    %452 = vector.broadcast %cst_162 : f32 to vector<8x4xf32>
    %453 = arith.subf %452, %451 : vector<8x4xf32>
    %454 = math.exp %453 : vector<8x4xf32>
    %cst_163 = arith.constant 1.000000e+00 : f32
    %455 = vector.broadcast %cst_163 : f32 to vector<8x4xf32>
    %456 = arith.addf %455, %454 : vector<8x4xf32>
    %cst_164 = arith.constant 1.000000e+00 : f32
    %457 = vector.broadcast %cst_164 : f32 to vector<8x4xf32>
    %458 = arith.divf %457, %456 : vector<8x4xf32>
    %459 = arith.subf %434, %435 : vector<8x4xf32>
    %460 = arith.divf %459, %458 : vector<8x4xf32>
    %461 = arith.mulf %460, %460 : vector<8x4xf32>
    %cst_165 = arith.constant dense<0.000000e+00> : vector<8xf32>
    %462 = vector.multi_reduction <add>, %461, %cst_165 [1] : vector<8x4xf32> to vector<8xf32>
    %463 = vector.shape_cast %462 : vector<8xf32> to vector<8x1xf32>
    %464 = arith.addf %387, %463 : vector<8x1xf32>
    %465 = vector.broadcast %0 : f32 to vector<8x4xf32>
    %466 = arith.mulf %434, %465 : vector<8x4xf32>
    %467 = arith.addf %394, %466 : vector<8x4xf32>
    %c1_166 = arith.constant 1 : index
    %c0_167 = arith.constant 0 : index
    %c0_168 = arith.constant 0 : index
    %468 = vector.load %arg3[%c1_166, %c0_167, %c0_168] : memref<7x8x4xf32, #tpu.memory_space<vmem>>, vector<1x8x4xf32>
    %469 = vector.shape_cast %468 : vector<1x8x4xf32> to vector<8x4xf32>
    %470 = arith.mulf %458, %469 : vector<8x4xf32>
    %471 = arith.addf %467, %470 : vector<8x4xf32>
    %c2 = arith.constant 2 : index
    %c0_169 = arith.constant 0 : index
    %c0_170 = arith.constant 0 : index
    %472 = vector.load %arg1[%c2, %c0_169, %c0_170] : memref<8x8x3xf32, #tpu.memory_space<vmem>>, vector<1x8x3xf32>
    %473 = vector.shape_cast %472 : vector<1x8x3xf32> to vector<8x3xf32>
    %cst_171 = arith.constant dense<0.000000e+00> : vector<8x3xf32>
    %474 = tpu.matmul %471, %316, %cst_171 {dimension_numbers = #tpu.dot_dimension_numbers<[1], [0], [0], [1], [0, 0, 1, 1], [], []>} : vector<8x4xf32>, vector<4x3xf32>, vector<8x3xf32> -> vector<8x3xf32>
    %475 = vector.broadcast %317 : vector<1x3xf32> to vector<8x3xf32>
    %476 = arith.addf %474, %475 : vector<8x3xf32>
    %477 = arith.subf %473, %476 : vector<8x3xf32>
    %478 = arith.mulf %477, %477 : vector<8x3xf32>
    %cst_172 = arith.constant dense<0.000000e+00> : vector<8xf32>
    %479 = vector.multi_reduction <add>, %478, %cst_172 [1] : vector<8x3xf32> to vector<8xf32>
    %480 = vector.shape_cast %479 : vector<8xf32> to vector<8x1xf32>
    %481 = arith.addf %404, %480 : vector<8x1xf32>
    %482 = vector.extract_strided_slice %293 {offsets = [24, 0], sizes = [8, 64], strides = [1, 1]} : vector<64x64xf32> to vector<8x64xf32>
    %cst_173 = arith.constant dense<0.000000e+00> : vector<8x64xf32>
    %483 = tpu.matmul %471, %307, %cst_173 {dimension_numbers = #tpu.dot_dimension_numbers<[1], [0], [0], [1], [0, 0, 1, 1], [], []>} : vector<8x4xf32>, vector<4x64xf32>, vector<8x64xf32> -> vector<8x64xf32>
    %484 = arith.addf %483, %482 : vector<8x64xf32>
    %cst_174 = arith.constant 0.000000e+00 : f32
    %485 = vector.broadcast %cst_174 : f32 to vector<8x64xf32>
    %486 = arith.maximumf %484, %485 : vector<8x64xf32>
    %487 = math.absf %484 : vector<8x64xf32>
    %cst_175 = arith.constant 0.000000e+00 : f32
    %488 = vector.broadcast %cst_175 : f32 to vector<8x64xf32>
    %489 = arith.subf %488, %487 : vector<8x64xf32>
    %490 = math.exp %489 : vector<8x64xf32>
    %cst_176 = arith.constant 1.000000e+00 : f32
    %491 = vector.broadcast %cst_176 : f32 to vector<8x64xf32>
    %492 = arith.addf %491, %490 : vector<8x64xf32>
    %493 = math.log %492 : vector<8x64xf32>
    %494 = arith.addf %486, %493 : vector<8x64xf32>
    %cst_177 = arith.constant dense<0.000000e+00> : vector<8x64xf32>
    %495 = tpu.matmul %494, %308, %cst_177 {dimension_numbers = #tpu.dot_dimension_numbers<[1], [0], [0], [1], [0, 0, 1, 1], [], []>} : vector<8x64xf32>, vector<64x64xf32>, vector<8x64xf32> -> vector<8x64xf32>
    %496 = vector.broadcast %309 : vector<1x64xf32> to vector<8x64xf32>
    %497 = arith.addf %495, %496 : vector<8x64xf32>
    %cst_178 = arith.constant 0.000000e+00 : f32
    %498 = vector.broadcast %cst_178 : f32 to vector<8x64xf32>
    %499 = arith.maximumf %497, %498 : vector<8x64xf32>
    %500 = math.absf %497 : vector<8x64xf32>
    %cst_179 = arith.constant 0.000000e+00 : f32
    %501 = vector.broadcast %cst_179 : f32 to vector<8x64xf32>
    %502 = arith.subf %501, %500 : vector<8x64xf32>
    %503 = math.exp %502 : vector<8x64xf32>
    %cst_180 = arith.constant 1.000000e+00 : f32
    %504 = vector.broadcast %cst_180 : f32 to vector<8x64xf32>
    %505 = arith.addf %504, %503 : vector<8x64xf32>
    %506 = math.log %505 : vector<8x64xf32>
    %507 = arith.addf %499, %506 : vector<8x64xf32>
    %cst_181 = arith.constant dense<0.000000e+00> : vector<8x8xf32>
    %508 = tpu.matmul %507, %310, %cst_181 {dimension_numbers = #tpu.dot_dimension_numbers<[1], [0], [0], [1], [0, 0, 1, 1], [], []>} : vector<8x64xf32>, vector<64x8xf32>, vector<8x8xf32> -> vector<8x8xf32>
    %509 = vector.broadcast %311 : vector<1x8xf32> to vector<8x8xf32>
    %510 = arith.addf %508, %509 : vector<8x8xf32>
    %511 = vector.extract_strided_slice %510 {offsets = [0, 0], sizes = [8, 4], strides = [1, 1]} : vector<8x8xf32> to vector<8x4xf32>
    %512 = vector.extract_strided_slice %510 {offsets = [0, 4], sizes = [8, 4], strides = [1, 1]} : vector<8x8xf32> to vector<8x4xf32>
    %cst_182 = arith.constant dense<0.000000e+00> : vector<8x128xf32>
    %513 = tpu.matmul %471, %312, %cst_182 {dimension_numbers = #tpu.dot_dimension_numbers<[1], [0], [0], [1], [0, 0, 1, 1], [], []>} : vector<8x4xf32>, vector<4x128xf32>, vector<8x128xf32> -> vector<8x128xf32>
    %514 = vector.broadcast %313 : vector<1x128xf32> to vector<8x128xf32>
    %515 = arith.addf %513, %514 : vector<8x128xf32>
    %cst_183 = arith.constant 0.000000e+00 : f32
    %516 = vector.broadcast %cst_183 : f32 to vector<8x128xf32>
    %517 = arith.maximumf %515, %516 : vector<8x128xf32>
    %518 = math.absf %515 : vector<8x128xf32>
    %cst_184 = arith.constant 0.000000e+00 : f32
    %519 = vector.broadcast %cst_184 : f32 to vector<8x128xf32>
    %520 = arith.subf %519, %518 : vector<8x128xf32>
    %521 = math.exp %520 : vector<8x128xf32>
    %cst_185 = arith.constant 1.000000e+00 : f32
    %522 = vector.broadcast %cst_185 : f32 to vector<8x128xf32>
    %523 = arith.addf %522, %521 : vector<8x128xf32>
    %524 = math.log %523 : vector<8x128xf32>
    %525 = arith.addf %517, %524 : vector<8x128xf32>
    %cst_186 = arith.constant dense<0.000000e+00> : vector<8x4xf32>
    %526 = tpu.matmul %525, %314, %cst_186 {dimension_numbers = #tpu.dot_dimension_numbers<[1], [0], [0], [1], [0, 0, 1, 1], [], []>} : vector<8x128xf32>, vector<128x4xf32>, vector<8x4xf32> -> vector<8x4xf32>
    %527 = vector.broadcast %315 : vector<1x4xf32> to vector<8x4xf32>
    %528 = arith.addf %526, %527 : vector<8x4xf32>
    %cst_187 = arith.constant 0.000000e+00 : f32
    %529 = vector.broadcast %cst_187 : f32 to vector<8x4xf32>
    %530 = arith.subf %529, %528 : vector<8x4xf32>
    %531 = math.exp %530 : vector<8x4xf32>
    %cst_188 = arith.constant 1.000000e+00 : f32
    %532 = vector.broadcast %cst_188 : f32 to vector<8x4xf32>
    %533 = arith.addf %532, %531 : vector<8x4xf32>
    %cst_189 = arith.constant 1.000000e+00 : f32
    %534 = vector.broadcast %cst_189 : f32 to vector<8x4xf32>
    %535 = arith.divf %534, %533 : vector<8x4xf32>
    %536 = arith.subf %511, %512 : vector<8x4xf32>
    %537 = arith.divf %536, %535 : vector<8x4xf32>
    %538 = arith.mulf %537, %537 : vector<8x4xf32>
    %cst_190 = arith.constant dense<0.000000e+00> : vector<8xf32>
    %539 = vector.multi_reduction <add>, %538, %cst_190 [1] : vector<8x4xf32> to vector<8xf32>
    %540 = vector.shape_cast %539 : vector<8xf32> to vector<8x1xf32>
    %541 = arith.addf %464, %540 : vector<8x1xf32>
    %542 = vector.broadcast %0 : f32 to vector<8x4xf32>
    %543 = arith.mulf %511, %542 : vector<8x4xf32>
    %544 = arith.addf %471, %543 : vector<8x4xf32>
    %c2_191 = arith.constant 2 : index
    %c0_192 = arith.constant 0 : index
    %c0_193 = arith.constant 0 : index
    %545 = vector.load %arg3[%c2_191, %c0_192, %c0_193] : memref<7x8x4xf32, #tpu.memory_space<vmem>>, vector<1x8x4xf32>
    %546 = vector.shape_cast %545 : vector<1x8x4xf32> to vector<8x4xf32>
    %547 = arith.mulf %535, %546 : vector<8x4xf32>
    %548 = arith.addf %544, %547 : vector<8x4xf32>
    %c3 = arith.constant 3 : index
    %c0_194 = arith.constant 0 : index
    %c0_195 = arith.constant 0 : index
    %549 = vector.load %arg1[%c3, %c0_194, %c0_195] : memref<8x8x3xf32, #tpu.memory_space<vmem>>, vector<1x8x3xf32>
    %550 = vector.shape_cast %549 : vector<1x8x3xf32> to vector<8x3xf32>
    %cst_196 = arith.constant dense<0.000000e+00> : vector<8x3xf32>
    %551 = tpu.matmul %548, %316, %cst_196 {dimension_numbers = #tpu.dot_dimension_numbers<[1], [0], [0], [1], [0, 0, 1, 1], [], []>} : vector<8x4xf32>, vector<4x3xf32>, vector<8x3xf32> -> vector<8x3xf32>
    %552 = vector.broadcast %317 : vector<1x3xf32> to vector<8x3xf32>
    %553 = arith.addf %551, %552 : vector<8x3xf32>
    %554 = arith.subf %550, %553 : vector<8x3xf32>
    %555 = arith.mulf %554, %554 : vector<8x3xf32>
    %cst_197 = arith.constant dense<0.000000e+00> : vector<8xf32>
    %556 = vector.multi_reduction <add>, %555, %cst_197 [1] : vector<8x3xf32> to vector<8xf32>
    %557 = vector.shape_cast %556 : vector<8xf32> to vector<8x1xf32>
    %558 = arith.addf %481, %557 : vector<8x1xf32>
    %559 = vector.extract_strided_slice %293 {offsets = [32, 0], sizes = [8, 64], strides = [1, 1]} : vector<64x64xf32> to vector<8x64xf32>
    %cst_198 = arith.constant dense<0.000000e+00> : vector<8x64xf32>
    %560 = tpu.matmul %548, %307, %cst_198 {dimension_numbers = #tpu.dot_dimension_numbers<[1], [0], [0], [1], [0, 0, 1, 1], [], []>} : vector<8x4xf32>, vector<4x64xf32>, vector<8x64xf32> -> vector<8x64xf32>
    %561 = arith.addf %560, %559 : vector<8x64xf32>
    %cst_199 = arith.constant 0.000000e+00 : f32
    %562 = vector.broadcast %cst_199 : f32 to vector<8x64xf32>
    %563 = arith.maximumf %561, %562 : vector<8x64xf32>
    %564 = math.absf %561 : vector<8x64xf32>
    %cst_200 = arith.constant 0.000000e+00 : f32
    %565 = vector.broadcast %cst_200 : f32 to vector<8x64xf32>
    %566 = arith.subf %565, %564 : vector<8x64xf32>
    %567 = math.exp %566 : vector<8x64xf32>
    %cst_201 = arith.constant 1.000000e+00 : f32
    %568 = vector.broadcast %cst_201 : f32 to vector<8x64xf32>
    %569 = arith.addf %568, %567 : vector<8x64xf32>
    %570 = math.log %569 : vector<8x64xf32>
    %571 = arith.addf %563, %570 : vector<8x64xf32>
    %cst_202 = arith.constant dense<0.000000e+00> : vector<8x64xf32>
    %572 = tpu.matmul %571, %308, %cst_202 {dimension_numbers = #tpu.dot_dimension_numbers<[1], [0], [0], [1], [0, 0, 1, 1], [], []>} : vector<8x64xf32>, vector<64x64xf32>, vector<8x64xf32> -> vector<8x64xf32>
    %573 = vector.broadcast %309 : vector<1x64xf32> to vector<8x64xf32>
    %574 = arith.addf %572, %573 : vector<8x64xf32>
    %cst_203 = arith.constant 0.000000e+00 : f32
    %575 = vector.broadcast %cst_203 : f32 to vector<8x64xf32>
    %576 = arith.maximumf %574, %575 : vector<8x64xf32>
    %577 = math.absf %574 : vector<8x64xf32>
    %cst_204 = arith.constant 0.000000e+00 : f32
    %578 = vector.broadcast %cst_204 : f32 to vector<8x64xf32>
    %579 = arith.subf %578, %577 : vector<8x64xf32>
    %580 = math.exp %579 : vector<8x64xf32>
    %cst_205 = arith.constant 1.000000e+00 : f32
    %581 = vector.broadcast %cst_205 : f32 to vector<8x64xf32>
    %582 = arith.addf %581, %580 : vector<8x64xf32>
    %583 = math.log %582 : vector<8x64xf32>
    %584 = arith.addf %576, %583 : vector<8x64xf32>
    %cst_206 = arith.constant dense<0.000000e+00> : vector<8x8xf32>
    %585 = tpu.matmul %584, %310, %cst_206 {dimension_numbers = #tpu.dot_dimension_numbers<[1], [0], [0], [1], [0, 0, 1, 1], [], []>} : vector<8x64xf32>, vector<64x8xf32>, vector<8x8xf32> -> vector<8x8xf32>
    %586 = vector.broadcast %311 : vector<1x8xf32> to vector<8x8xf32>
    %587 = arith.addf %585, %586 : vector<8x8xf32>
    %588 = vector.extract_strided_slice %587 {offsets = [0, 0], sizes = [8, 4], strides = [1, 1]} : vector<8x8xf32> to vector<8x4xf32>
    %589 = vector.extract_strided_slice %587 {offsets = [0, 4], sizes = [8, 4], strides = [1, 1]} : vector<8x8xf32> to vector<8x4xf32>
    %cst_207 = arith.constant dense<0.000000e+00> : vector<8x128xf32>
    %590 = tpu.matmul %548, %312, %cst_207 {dimension_numbers = #tpu.dot_dimension_numbers<[1], [0], [0], [1], [0, 0, 1, 1], [], []>} : vector<8x4xf32>, vector<4x128xf32>, vector<8x128xf32> -> vector<8x128xf32>
    %591 = vector.broadcast %313 : vector<1x128xf32> to vector<8x128xf32>
    %592 = arith.addf %590, %591 : vector<8x128xf32>
    %cst_208 = arith.constant 0.000000e+00 : f32
    %593 = vector.broadcast %cst_208 : f32 to vector<8x128xf32>
    %594 = arith.maximumf %592, %593 : vector<8x128xf32>
    %595 = math.absf %592 : vector<8x128xf32>
    %cst_209 = arith.constant 0.000000e+00 : f32
    %596 = vector.broadcast %cst_209 : f32 to vector<8x128xf32>
    %597 = arith.subf %596, %595 : vector<8x128xf32>
    %598 = math.exp %597 : vector<8x128xf32>
    %cst_210 = arith.constant 1.000000e+00 : f32
    %599 = vector.broadcast %cst_210 : f32 to vector<8x128xf32>
    %600 = arith.addf %599, %598 : vector<8x128xf32>
    %601 = math.log %600 : vector<8x128xf32>
    %602 = arith.addf %594, %601 : vector<8x128xf32>
    %cst_211 = arith.constant dense<0.000000e+00> : vector<8x4xf32>
    %603 = tpu.matmul %602, %314, %cst_211 {dimension_numbers = #tpu.dot_dimension_numbers<[1], [0], [0], [1], [0, 0, 1, 1], [], []>} : vector<8x128xf32>, vector<128x4xf32>, vector<8x4xf32> -> vector<8x4xf32>
    %604 = vector.broadcast %315 : vector<1x4xf32> to vector<8x4xf32>
    %605 = arith.addf %603, %604 : vector<8x4xf32>
    %cst_212 = arith.constant 0.000000e+00 : f32
    %606 = vector.broadcast %cst_212 : f32 to vector<8x4xf32>
    %607 = arith.subf %606, %605 : vector<8x4xf32>
    %608 = math.exp %607 : vector<8x4xf32>
    %cst_213 = arith.constant 1.000000e+00 : f32
    %609 = vector.broadcast %cst_213 : f32 to vector<8x4xf32>
    %610 = arith.addf %609, %608 : vector<8x4xf32>
    %cst_214 = arith.constant 1.000000e+00 : f32
    %611 = vector.broadcast %cst_214 : f32 to vector<8x4xf32>
    %612 = arith.divf %611, %610 : vector<8x4xf32>
    %613 = arith.subf %588, %589 : vector<8x4xf32>
    %614 = arith.divf %613, %612 : vector<8x4xf32>
    %615 = arith.mulf %614, %614 : vector<8x4xf32>
    %cst_215 = arith.constant dense<0.000000e+00> : vector<8xf32>
    %616 = vector.multi_reduction <add>, %615, %cst_215 [1] : vector<8x4xf32> to vector<8xf32>
    %617 = vector.shape_cast %616 : vector<8xf32> to vector<8x1xf32>
    %618 = arith.addf %541, %617 : vector<8x1xf32>
    %619 = vector.broadcast %0 : f32 to vector<8x4xf32>
    %620 = arith.mulf %588, %619 : vector<8x4xf32>
    %621 = arith.addf %548, %620 : vector<8x4xf32>
    %c3_216 = arith.constant 3 : index
    %c0_217 = arith.constant 0 : index
    %c0_218 = arith.constant 0 : index
    %622 = vector.load %arg3[%c3_216, %c0_217, %c0_218] : memref<7x8x4xf32, #tpu.memory_space<vmem>>, vector<1x8x4xf32>
    %623 = vector.shape_cast %622 : vector<1x8x4xf32> to vector<8x4xf32>
    %624 = arith.mulf %612, %623 : vector<8x4xf32>
    %625 = arith.addf %621, %624 : vector<8x4xf32>
    %c4 = arith.constant 4 : index
    %c0_219 = arith.constant 0 : index
    %c0_220 = arith.constant 0 : index
    %626 = vector.load %arg1[%c4, %c0_219, %c0_220] : memref<8x8x3xf32, #tpu.memory_space<vmem>>, vector<1x8x3xf32>
    %627 = vector.shape_cast %626 : vector<1x8x3xf32> to vector<8x3xf32>
    %cst_221 = arith.constant dense<0.000000e+00> : vector<8x3xf32>
    %628 = tpu.matmul %625, %316, %cst_221 {dimension_numbers = #tpu.dot_dimension_numbers<[1], [0], [0], [1], [0, 0, 1, 1], [], []>} : vector<8x4xf32>, vector<4x3xf32>, vector<8x3xf32> -> vector<8x3xf32>
    %629 = vector.broadcast %317 : vector<1x3xf32> to vector<8x3xf32>
    %630 = arith.addf %628, %629 : vector<8x3xf32>
    %631 = arith.subf %627, %630 : vector<8x3xf32>
    %632 = arith.mulf %631, %631 : vector<8x3xf32>
    %cst_222 = arith.constant dense<0.000000e+00> : vector<8xf32>
    %633 = vector.multi_reduction <add>, %632, %cst_222 [1] : vector<8x3xf32> to vector<8xf32>
    %634 = vector.shape_cast %633 : vector<8xf32> to vector<8x1xf32>
    %635 = arith.addf %558, %634 : vector<8x1xf32>
    %636 = vector.extract_strided_slice %293 {offsets = [40, 0], sizes = [8, 64], strides = [1, 1]} : vector<64x64xf32> to vector<8x64xf32>
    %cst_223 = arith.constant dense<0.000000e+00> : vector<8x64xf32>
    %637 = tpu.matmul %625, %307, %cst_223 {dimension_numbers = #tpu.dot_dimension_numbers<[1], [0], [0], [1], [0, 0, 1, 1], [], []>} : vector<8x4xf32>, vector<4x64xf32>, vector<8x64xf32> -> vector<8x64xf32>
    %638 = arith.addf %637, %636 : vector<8x64xf32>
    %cst_224 = arith.constant 0.000000e+00 : f32
    %639 = vector.broadcast %cst_224 : f32 to vector<8x64xf32>
    %640 = arith.maximumf %638, %639 : vector<8x64xf32>
    %641 = math.absf %638 : vector<8x64xf32>
    %cst_225 = arith.constant 0.000000e+00 : f32
    %642 = vector.broadcast %cst_225 : f32 to vector<8x64xf32>
    %643 = arith.subf %642, %641 : vector<8x64xf32>
    %644 = math.exp %643 : vector<8x64xf32>
    %cst_226 = arith.constant 1.000000e+00 : f32
    %645 = vector.broadcast %cst_226 : f32 to vector<8x64xf32>
    %646 = arith.addf %645, %644 : vector<8x64xf32>
    %647 = math.log %646 : vector<8x64xf32>
    %648 = arith.addf %640, %647 : vector<8x64xf32>
    %cst_227 = arith.constant dense<0.000000e+00> : vector<8x64xf32>
    %649 = tpu.matmul %648, %308, %cst_227 {dimension_numbers = #tpu.dot_dimension_numbers<[1], [0], [0], [1], [0, 0, 1, 1], [], []>} : vector<8x64xf32>, vector<64x64xf32>, vector<8x64xf32> -> vector<8x64xf32>
    %650 = vector.broadcast %309 : vector<1x64xf32> to vector<8x64xf32>
    %651 = arith.addf %649, %650 : vector<8x64xf32>
    %cst_228 = arith.constant 0.000000e+00 : f32
    %652 = vector.broadcast %cst_228 : f32 to vector<8x64xf32>
    %653 = arith.maximumf %651, %652 : vector<8x64xf32>
    %654 = math.absf %651 : vector<8x64xf32>
    %cst_229 = arith.constant 0.000000e+00 : f32
    %655 = vector.broadcast %cst_229 : f32 to vector<8x64xf32>
    %656 = arith.subf %655, %654 : vector<8x64xf32>
    %657 = math.exp %656 : vector<8x64xf32>
    %cst_230 = arith.constant 1.000000e+00 : f32
    %658 = vector.broadcast %cst_230 : f32 to vector<8x64xf32>
    %659 = arith.addf %658, %657 : vector<8x64xf32>
    %660 = math.log %659 : vector<8x64xf32>
    %661 = arith.addf %653, %660 : vector<8x64xf32>
    %cst_231 = arith.constant dense<0.000000e+00> : vector<8x8xf32>
    %662 = tpu.matmul %661, %310, %cst_231 {dimension_numbers = #tpu.dot_dimension_numbers<[1], [0], [0], [1], [0, 0, 1, 1], [], []>} : vector<8x64xf32>, vector<64x8xf32>, vector<8x8xf32> -> vector<8x8xf32>
    %663 = vector.broadcast %311 : vector<1x8xf32> to vector<8x8xf32>
    %664 = arith.addf %662, %663 : vector<8x8xf32>
    %665 = vector.extract_strided_slice %664 {offsets = [0, 0], sizes = [8, 4], strides = [1, 1]} : vector<8x8xf32> to vector<8x4xf32>
    %666 = vector.extract_strided_slice %664 {offsets = [0, 4], sizes = [8, 4], strides = [1, 1]} : vector<8x8xf32> to vector<8x4xf32>
    %cst_232 = arith.constant dense<0.000000e+00> : vector<8x128xf32>
    %667 = tpu.matmul %625, %312, %cst_232 {dimension_numbers = #tpu.dot_dimension_numbers<[1], [0], [0], [1], [0, 0, 1, 1], [], []>} : vector<8x4xf32>, vector<4x128xf32>, vector<8x128xf32> -> vector<8x128xf32>
    %668 = vector.broadcast %313 : vector<1x128xf32> to vector<8x128xf32>
    %669 = arith.addf %667, %668 : vector<8x128xf32>
    %cst_233 = arith.constant 0.000000e+00 : f32
    %670 = vector.broadcast %cst_233 : f32 to vector<8x128xf32>
    %671 = arith.maximumf %669, %670 : vector<8x128xf32>
    %672 = math.absf %669 : vector<8x128xf32>
    %cst_234 = arith.constant 0.000000e+00 : f32
    %673 = vector.broadcast %cst_234 : f32 to vector<8x128xf32>
    %674 = arith.subf %673, %672 : vector<8x128xf32>
    %675 = math.exp %674 : vector<8x128xf32>
    %cst_235 = arith.constant 1.000000e+00 : f32
    %676 = vector.broadcast %cst_235 : f32 to vector<8x128xf32>
    %677 = arith.addf %676, %675 : vector<8x128xf32>
    %678 = math.log %677 : vector<8x128xf32>
    %679 = arith.addf %671, %678 : vector<8x128xf32>
    %cst_236 = arith.constant dense<0.000000e+00> : vector<8x4xf32>
    %680 = tpu.matmul %679, %314, %cst_236 {dimension_numbers = #tpu.dot_dimension_numbers<[1], [0], [0], [1], [0, 0, 1, 1], [], []>} : vector<8x128xf32>, vector<128x4xf32>, vector<8x4xf32> -> vector<8x4xf32>
    %681 = vector.broadcast %315 : vector<1x4xf32> to vector<8x4xf32>
    %682 = arith.addf %680, %681 : vector<8x4xf32>
    %cst_237 = arith.constant 0.000000e+00 : f32
    %683 = vector.broadcast %cst_237 : f32 to vector<8x4xf32>
    %684 = arith.subf %683, %682 : vector<8x4xf32>
    %685 = math.exp %684 : vector<8x4xf32>
    %cst_238 = arith.constant 1.000000e+00 : f32
    %686 = vector.broadcast %cst_238 : f32 to vector<8x4xf32>
    %687 = arith.addf %686, %685 : vector<8x4xf32>
    %cst_239 = arith.constant 1.000000e+00 : f32
    %688 = vector.broadcast %cst_239 : f32 to vector<8x4xf32>
    %689 = arith.divf %688, %687 : vector<8x4xf32>
    %690 = arith.subf %665, %666 : vector<8x4xf32>
    %691 = arith.divf %690, %689 : vector<8x4xf32>
    %692 = arith.mulf %691, %691 : vector<8x4xf32>
    %cst_240 = arith.constant dense<0.000000e+00> : vector<8xf32>
    %693 = vector.multi_reduction <add>, %692, %cst_240 [1] : vector<8x4xf32> to vector<8xf32>
    %694 = vector.shape_cast %693 : vector<8xf32> to vector<8x1xf32>
    %695 = arith.addf %618, %694 : vector<8x1xf32>
    %696 = vector.broadcast %0 : f32 to vector<8x4xf32>
    %697 = arith.mulf %665, %696 : vector<8x4xf32>
    %698 = arith.addf %625, %697 : vector<8x4xf32>
    %c4_241 = arith.constant 4 : index
    %c0_242 = arith.constant 0 : index
    %c0_243 = arith.constant 0 : index
    %699 = vector.load %arg3[%c4_241, %c0_242, %c0_243] : memref<7x8x4xf32, #tpu.memory_space<vmem>>, vector<1x8x4xf32>
    %700 = vector.shape_cast %699 : vector<1x8x4xf32> to vector<8x4xf32>
    %701 = arith.mulf %689, %700 : vector<8x4xf32>
    %702 = arith.addf %698, %701 : vector<8x4xf32>
    %c5 = arith.constant 5 : index
    %c0_244 = arith.constant 0 : index
    %c0_245 = arith.constant 0 : index
    %703 = vector.load %arg1[%c5, %c0_244, %c0_245] : memref<8x8x3xf32, #tpu.memory_space<vmem>>, vector<1x8x3xf32>
    %704 = vector.shape_cast %703 : vector<1x8x3xf32> to vector<8x3xf32>
    %cst_246 = arith.constant dense<0.000000e+00> : vector<8x3xf32>
    %705 = tpu.matmul %702, %316, %cst_246 {dimension_numbers = #tpu.dot_dimension_numbers<[1], [0], [0], [1], [0, 0, 1, 1], [], []>} : vector<8x4xf32>, vector<4x3xf32>, vector<8x3xf32> -> vector<8x3xf32>
    %706 = vector.broadcast %317 : vector<1x3xf32> to vector<8x3xf32>
    %707 = arith.addf %705, %706 : vector<8x3xf32>
    %708 = arith.subf %704, %707 : vector<8x3xf32>
    %709 = arith.mulf %708, %708 : vector<8x3xf32>
    %cst_247 = arith.constant dense<0.000000e+00> : vector<8xf32>
    %710 = vector.multi_reduction <add>, %709, %cst_247 [1] : vector<8x3xf32> to vector<8xf32>
    %711 = vector.shape_cast %710 : vector<8xf32> to vector<8x1xf32>
    %712 = arith.addf %635, %711 : vector<8x1xf32>
    %713 = vector.extract_strided_slice %293 {offsets = [48, 0], sizes = [8, 64], strides = [1, 1]} : vector<64x64xf32> to vector<8x64xf32>
    %cst_248 = arith.constant dense<0.000000e+00> : vector<8x64xf32>
    %714 = tpu.matmul %702, %307, %cst_248 {dimension_numbers = #tpu.dot_dimension_numbers<[1], [0], [0], [1], [0, 0, 1, 1], [], []>} : vector<8x4xf32>, vector<4x64xf32>, vector<8x64xf32> -> vector<8x64xf32>
    %715 = arith.addf %714, %713 : vector<8x64xf32>
    %cst_249 = arith.constant 0.000000e+00 : f32
    %716 = vector.broadcast %cst_249 : f32 to vector<8x64xf32>
    %717 = arith.maximumf %715, %716 : vector<8x64xf32>
    %718 = math.absf %715 : vector<8x64xf32>
    %cst_250 = arith.constant 0.000000e+00 : f32
    %719 = vector.broadcast %cst_250 : f32 to vector<8x64xf32>
    %720 = arith.subf %719, %718 : vector<8x64xf32>
    %721 = math.exp %720 : vector<8x64xf32>
    %cst_251 = arith.constant 1.000000e+00 : f32
    %722 = vector.broadcast %cst_251 : f32 to vector<8x64xf32>
    %723 = arith.addf %722, %721 : vector<8x64xf32>
    %724 = math.log %723 : vector<8x64xf32>
    %725 = arith.addf %717, %724 : vector<8x64xf32>
    %cst_252 = arith.constant dense<0.000000e+00> : vector<8x64xf32>
    %726 = tpu.matmul %725, %308, %cst_252 {dimension_numbers = #tpu.dot_dimension_numbers<[1], [0], [0], [1], [0, 0, 1, 1], [], []>} : vector<8x64xf32>, vector<64x64xf32>, vector<8x64xf32> -> vector<8x64xf32>
    %727 = vector.broadcast %309 : vector<1x64xf32> to vector<8x64xf32>
    %728 = arith.addf %726, %727 : vector<8x64xf32>
    %cst_253 = arith.constant 0.000000e+00 : f32
    %729 = vector.broadcast %cst_253 : f32 to vector<8x64xf32>
    %730 = arith.maximumf %728, %729 : vector<8x64xf32>
    %731 = math.absf %728 : vector<8x64xf32>
    %cst_254 = arith.constant 0.000000e+00 : f32
    %732 = vector.broadcast %cst_254 : f32 to vector<8x64xf32>
    %733 = arith.subf %732, %731 : vector<8x64xf32>
    %734 = math.exp %733 : vector<8x64xf32>
    %cst_255 = arith.constant 1.000000e+00 : f32
    %735 = vector.broadcast %cst_255 : f32 to vector<8x64xf32>
    %736 = arith.addf %735, %734 : vector<8x64xf32>
    %737 = math.log %736 : vector<8x64xf32>
    %738 = arith.addf %730, %737 : vector<8x64xf32>
    %cst_256 = arith.constant dense<0.000000e+00> : vector<8x8xf32>
    %739 = tpu.matmul %738, %310, %cst_256 {dimension_numbers = #tpu.dot_dimension_numbers<[1], [0], [0], [1], [0, 0, 1, 1], [], []>} : vector<8x64xf32>, vector<64x8xf32>, vector<8x8xf32> -> vector<8x8xf32>
    %740 = vector.broadcast %311 : vector<1x8xf32> to vector<8x8xf32>
    %741 = arith.addf %739, %740 : vector<8x8xf32>
    %742 = vector.extract_strided_slice %741 {offsets = [0, 0], sizes = [8, 4], strides = [1, 1]} : vector<8x8xf32> to vector<8x4xf32>
    %743 = vector.extract_strided_slice %741 {offsets = [0, 4], sizes = [8, 4], strides = [1, 1]} : vector<8x8xf32> to vector<8x4xf32>
    %cst_257 = arith.constant dense<0.000000e+00> : vector<8x128xf32>
    %744 = tpu.matmul %702, %312, %cst_257 {dimension_numbers = #tpu.dot_dimension_numbers<[1], [0], [0], [1], [0, 0, 1, 1], [], []>} : vector<8x4xf32>, vector<4x128xf32>, vector<8x128xf32> -> vector<8x128xf32>
    %745 = vector.broadcast %313 : vector<1x128xf32> to vector<8x128xf32>
    %746 = arith.addf %744, %745 : vector<8x128xf32>
    %cst_258 = arith.constant 0.000000e+00 : f32
    %747 = vector.broadcast %cst_258 : f32 to vector<8x128xf32>
    %748 = arith.maximumf %746, %747 : vector<8x128xf32>
    %749 = math.absf %746 : vector<8x128xf32>
    %cst_259 = arith.constant 0.000000e+00 : f32
    %750 = vector.broadcast %cst_259 : f32 to vector<8x128xf32>
    %751 = arith.subf %750, %749 : vector<8x128xf32>
    %752 = math.exp %751 : vector<8x128xf32>
    %cst_260 = arith.constant 1.000000e+00 : f32
    %753 = vector.broadcast %cst_260 : f32 to vector<8x128xf32>
    %754 = arith.addf %753, %752 : vector<8x128xf32>
    %755 = math.log %754 : vector<8x128xf32>
    %756 = arith.addf %748, %755 : vector<8x128xf32>
    %cst_261 = arith.constant dense<0.000000e+00> : vector<8x4xf32>
    %757 = tpu.matmul %756, %314, %cst_261 {dimension_numbers = #tpu.dot_dimension_numbers<[1], [0], [0], [1], [0, 0, 1, 1], [], []>} : vector<8x128xf32>, vector<128x4xf32>, vector<8x4xf32> -> vector<8x4xf32>
    %758 = vector.broadcast %315 : vector<1x4xf32> to vector<8x4xf32>
    %759 = arith.addf %757, %758 : vector<8x4xf32>
    %cst_262 = arith.constant 0.000000e+00 : f32
    %760 = vector.broadcast %cst_262 : f32 to vector<8x4xf32>
    %761 = arith.subf %760, %759 : vector<8x4xf32>
    %762 = math.exp %761 : vector<8x4xf32>
    %cst_263 = arith.constant 1.000000e+00 : f32
    %763 = vector.broadcast %cst_263 : f32 to vector<8x4xf32>
    %764 = arith.addf %763, %762 : vector<8x4xf32>
    %cst_264 = arith.constant 1.000000e+00 : f32
    %765 = vector.broadcast %cst_264 : f32 to vector<8x4xf32>
    %766 = arith.divf %765, %764 : vector<8x4xf32>
    %767 = arith.subf %742, %743 : vector<8x4xf32>
    %768 = arith.divf %767, %766 : vector<8x4xf32>
    %769 = arith.mulf %768, %768 : vector<8x4xf32>
    %cst_265 = arith.constant dense<0.000000e+00> : vector<8xf32>
    %770 = vector.multi_reduction <add>, %769, %cst_265 [1] : vector<8x4xf32> to vector<8xf32>
    %771 = vector.shape_cast %770 : vector<8xf32> to vector<8x1xf32>
    %772 = arith.addf %695, %771 : vector<8x1xf32>
    %773 = vector.broadcast %0 : f32 to vector<8x4xf32>
    %774 = arith.mulf %742, %773 : vector<8x4xf32>
    %775 = arith.addf %702, %774 : vector<8x4xf32>
    %c5_266 = arith.constant 5 : index
    %c0_267 = arith.constant 0 : index
    %c0_268 = arith.constant 0 : index
    %776 = vector.load %arg3[%c5_266, %c0_267, %c0_268] : memref<7x8x4xf32, #tpu.memory_space<vmem>>, vector<1x8x4xf32>
    %777 = vector.shape_cast %776 : vector<1x8x4xf32> to vector<8x4xf32>
    %778 = arith.mulf %766, %777 : vector<8x4xf32>
    %779 = arith.addf %775, %778 : vector<8x4xf32>
    %c6 = arith.constant 6 : index
    %c0_269 = arith.constant 0 : index
    %c0_270 = arith.constant 0 : index
    %780 = vector.load %arg1[%c6, %c0_269, %c0_270] : memref<8x8x3xf32, #tpu.memory_space<vmem>>, vector<1x8x3xf32>
    %781 = vector.shape_cast %780 : vector<1x8x3xf32> to vector<8x3xf32>
    %cst_271 = arith.constant dense<0.000000e+00> : vector<8x3xf32>
    %782 = tpu.matmul %779, %316, %cst_271 {dimension_numbers = #tpu.dot_dimension_numbers<[1], [0], [0], [1], [0, 0, 1, 1], [], []>} : vector<8x4xf32>, vector<4x3xf32>, vector<8x3xf32> -> vector<8x3xf32>
    %783 = vector.broadcast %317 : vector<1x3xf32> to vector<8x3xf32>
    %784 = arith.addf %782, %783 : vector<8x3xf32>
    %785 = arith.subf %781, %784 : vector<8x3xf32>
    %786 = arith.mulf %785, %785 : vector<8x3xf32>
    %cst_272 = arith.constant dense<0.000000e+00> : vector<8xf32>
    %787 = vector.multi_reduction <add>, %786, %cst_272 [1] : vector<8x3xf32> to vector<8xf32>
    %788 = vector.shape_cast %787 : vector<8xf32> to vector<8x1xf32>
    %789 = arith.addf %712, %788 : vector<8x1xf32>
    %790 = vector.extract_strided_slice %293 {offsets = [56, 0], sizes = [8, 64], strides = [1, 1]} : vector<64x64xf32> to vector<8x64xf32>
    %cst_273 = arith.constant dense<0.000000e+00> : vector<8x64xf32>
    %791 = tpu.matmul %779, %307, %cst_273 {dimension_numbers = #tpu.dot_dimension_numbers<[1], [0], [0], [1], [0, 0, 1, 1], [], []>} : vector<8x4xf32>, vector<4x64xf32>, vector<8x64xf32> -> vector<8x64xf32>
    %792 = arith.addf %791, %790 : vector<8x64xf32>
    %cst_274 = arith.constant 0.000000e+00 : f32
    %793 = vector.broadcast %cst_274 : f32 to vector<8x64xf32>
    %794 = arith.maximumf %792, %793 : vector<8x64xf32>
    %795 = math.absf %792 : vector<8x64xf32>
    %cst_275 = arith.constant 0.000000e+00 : f32
    %796 = vector.broadcast %cst_275 : f32 to vector<8x64xf32>
    %797 = arith.subf %796, %795 : vector<8x64xf32>
    %798 = math.exp %797 : vector<8x64xf32>
    %cst_276 = arith.constant 1.000000e+00 : f32
    %799 = vector.broadcast %cst_276 : f32 to vector<8x64xf32>
    %800 = arith.addf %799, %798 : vector<8x64xf32>
    %801 = math.log %800 : vector<8x64xf32>
    %802 = arith.addf %794, %801 : vector<8x64xf32>
    %cst_277 = arith.constant dense<0.000000e+00> : vector<8x64xf32>
    %803 = tpu.matmul %802, %308, %cst_277 {dimension_numbers = #tpu.dot_dimension_numbers<[1], [0], [0], [1], [0, 0, 1, 1], [], []>} : vector<8x64xf32>, vector<64x64xf32>, vector<8x64xf32> -> vector<8x64xf32>
    %804 = vector.broadcast %309 : vector<1x64xf32> to vector<8x64xf32>
    %805 = arith.addf %803, %804 : vector<8x64xf32>
    %cst_278 = arith.constant 0.000000e+00 : f32
    %806 = vector.broadcast %cst_278 : f32 to vector<8x64xf32>
    %807 = arith.maximumf %805, %806 : vector<8x64xf32>
    %808 = math.absf %805 : vector<8x64xf32>
    %cst_279 = arith.constant 0.000000e+00 : f32
    %809 = vector.broadcast %cst_279 : f32 to vector<8x64xf32>
    %810 = arith.subf %809, %808 : vector<8x64xf32>
    %811 = math.exp %810 : vector<8x64xf32>
    %cst_280 = arith.constant 1.000000e+00 : f32
    %812 = vector.broadcast %cst_280 : f32 to vector<8x64xf32>
    %813 = arith.addf %812, %811 : vector<8x64xf32>
    %814 = math.log %813 : vector<8x64xf32>
    %815 = arith.addf %807, %814 : vector<8x64xf32>
    %cst_281 = arith.constant dense<0.000000e+00> : vector<8x8xf32>
    %816 = tpu.matmul %815, %310, %cst_281 {dimension_numbers = #tpu.dot_dimension_numbers<[1], [0], [0], [1], [0, 0, 1, 1], [], []>} : vector<8x64xf32>, vector<64x8xf32>, vector<8x8xf32> -> vector<8x8xf32>
    %817 = vector.broadcast %311 : vector<1x8xf32> to vector<8x8xf32>
    %818 = arith.addf %816, %817 : vector<8x8xf32>
    %819 = vector.extract_strided_slice %818 {offsets = [0, 0], sizes = [8, 4], strides = [1, 1]} : vector<8x8xf32> to vector<8x4xf32>
    %820 = vector.extract_strided_slice %818 {offsets = [0, 4], sizes = [8, 4], strides = [1, 1]} : vector<8x8xf32> to vector<8x4xf32>
    %cst_282 = arith.constant dense<0.000000e+00> : vector<8x128xf32>
    %821 = tpu.matmul %779, %312, %cst_282 {dimension_numbers = #tpu.dot_dimension_numbers<[1], [0], [0], [1], [0, 0, 1, 1], [], []>} : vector<8x4xf32>, vector<4x128xf32>, vector<8x128xf32> -> vector<8x128xf32>
    %822 = vector.broadcast %313 : vector<1x128xf32> to vector<8x128xf32>
    %823 = arith.addf %821, %822 : vector<8x128xf32>
    %cst_283 = arith.constant 0.000000e+00 : f32
    %824 = vector.broadcast %cst_283 : f32 to vector<8x128xf32>
    %825 = arith.maximumf %823, %824 : vector<8x128xf32>
    %826 = math.absf %823 : vector<8x128xf32>
    %cst_284 = arith.constant 0.000000e+00 : f32
    %827 = vector.broadcast %cst_284 : f32 to vector<8x128xf32>
    %828 = arith.subf %827, %826 : vector<8x128xf32>
    %829 = math.exp %828 : vector<8x128xf32>
    %cst_285 = arith.constant 1.000000e+00 : f32
    %830 = vector.broadcast %cst_285 : f32 to vector<8x128xf32>
    %831 = arith.addf %830, %829 : vector<8x128xf32>
    %832 = math.log %831 : vector<8x128xf32>
    %833 = arith.addf %825, %832 : vector<8x128xf32>
    %cst_286 = arith.constant dense<0.000000e+00> : vector<8x4xf32>
    %834 = tpu.matmul %833, %314, %cst_286 {dimension_numbers = #tpu.dot_dimension_numbers<[1], [0], [0], [1], [0, 0, 1, 1], [], []>} : vector<8x128xf32>, vector<128x4xf32>, vector<8x4xf32> -> vector<8x4xf32>
    %835 = vector.broadcast %315 : vector<1x4xf32> to vector<8x4xf32>
    %836 = arith.addf %834, %835 : vector<8x4xf32>
    %cst_287 = arith.constant 0.000000e+00 : f32
    %837 = vector.broadcast %cst_287 : f32 to vector<8x4xf32>
    %838 = arith.subf %837, %836 : vector<8x4xf32>
    %839 = math.exp %838 : vector<8x4xf32>
    %cst_288 = arith.constant 1.000000e+00 : f32
    %840 = vector.broadcast %cst_288 : f32 to vector<8x4xf32>
    %841 = arith.addf %840, %839 : vector<8x4xf32>
    %cst_289 = arith.constant 1.000000e+00 : f32
    %842 = vector.broadcast %cst_289 : f32 to vector<8x4xf32>
    %843 = arith.divf %842, %841 : vector<8x4xf32>
    %844 = arith.subf %819, %820 : vector<8x4xf32>
    %845 = arith.divf %844, %843 : vector<8x4xf32>
    %846 = arith.mulf %845, %845 : vector<8x4xf32>
    %cst_290 = arith.constant dense<0.000000e+00> : vector<8xf32>
    %847 = vector.multi_reduction <add>, %846, %cst_290 [1] : vector<8x4xf32> to vector<8xf32>
    %848 = vector.shape_cast %847 : vector<8xf32> to vector<8x1xf32>
    %849 = arith.addf %772, %848 : vector<8x1xf32>
    %850 = vector.broadcast %0 : f32 to vector<8x4xf32>
    %851 = arith.mulf %819, %850 : vector<8x4xf32>
    %852 = arith.addf %779, %851 : vector<8x4xf32>
    %c6_291 = arith.constant 6 : index
    %c0_292 = arith.constant 0 : index
    %c0_293 = arith.constant 0 : index
    %853 = vector.load %arg3[%c6_291, %c0_292, %c0_293] : memref<7x8x4xf32, #tpu.memory_space<vmem>>, vector<1x8x4xf32>
    %854 = vector.shape_cast %853 : vector<1x8x4xf32> to vector<8x4xf32>
    %855 = arith.mulf %843, %854 : vector<8x4xf32>
    %856 = arith.addf %852, %855 : vector<8x4xf32>
    %c7 = arith.constant 7 : index
    %c0_294 = arith.constant 0 : index
    %c0_295 = arith.constant 0 : index
    %857 = vector.load %arg1[%c7, %c0_294, %c0_295] : memref<8x8x3xf32, #tpu.memory_space<vmem>>, vector<1x8x3xf32>
    %858 = vector.shape_cast %857 : vector<1x8x3xf32> to vector<8x3xf32>
    %cst_296 = arith.constant dense<0.000000e+00> : vector<8x3xf32>
    %859 = tpu.matmul %856, %316, %cst_296 {dimension_numbers = #tpu.dot_dimension_numbers<[1], [0], [0], [1], [0, 0, 1, 1], [], []>} : vector<8x4xf32>, vector<4x3xf32>, vector<8x3xf32> -> vector<8x3xf32>
    %860 = vector.broadcast %317 : vector<1x3xf32> to vector<8x3xf32>
    %861 = arith.addf %859, %860 : vector<8x3xf32>
    %862 = arith.subf %858, %861 : vector<8x3xf32>
    %863 = arith.mulf %862, %862 : vector<8x3xf32>
    %cst_297 = arith.constant dense<0.000000e+00> : vector<8xf32>
    %864 = vector.multi_reduction <add>, %863, %cst_297 [1] : vector<8x3xf32> to vector<8xf32>
    %865 = vector.shape_cast %864 : vector<8xf32> to vector<8x1xf32>
    %866 = arith.addf %789, %865 : vector<8x1xf32>
    %867 = tpu.concatenate %866, %849 in 1 : vector<8x1xf32>, vector<8x1xf32> -> vector<8x2xf32>
    %c0_298 = arith.constant 0 : index
    %c0_299 = arith.constant 0 : index
    %868 = vector.load %arg26[%c0_298, %c0_299] : memref<8x2xf32, #tpu.memory_space<vmem>>, vector<8x2xf32>
    tpu.vector_store %arg26[%c0_298, %c0_299], %867 {strides = array<i32>} : memref<8x2xf32, #tpu.memory_space<vmem>>, vector<8x2xf32>,
    return
  }
}

</mosaic_0001>

<bundles_post_ra>
// kernel: latent_sde_forward.3
= control target key start
LH: loop header
LB: loop body
LE: loop exit
PB: predicated region body
PF: predicated region fallthrough
CT: control target
= control target key end

     0   :  { %vm130_vm0 = vcmask 1042432   ;;  %vm105_vm1 = vcmask 23552   ;;  %v6831_v2 = vmov 0.0|0.0   ;;  %vm6832_vm2 = vmmov 0   ;;  %s8111_s4 = inlined_call_operand.vmem [shape: f32[3,96], index: 4, kind: input, shape index: {}]   ;;  %s8112_s1 = inlined_call_operand.vmem [shape: f32[8,8,3], index: 1, kind: input, shape index: {}]   ;;  %s8113_s6 = inlined_call_operand.vmem [shape: f32[32,96], index: 6, kind: input, shape index: {}]   ;;  %s8114_s5 = inlined_call_operand.vmem [shape: f32[1,96], index: 5, kind: input, shape index: {}]   ;;  %s8115_s7 = inlined_call_operand.vmem [shape: f32[1,96], index: 7, kind: input, shape index: {}]   ;;  %s8116_s8 = inlined_call_operand.vmem [shape: f32[32,16], index: 8, kind: input, shape index: {}]   ;;  %s8117_s13 = inlined_call_operand.vmem [shape: f32[16,64], index: 13, kind: input, shape index: {}]   ;;  %s8118_s2 = inlined_call_operand.vmem [shape: f32[8,4], index: 2, kind: input, shape index: {}]   ;;  %s8119_s9 = inlined_call_operand.vmem [shape: f32[1,16], index: 9, kind: input, shape index: {}]   ;;  %s8120_s10 = inlined_call_operand.vmem [shape: f32[16,8], index: 10, kind: input, shape index: {}]   ;;  %s8121_s23 = inlined_call_operand.vmem [shape: f32[4,3], index: 23, kind: input, shape index: {}]   ;;  %s8122_s11 = inlined_call_operand.vmem [shape: f32[1,8], index: 11, kind: input, shape index: {}]   ;;  %s8123_s25 = inlined_call_operand.vmem [shape: f32[8,8], index: 25, kind: output, shape index: {0}]   ;;  %s8124_s12 = inlined_call_operand.vmem [shape: f32[4,64], index: 12, kind: input, shape index: {}]   ;;  %s8125_s15 = inlined_call_operand.vmem [shape: f32[64,64], index: 15, kind: input, shape index: {}]   ;;  %s8126_s24 = inlined_call_operand.vmem [shape: f32[1,3], index: 24, kind: input, shape index: {}]   ;;  %s8127_s14 = inlined_call_operand.vmem [shape: f32[1,64], index: 14, kind: input, shape index: {}]   ;;  %s8128_s19 = inlined_call_operand.vmem [shape: f32[4,128], index: 19, kind: input, shape index: {}]   ;;  %s8129_s21 = inlined_call_operand.vmem [shape: f32[128,4], index: 21, kind: input, shape index: {}]   ;;  %s8130_s17 = inlined_call_operand.vmem [shape: f32[64,8], index: 17, kind: input, shape index: {}]   ;;  %s8131_s16 = inlined_call_operand.vmem [shape: f32[1,64], index: 16, kind: input, shape index: {}]   ;;  %s8132_s20 = inlined_call_operand.vmem [shape: f32[1,128], index: 20, kind: input, shape index: {}]   ;;  %s8133_s18 = inlined_call_operand.vmem [shape: f32[1,8], index: 18, kind: input, shape index: {}]   ;;  %s8134_s22 = inlined_call_operand.vmem [shape: f32[1,4], index: 22, kind: input, shape index: {}]   ;;  %s8135_s0 = inlined_call_operand.<no memory space> [shape: f32[1], index: 0, kind: input, shape index: {}]   ;;  %s8136_s3 = inlined_call_operand.vmem [shape: f32[7,8,4], index: 3, kind: input, shape index: {}]   ;;  %s8137_s26 = inlined_call_operand.vmem [shape: f32[8,2], index: 26, kind: output, shape index: {1}]  }
   0x1   :  { %8144 = sst [smem:[#allocation3_spill]] %s8111_s4  ;;  %6237 = vmatprep.subr.bf16.mxu1 %v6831_v2  ;;  %v6833_v10 = vmov 0.0   ;;  %s6834_s4 = smov 64   ;;  %vm245_vm3 = vcmask 261120   ;;  %vm1182_vm4 = vcmask 130048   ;;  %vm1456_vm5 = vcmask 1043456  }
   0x2   :  { %8145 = sst [smem:[#allocation4_spill]] %s8112_s1  ;;  %5493 = vmatprep.mubr.msk.f32.mxu1 %vm6832_vm2, %v6833_v10  ;;  %vm1390_vm6 = vcmask 64512   ;;  %s6837_s1 = smov 124   ;;  %vm1452_vm7 = vcmask 31744   ;;  %vm1623_vm8 = vcmask 523264   ;;  %vm4982_vm9 = vcmask 7168  }
   0x3   :  { %8146 = sst [smem:[#allocation5_spill]] %s8113_s6  ;;  %vm4984_vm10 = vcmask 15360  }
   0x4   :  { %8147 = sst [smem:[#allocation6_spill]] %s8114_s5  ;;  %s8155_s5 = sld [smem:[#allocation3_spill]] }
   0x5   :  { %8148 = sst [smem:[#allocation7_spill]] %s8115_s7  ;;  %s8156_s7 = sld [smem:[#allocation4_spill]] }
   0x6   :  { %8149 = sst [smem:[#allocation8_spill]] %s8116_s8  ;;  %s8157_s6 = sld [smem:[#allocation5_spill]] }
   0x7   :  { %8150 = sst [smem:[#allocation9_spill]] %s8117_s13  ;;  %s8159_s29 = sld [smem:[#allocation7_spill]] }
   0x8   :  { %8151 = sst [smem:[#allocation10_spill]] %s8118_s2  ;;  %s8160_s8 = sld [smem:[#allocation8_spill]] }
   0x9   :  { %8152 = sst [smem:[#allocation11_spill]] %s8119_s9 }
   0xa   :  { %8153 = sst [smem:[#allocation12_spill]] %s8120_s10  ;;  %v84_v0 = vld [vmem:[%s8155_s5] sm:$0x7]  ;;  %s8158_s5 = sld [smem:[#allocation6_spill]] }
   0xb   :  { %8154 = sst [smem:[#allocation13_spill]] %s8121_s23  ;;  %v6979_v1 = vld [vmem:[%s8156_s7] sm:$0xff]  ;;  %v92_v3 = vld [vmem:[%s8156_s7 + $0x8] sm:$0xff]  ;;  %5471 = vmatprep.subr.msk.mxu0 %vm130_vm0, %v84_v0  ;;  %v93_v6 = vld [vmem:[%s8156_s7 + $0x10] sm:$0xff]  ;;  %s6835_s10 = smov 96  }
   0xc   :  { %5473 = vmatprep.mubr.msk.f32.mxu0 %vm105_vm1, %v6979_v1  ;;  %v86_v4 = vld [vmem:[%s8157_s6] sm:$0xff]  ;;  %v87_v5 = vld [vmem:[%s8157_s6 + $0x8] sm:$0xff]  ;;  %5472 = vmatpush3.msk.msra.mxu0 %vm130_vm0, %v84_v0  ;;  %v88_v8 = vld [vmem:[%s8157_s6 + $0x10] sm:$0xff]  ;;  %s6836_s23 = smov 4   ;;  %s8163_s2 = sld [smem:[#allocation11_spill]] }
   0xd   :  { %v6996_v7 = vpack.c.bf16 %v87_v5, %v86_v4  ;;  %v89_v9 = vld [vmem:[%s8157_s6 + $0x18] sm:$0xff]  ;;  %5474 = vmatmul.mubr.msk.f32.vlgmr.msra.gmra.mrb[0].mxu0 %vm105_vm1, %v92_v3  ;;  %6249 = vmatprep.subr.bf16.mxu0 %v6831_v2  ;;  %v95_v13 = vld [vmem:[%s8156_s7 + $0x20] sm:$0xff]  ;;  %v96_v14 = vld [vmem:[%s8156_s7 + $0x28] sm:$0xff]  ;;  %s8164_s28 = sld [smem:[#allocation12_spill]]  ;;  %s8165_s30 = sld [smem:[#allocation13_spill]] }
   0xe   :  { %5476 = vmatprep.mubr.msk.f32.mxu0 %vm105_vm1, %v93_v6  ;;  %v94_v11 = vld [vmem:[%s8156_s7 + $0x18] sm:$0xff]  ;;  %v7013_v12 = vpack.c.bf16 %v89_v9, %v88_v8  ;;  %v97_v15 = vld [vmem:[%s8156_s7 + $0x30] sm:$0xff]  ;;  %v7060_v25 = vld [vmem:[%s8159_s29] ss:$0 sm:$0xff]  ;;  %s8161_s29 = sld [smem:[#allocation9_spill]] }
   0xf   :  { %6239 = vmatpush3.bf16.msra.mxu1 %v6996_v7  ;;  %6251 = vmatpush3.bf16.msra.mxu0 %v6996_v7  ;;  %v98_v16 = vld [vmem:[%s8156_s7 + $0x38] sm:$0xff] }
  0x10   :  { %6240 = vmatprep.subr.bf16.mxu1 %v6831_v2  ;;  %6252 = vmatprep.subr.bf16.mxu0 %v6831_v2  ;;  %v4994_v18 = vld [vmem:[%s8158_s5] ss:$0 sm:$0xff] }
  0x11   :  { %5477 = vmatmul.mubr.msk.f32.gmra.mrb[2].mxu0 %vm105_vm1, %v94_v11 }
  0x12   :  { %5479 = vmatprep.mubr.msk.f32.mxu0 %vm105_vm1, %v95_v13 }
  0x13   :  { %6242 = vmatpush3.bf16.msra.mxu1 %v7013_v12  ;;  %6254 = vmatpush3.bf16.msra.mxu0 %v7013_v12 }
  0x14   :  { %6243 = vmatprep.subr.bf16.mxu1 %v6831_v2  ;;  %6261 = vmatprep.subr.bf16.mxu0 %v6831_v2 }
  0x15   :  { %5480 = vmatmul.mubr.msk.f32.gmra.mrb[4].mxu0 %vm105_vm1, %v96_v14 }
  0x16   :  { %5494 = vmatmul.mubr.f32.vlgmr.msra.gmra.mrb[0].mxu1 %v6833_v10  ;;  %5482 = vmatprep.mubr.msk.f32.mxu0 %vm105_vm1, %v97_v15 }
  0x17   :  { %6245 = vmatpush3.bf16.msra.mxu1 %v6996_v7  ;;  %5504 = vmatprep.mubr.msk.f32.mxu1 %vm6832_vm2, %v6833_v10 }
  0x18   :  { %6246 = vmatprep.subr.bf16.mxu1 %v6831_v2 }
  0x19   :  { %5483 = vmatmul.mubr.msk.f32.gmra.mrb[6].mxu0 %vm105_vm1, %v98_v16 }
  0x1a   :  { %5515 = vmatprep.mubr.msk.f32.mxu0 %vm6832_vm2, %v6833_v10 }
  0x1b   :  { %6248 = vmatpush3.bf16.msra.mxu1 %v7013_v12 }
  0x1c   :  { %6255 = vmatprep.subr.bf16.mxu1 %v6831_v2 }
  0xe0   :  { %v5475_v17 = vpop.f32.mrb[0].mxu0 }
  0xe1   :  { %v7051_v19 = vadd.f32 %v5475_v17, %v4994_v18  ;;  %v200_v20 = vpop.f32.mrb[1].mxu0 }
  0xe2   :  { %v7053_v21 = vadd.f32 %v4994_v18, %v200_v20 }
  0xe4   :  { %v5478_v22 = vpop.f32.mrb[2].mxu0 }
  0xe5   :  { %v7055_v23 = vadd.f32 %v5478_v22, %v4994_v18  ;;  %v210_v24 = vpop.f32.mrb[3].mxu0 }
  0xe6   :  { %v7062_v26 = vadd.f32 %v4994_v18, %v210_v24 }
  0xe8   :  { %v5481_v28 = vpop.f32.mrb[4].mxu0 }
  0xe9   :  { %v315_v27 = vpop.f32.mrb[0].mxu1  ;;  %v7065_v31 = vadd.f32 %v5481_v28, %v4994_v18  ;;  %v220_v32 = vpop.f32.mrb[5].mxu0 }
  0xea   :  { %v316_v29 = vadd.f32 %v7060_v25, %v315_v27  ;;  %v5495_v30 = vpop.f32.mrb[1].mxu1  ;;  %v7067_v33 = vadd.f32 %v4994_v18, %v220_v32 }
  0xec   :  { %327 = vrot.lane.b32.xlu0 %v316_v29, %s6834_s4  ;;  %v5484_v34 = vpop.f32.mrb[6].mxu0 }
  0xed   :  { %v230_v35 = vpop.f32.mrb[7].mxu0  ;;  %v236_v37 = vadd.f32 %v5484_v34, %v4994_v18 }
  0xee   :  { %v231_v36 = vadd.f32 %v4994_v18, %v230_v35 }
  0xef   :  { %v319_v38 = vadd.f32 %v316_v29, %v236_v37 }
  0xf1   :  { %v320_v39 = vsub.f32 0.0, %v319_v38 }
  0xf3   :  { %v321_v40 = vmul.f32 1.442695, %v320_v39 }
  0xf5   :  { %6646 = vpow2.f32 %v321_v40 }
  0xff   :  { %v6647_v41 = vpop.eup %6646 }
 0x100   :  { %v323_v42 = vadd.f32 1.0, %v6647_v41 }
 0x102   :  { %6648 = vrcp.f32 %v323_v42 }
 0x10c   :  { %v6649_v43 = vpop.eup %6648 }
 0x10d   :  { %v337_v49 = vsub.f32 1.0, %v6649_v43  ;;  %v343_v51 = vmul.f32 0.0, %v6649_v43 }
 0x15e   :  { %v328_v44 = vpop.permute.xlu0 %327 }
 0x15f   :  { %v330_v45 = vmul.f32 %v6649_v43, %v328_v44 }
 0x161   :  { %332 = vrot.lane.b32.xlu0 %v330_v45, %s6834_s4 }
 0x1d3   :  { %v333_v46 = vpop.permute.xlu0 %332 }
 0x1d4   :  { %v335_v47 = vadd.f32 %v333_v46, %v236_v37 }
 0x1d6   :  { %6650 = vtanh.f32 %v335_v47 }
 0x1e0   :  { %v6651_v48 = vpop.eup %6650 }
 0x1e1   :  { %339 = vrot.lane.b32.xlu1 %v6651_v48, %s6835_s10 }
 0x253   :  { %v340_v50 = vpop.permute.xlu1 %339 }
 0x254   :  { %v342_v52 = vmul.f32 %v340_v50, %v337_v49 }
 0x256   :  { %v344_v53 = vadd.f32 %v343_v51, %v342_v52 }
 0x258   :  { %346 = vrot.lane.b32.xlu1 %v344_v53, %s6835_s10 }
 0x2ca   :  { %v7073_v54 = vpop.permute.xlu1 %346 }
 0x2cb   :  { %5505 = vmatmul.mubr.msk.f32.vlgmr.msra.gmra.mrb[2].mxu1 %vm245_vm3, %v7073_v54 }
 0x2cc   :  { %6257 = vmatpush3.bf16.msra.mxu1 %v6996_v7  ;;  %5526 = vmatprep.mubr.msk.f32.mxu1 %vm6832_vm2, %v6833_v10 }
 0x2cd   :  { %6258 = vmatprep.subr.bf16.mxu1 %v6831_v2 }
 0x2d0   :  { %6260 = vmatpush3.bf16.msra.mxu1 %v7013_v12 }
 0x2d1   :  { %6267 = vmatprep.subr.bf16.mxu1 %v6831_v2 }
 0x39e   :  { %v416_v55 = vpop.f32.mrb[2].mxu1 }
 0x39f   :  { %v417_v56 = vadd.f32 %v7060_v25, %v416_v55  ;;  %v5506_v57 = vpop.f32.mrb[3].mxu1 }
 0x3a1   :  { %428 = vrot.lane.b32.xlu0 %v417_v56, %s6834_s4  ;;  %v420_v58 = vadd.f32 %v417_v56, %v231_v36 }
 0x3a3   :  { %v421_v59 = vsub.f32 0.0, %v420_v58 }
 0x3a5   :  { %v422_v60 = vmul.f32 1.442695, %v421_v59 }
 0x3a7   :  { %6652 = vpow2.f32 %v422_v60 }
 0x3b1   :  { %v6653_v61 = vpop.eup %6652 }
 0x3b2   :  { %v424_v62 = vadd.f32 1.0, %v6653_v61 }
 0x3b4   :  { %6654 = vrcp.f32 %v424_v62 }
 0x3be   :  { %v6655_v63 = vpop.eup %6654 }
 0x3bf   :  { %v438_v8 = vsub.f32 1.0, %v6655_v63  ;;  %v444_v11 = vmul.f32 %v6655_v63, %v344_v53 }
 0x413   :  { %v429_v0 = vpop.permute.xlu0 %428 }
 0x414   :  { %v431_v3 = vmul.f32 %v6655_v63, %v429_v0 }
 0x416   :  { %433 = vrot.lane.b32.xlu1 %v431_v3, %s6834_s4 }
 0x488   :  { %v434_v4 = vpop.permute.xlu1 %433 }
 0x489   :  { %v436_v5 = vadd.f32 %v434_v4, %v231_v36 }
 0x48b   :  { %6656 = vtanh.f32 %v436_v5 }
 0x495   :  { %v6657_v6 = vpop.eup %6656 }
 0x496   :  { %440 = vrot.lane.b32.xlu0 %v6657_v6, %s6835_s10 }
 0x508   :  { %v441_v9 = vpop.permute.xlu0 %440 }
 0x509   :  { %v443_v13 = vmul.f32 %v441_v9, %v438_v8 }
 0x50b   :  { %v445_v14 = vadd.f32 %v444_v11, %v443_v13 }
 0x50d   :  { %447 = vrot.lane.b32.xlu1 %v445_v14, %s6835_s10 }
 0x57f   :  { %v7088_v15 = vpop.permute.xlu1 %447 }
 0x580   :  { %5516 = vmatmul.mubr.msk.f32.vlgmr.msra.gmra.mrb[8].mxu0 %vm245_vm3, %v7088_v15 }
 0x581   :  { %6263 = vmatpush3.bf16.msra.mxu0 %v6996_v7  ;;  %5537 = vmatprep.mubr.msk.f32.mxu0 %vm6832_vm2, %v6833_v10 }
 0x582   :  { %6264 = vmatprep.subr.bf16.mxu0 %v6831_v2 }
 0x585   :  { %6266 = vmatpush3.bf16.msra.mxu0 %v7013_v12 }
 0x586   :  { %6273 = vmatprep.subr.bf16.mxu0 %v6831_v2 }
 0x653   :  { %v517_v16 = vpop.f32.mrb[8].mxu0 }
 0x654   :  { %v518_v17 = vadd.f32 %v7060_v25, %v517_v16  ;;  %v5517_v18 = vpop.f32.mrb[9].mxu0 }
 0x656   :  { %529 = vrot.lane.b32.xlu0 %v518_v17, %s6834_s4  ;;  %v521_v20 = vadd.f32 %v518_v17, %v7065_v31 }
 0x658   :  { %v522_v22 = vsub.f32 0.0, %v521_v20 }
 0x65a   :  { %v523_v24 = vmul.f32 1.442695, %v522_v22 }
 0x65c   :  { %6658 = vpow2.f32 %v523_v24 }
 0x666   :  { %v6659_v27 = vpop.eup %6658 }
 0x667   :  { %v525_v28 = vadd.f32 1.0, %v6659_v27 }
 0x669   :  { %6660 = vrcp.f32 %v525_v28 }
 0x673   :  { %v6661_v29 = vpop.eup %6660 }
 0x674   :  { %v539_v37 = vsub.f32 1.0, %v6661_v29  ;;  %v545_v39 = vmul.f32 %v6661_v29, %v445_v14 }
 0x6c8   :  { %v530_v30 = vpop.permute.xlu0 %529 }
 0x6c9   :  { %v532_v32 = vmul.f32 %v6661_v29, %v530_v30 }
 0x6cb   :  { %534 = vrot.lane.b32.xlu1 %v532_v32, %s6834_s4 }
 0x73d   :  { %v535_v34 = vpop.permute.xlu1 %534 }
 0x73e   :  { %v537_v35 = vadd.f32 %v535_v34, %v7065_v31 }
 0x740   :  { %6662 = vtanh.f32 %v537_v35 }
 0x74a   :  { %v6663_v36 = vpop.eup %6662 }
 0x74b   :  { %541 = vrot.lane.b32.xlu0 %v6663_v36, %s6835_s10 }
 0x7bd   :  { %v542_v38 = vpop.permute.xlu0 %541 }
 0x7be   :  { %v544_v40 = vmul.f32 %v542_v38, %v539_v37 }
 0x7c0   :  { %v546_v41 = vadd.f32 %v545_v39, %v544_v40 }
 0x7c2   :  { %548 = vrot.lane.b32.xlu1 %v546_v41, %s6835_s10 }
 0x834   :  { %v7105_v42 = vpop.permute.xlu1 %548 }
 0x835   :  { %5527 = vmatmul.mubr.msk.f32.vlgmr.msra.gmra.mrb[4].mxu1 %vm245_vm3, %v7105_v42 }
 0x836   :  { %6269 = vmatpush3.bf16.msra.mxu1 %v6996_v7  ;;  %5548 = vmatprep.mubr.msk.f32.mxu1 %vm6832_vm2, %v6833_v10 }
 0x837   :  { %6270 = vmatprep.subr.bf16.mxu1 %v6831_v2 }
 0x83a   :  { %6272 = vmatpush3.bf16.msra.mxu1 %v7013_v12 }
 0x83b   :  { %6279 = vmatprep.subr.bf16.mxu1 %v6831_v2 }
 0x908   :  { %v618_v31 = vpop.f32.mrb[4].mxu1 }
 0x909   :  { %v619_v43 = vadd.f32 %v7060_v25, %v618_v31  ;;  %v5528_v44 = vpop.f32.mrb[5].mxu1 }
 0x90b   :  { %630 = vrot.lane.b32.xlu0 %v619_v43, %s6834_s4  ;;  %v622_v45 = vadd.f32 %v619_v43, %v7067_v33 }
 0x90d   :  { %v623_v46 = vsub.f32 0.0, %v622_v45 }
 0x90f   :  { %v624_v47 = vmul.f32 1.442695, %v623_v46 }
 0x911   :  { %6664 = vpow2.f32 %v624_v47 }
 0x91b   :  { %v6665_v48 = vpop.eup %6664 }
 0x91c   :  { %v626_v49 = vadd.f32 1.0, %v6665_v48 }
 0x91e   :  { %6666 = vrcp.f32 %v626_v49 }
 0x928   :  { %v6667_v50 = vpop.eup %6666 }
 0x929   :  { %v640_v57 = vsub.f32 1.0, %v6667_v50  ;;  %v646_v59 = vmul.f32 %v6667_v50, %v546_v41 }
 0x97d   :  { %v631_v51 = vpop.permute.xlu0 %630 }
 0x97e   :  { %v633_v52 = vmul.f32 %v6667_v50, %v631_v51 }
 0x980   :  { %635 = vrot.lane.b32.xlu1 %v633_v52, %s6834_s4 }
 0x9f2   :  { %v636_v53 = vpop.permute.xlu1 %635 }
 0x9f3   :  { %v638_v55 = vadd.f32 %v636_v53, %v7067_v33 }
 0x9f5   :  { %6668 = vtanh.f32 %v638_v55 }
 0x9ff   :  { %v6669_v56 = vpop.eup %6668 }
 0xa00   :  { %642 = vrot.lane.b32.xlu0 %v6669_v56, %s6835_s10 }
 0xa72   :  { %v643_v58 = vpop.permute.xlu0 %642 }
 0xa73   :  { %v645_v60 = vmul.f32 %v643_v58, %v640_v57 }
 0xa75   :  { %v647_v61 = vadd.f32 %v646_v59, %v645_v60 }
 0xa77   :  { %649 = vrot.lane.b32.xlu1 %v647_v61, %s6835_s10 }
 0xae9   :  { %v7122_v62 = vpop.permute.xlu1 %649 }
 0xaea   :  { %5538 = vmatmul.mubr.msk.f32.vlgmr.msra.gmra.mrb[10].mxu0 %vm245_vm3, %v7122_v62 }
 0xaeb   :  { %6275 = vmatpush3.bf16.msra.mxu0 %v6996_v7  ;;  %5559 = vmatprep.mubr.msk.f32.mxu0 %vm6832_vm2, %v6833_v10 }
 0xaec   :  { %6276 = vmatprep.subr.bf16.mxu0 %v6831_v2 }
 0xaef   :  { %6278 = vmatpush3.bf16.msra.mxu0 %v7013_v12 }
 0xbbd   :  { %v719_v33 = vpop.f32.mrb[10].mxu0 }
 0xbbe   :  { %v720_v63 = vadd.f32 %v7060_v25, %v719_v33  ;;  %v5539_v0 = vpop.f32.mrb[11].mxu0 }
 0xbc0   :  { %731 = vrot.lane.b32.xlu0 %v720_v63, %s6834_s4  ;;  %v723_v3 = vadd.f32 %v720_v63, %v7055_v23 }
 0xbc2   :  { %v724_v4 = vsub.f32 0.0, %v723_v3 }
 0xbc4   :  { %v725_v5 = vmul.f32 1.442695, %v724_v4 }
 0xbc6   :  { %6670 = vpow2.f32 %v725_v5 }
 0xbd0   :  { %v6671_v6 = vpop.eup %6670 }
 0xbd1   :  { %v727_v8 = vadd.f32 1.0, %v6671_v6 }
 0xbd3   :  { %6672 = vrcp.f32 %v727_v8 }
 0xbdd   :  { %v6673_v9 = vpop.eup %6672 }
 0xbde   :  { %v741_v18 = vsub.f32 1.0, %v6673_v9  ;;  %v747_v22 = vmul.f32 %v6673_v9, %v647_v61 }
 0xc32   :  { %v732_v11 = vpop.permute.xlu0 %731 }
 0xc33   :  { %v734_v13 = vmul.f32 %v6673_v9, %v732_v11 }
 0xc35   :  { %736 = vrot.lane.b32.xlu1 %v734_v13, %s6834_s4 }
 0xca7   :  { %v737_v14 = vpop.permute.xlu1 %736 }
 0xca8   :  { %v739_v16 = vadd.f32 %v737_v14, %v7055_v23 }
 0xcaa   :  { %6674 = vtanh.f32 %v739_v16 }
 0xcb4   :  { %v6675_v17 = vpop.eup %6674 }
 0xcb5   :  { %743 = vrot.lane.b32.xlu0 %v6675_v17, %s6835_s10 }
 0xd27   :  { %v744_v20 = vpop.permute.xlu0 %743 }
 0xd28   :  { %v746_v24 = vmul.f32 %v744_v20, %v741_v18 }
 0xd2a   :  { %v748_v27 = vadd.f32 %v747_v22, %v746_v24 }
 0xd2c   :  { %750 = vrot.lane.b32.xlu1 %v748_v27, %s6835_s10 }
 0xd9e   :  { %v7138_v28 = vpop.permute.xlu1 %750 }
 0xd9f   :  { %5549 = vmatmul.mubr.msk.f32.vlgmr.msra.gmra.mrb[6].mxu1 %vm245_vm3, %v7138_v28 }
 0xda0   :  { %6281 = vmatpush3.bf16.msra.mxu1 %v6996_v7  ;;  %5570 = vmatprep.mubr.msk.f32.mxu1 %vm6832_vm2, %v6833_v10 }
 0xda1   :  { %6282 = vmatprep.subr.bf16.mxu1 %v6831_v2 }
 0xda4   :  { %6284 = vmatpush3.bf16.msra.mxu1 %v7013_v12 }
 0xe72   :  { %v820_v23 = vpop.f32.mrb[6].mxu1 }
 0xe73   :  { %v821_v29 = vadd.f32 %v7060_v25, %v820_v23  ;;  %v5550_v30 = vpop.f32.mrb[7].mxu1  ;;  %v1054_v23 = vld [vmem:[%s8160_s8 + $0x10] sm:$0xff] }
 0xe74   :  { %v1055_v30 = vld [vmem:[%s8160_s8 + $0x18] sm:$0xff] }
 0xe75   :  { %832 = vrot.lane.b32.xlu0 %v821_v29, %s6834_s4  ;;  %v824_v32 = vadd.f32 %v821_v29, %v7062_v26 }
 0xe77   :  { %v825_v34 = vsub.f32 0.0, %v824_v32  ;;  %v6289_v32 = vpack.c.bf16 %v1055_v30, %v1054_v23  ;;  %v1413_v30 = vld [vmem:[%s8125_s15 + $0x38] sm:$0xff] }
 0xe79   :  { %v826_v35 = vmul.f32 1.442695, %v825_v34 }
 0xe7b   :  { %6676 = vpow2.f32 %v826_v35 }
 0xe85   :  { %v6677_v36 = vpop.eup %6676 }
 0xe86   :  { %v828_v7 = vadd.f32 1.0, %v6677_v36 }
 0xe88   :  { %6678 = vrcp.f32 %v828_v7 }
 0xe92   :  { %v6679_v37 = vpop.eup %6678 }
 0xe93   :  { %v842_v31 = vsub.f32 1.0, %v6679_v37  ;;  %v848_v44 = vmul.f32 %v6679_v37, %v748_v27  ;;  %v1053_v27 = vld [vmem:[%s8160_s8 + $0x8] sm:$0xff] }
 0xee7   :  { %v833_v38 = vpop.permute.xlu0 %832 }
 0xee8   :  { %v835_v39 = vmul.f32 %v6679_v37, %v833_v38 }
 0xeea   :  { %837 = vrot.lane.b32.xlu1 %v835_v39, %s6834_s4  ;;  %v1173_v39 = vld [vmem:[%s8161_s29] sm:$0xff] }
 0xf5c   :  { %v838_v12 = vpop.permute.xlu1 %837 }
 0xf5d   :  { %v840_v40 = vadd.f32 %v838_v12, %v7062_v26  ;;  %v1312_v12 = vld [vmem:[%s8164_s28 + $0x8] sm:$0xff] }
 0xf5f   :  { %6680 = vtanh.f32 %v840_v40 }
 0xf69   :  { %v6681_v41 = vpop.eup %6680 }
 0xf6a   :  { %844 = vrot.lane.b32.xlu0 %v6681_v41, %s6835_s10 }
 0xfdc   :  { %v845_v43 = vpop.permute.xlu0 %844 }
 0xfdd   :  { %v847_v45 = vmul.f32 %v845_v43, %v842_v31 }
 0xfdf   :  { %v849_v46 = vadd.f32 %v848_v44, %v847_v45 }
 0xfe1   :  { %851 = vrot.lane.b32.xlu1 %v849_v46, %s6835_s10 }
0x1053   :  { %v7154_v47 = vpop.permute.xlu1 %851 }
0x1054   :  { %5560 = vmatmul.mubr.msk.f32.vlgmr.msra.gmra.mrb[12].mxu0 %vm245_vm3, %v7154_v47 }
0x1127   :  { %v921_v48 = vpop.f32.mrb[12].mxu0 }
0x1128   :  { %v922_v49 = vadd.f32 %v7060_v25, %v921_v48  ;;  %v5561_v26 = vpop.f32.mrb[13].mxu0 }
0x112a   :  { %933 = vrot.lane.b32.xlu0 %v922_v49, %s6834_s4  ;;  %v925_v50 = vadd.f32 %v922_v49, %v7051_v19 }
0x112c   :  { %v926_v51 = vsub.f32 0.0, %v925_v50 }
0x112e   :  { %v927_v52 = vmul.f32 1.442695, %v926_v51 }
0x1130   :  { %6682 = vpow2.f32 %v927_v52 }
0x113a   :  { %v6683_v53 = vpop.eup %6682 }
0x113b   :  { %v929_v55 = vadd.f32 1.0, %v6683_v53 }
0x113d   :  { %6684 = vrcp.f32 %v929_v55 }
0x1147   :  { %v6685_v56 = vpop.eup %6684 }
0x1148   :  { %v943_v33 = vsub.f32 1.0, %v6685_v56  ;;  %v949_v0 = vmul.f32 %v6685_v56, %v849_v46 }
0x119c   :  { %v934_v57 = vpop.permute.xlu0 %933 }
0x119d   :  { %v936_v58 = vmul.f32 %v6685_v56, %v934_v57  ;;  %v7238_v57 = vld [vmem:[%s8165_s30] sm:$0xf] }
0x119f   :  { %938 = vrot.lane.b32.xlu1 %v936_v58, %s6834_s4 }
0x1211   :  { %v939_v59 = vpop.permute.xlu1 %938 }
0x1212   :  { %v941_v60 = vadd.f32 %v939_v59, %v7051_v19 }
0x1214   :  { %6686 = vtanh.f32 %v941_v60 }
0x121e   :  { %v6687_v61 = vpop.eup %6686 }
0x121f   :  { %945 = vrot.lane.b32.xlu0 %v6687_v61, %s6835_s10 }
0x1291   :  { %v946_v63 = vpop.permute.xlu0 %945 }
0x1292   :  { %v948_v3 = vmul.f32 %v946_v63, %v943_v33 }
0x1294   :  { %v950_v4 = vadd.f32 %v949_v0, %v948_v3  ;;  %v5030_v0 = vld [vmem:[%s8122_s11] ss:$0 sm:$0xff] }
0x1296   :  { %952 = vrot.lane.b32.xlu1 %v950_v4, %s6835_s10 }
0x1308   :  { %v953_v5 = vpop.permute.xlu1 %952 }
0x1309   :  { %5571 = vmatmul.mubr.msk.f32.vlgmr.msra.gmra.mrb[8].mxu1 %vm245_vm3, %v953_v5 }
0x13dc   :  { %v1022_v6 = vpop.f32.mrb[8].mxu1 }
0x13dd   :  { %v1023_v8 = vadd.f32 %v7060_v25, %v1022_v6  ;;  %v5572_v9 = vpop.f32.mrb[9].mxu1  ;;  %v1052_v25 = vld [vmem:[%s8160_s8] sm:$0xff]  ;;  %s8162_s8 = sld [smem:[#allocation10_spill]] }
0x13de   :  { %v6285_v29 = vpack.c.bf16 %v1053_v27, %v1052_v25  ;;  %v1410_v25 = vld [vmem:[%s8125_s15 + $0x20] sm:$0xff]  ;;  %v1411_v27 = vld [vmem:[%s8125_s15 + $0x28] sm:$0xff] }
0x13df   :  { %1034 = vrot.lane.b32.xlu0 %v1023_v8, %s6834_s4  ;;  %v1026_v19 = vadd.f32 %v1023_v8, %v7053_v21  ;;  %v7306_v23 = vpack.c.bf16 %v1411_v27, %v1410_v25  ;;  %v1437_v27 = vld [vmem:[%s8129_s21 + $0x58] sm:$0xff] }
0x13e0   :  { %6286 = vmatprep.subr.bf16.mxu0 %v6285_v29 }
0x13e1   :  { %v1027_v11 = vsub.f32 0.0, %v1026_v19  ;;  %6288 = vmatpush3.bf16.msra.mxu0 %v6285_v29  ;;  %v1412_v29 = vld [vmem:[%s8125_s15 + $0x30] sm:$0xff] }
0x13e2   :  { %6290 = vmatprep.subr.bf16.mxu0 %v6289_v32 }
0x13e3   :  { %v1028_v13 = vmul.f32 1.442695, %v1027_v11 }
0x13e5   :  { %6688 = vpow2.f32 %v1028_v13  ;;  %6292 = vmatpush3.bf16.msra.mxu0 %v6289_v32  ;;  %v7316_v32 = vpack.c.bf16 %v1413_v30, %v1412_v29  ;;  %v1421_v30 = vld [vmem:[%s8130_s17 + $0x30] sm:$0xff] }
0x13e6   :  { %6300 = vmatprep.subr.bf16.mxu0 %v6831_v2 }
0x13ef   :  { %v6689_v14 = vpop.eup %6688 }
0x13f0   :  { %v1030_v16 = vadd.f32 1.0, %v6689_v14  ;;  %v7267_v14 = vld [vmem:[%s8124_s12] sm:$0xf] }
0x13f2   :  { %6690 = vrcp.f32 %v1030_v16  ;;  %v1406_v16 = vld [vmem:[%s8125_s15] sm:$0xff] }
0x13fc   :  { %v6691_v17 = vpop.eup %6690 }
0x13fd   :  { %v1044_v34 = vsub.f32 1.0, %v6691_v17  ;;  %v1050_v36 = vmul.f32 %v6691_v17, %v950_v4 }
0x1451   :  { %v1035_v18 = vpop.permute.xlu0 %1034 }
0x1452   :  { %v1037_v20 = vmul.f32 %v6691_v17, %v1035_v18  ;;  %v1407_v17 = vld [vmem:[%s8125_s15 + $0x8] sm:$0xff] }
0x1453   :  { %v7286_v18 = vpack.c.bf16 %v1407_v17, %v1406_v16  ;;  %v1419_v17 = vld [vmem:[%s8130_s17 + $0x20] sm:$0xff] }
0x1454   :  { %1039 = vrot.lane.b32.xlu1 %v1037_v20, %s6834_s4  ;;  %v1408_v20 = vld [vmem:[%s8125_s15 + $0x10] sm:$0xff] }
0x14c6   :  { %v1040_v22 = vpop.permute.xlu1 %1039 }
0x14c7   :  { %v1042_v24 = vadd.f32 %v1040_v22, %v7053_v21  ;;  %v1409_v22 = vld [vmem:[%s8125_s15 + $0x18] sm:$0xff] }
0x14c9   :  { %6692 = vtanh.f32 %v1042_v24  ;;  %v7296_v24 = vpack.c.bf16 %v1409_v22, %v1408_v20  ;;  %v1420_v20 = vld [vmem:[%s8130_s17 + $0x28] sm:$0xff]  ;;  %v1436_v22 = vld [vmem:[%s8129_s21 + $0x50] sm:$0xff] }
0x14ca   :  { %v7428_v25 = vpack.c.bf16 %v1420_v20, %v1419_v17  ;;  %v7433_v29 = vpack.c.bf16 %v1437_v27, %v1436_v22  ;;  %v7495_v22 = vld [vmem:[%s8133_s18] ss:$0 sm:$0xff] }
0x14d3   :  { %v6693_v21 = vpop.eup %6692 }
0x14d4   :  { %1046 = vrot.lane.b32.xlu0 %v6693_v21, %s6835_s10  ;;  %v7323_v21 = vld [vmem:[%s8126_s24] ss:$0 sm:$0xff] }
0x1546   :  { %v1047_v35 = vpop.permute.xlu0 %1046 }
0x1547   :  { %v1049_v7 = vmul.f32 %v1047_v35, %v1044_v34 }
0x1549   :  { %v1051_v37 = vadd.f32 %v1050_v36, %v1049_v7 }
0x154b   :  { %1064 = vrot.lane.b32.xlu1 %v1051_v37, %s6835_s10  ;;  %v7330_v37 = vld [vmem:[%s8127_s14] ss:$0 sm:$0xff] }
0x15bd   :  { %v1065_v38 = vpop.permute.xlu1 %1064 }
0x15be   :  { %5581 = vmatprep.mubr.msk.f32.mxu0 %vm245_vm3, %v1065_v38 }
0x15bf   :  { %5582 = vmatmul.mubr.msk.f32.vlgmr.msra.gmra.mrb[14].mxu0 %vm245_vm3, %v953_v5 }
0x15c0   :  { %5584 = vmatprep.mubr.msk.f32.mxu0 %vm245_vm3, %v7154_v47  ;;  %6302 = vmatpush3.bf16.msra.mxu0 %v7286_v18 }
0x15c1   :  { %6303 = vmatprep.subr.bf16.mxu0 %v6831_v2 }
0x15c3   :  { %5585 = vmatmul.mubr.msk.f32.gmra.mrb[16].mxu0 %vm245_vm3, %v7138_v28 }
0x15c4   :  { %5587 = vmatprep.mubr.msk.f32.mxu0 %vm245_vm3, %v7122_v62  ;;  %v1174_v62 = vld [vmem:[%s8161_s29 + $0x8] sm:$0xff]  ;;  %6305 = vmatpush3.bf16.msra.mxu0 %v7296_v24 }
0x15c5   :  { %v6293_v28 = vpack.c.bf16 %v1174_v62, %v1173_v39  ;;  %6306 = vmatprep.subr.bf16.mxu0 %v6831_v2 }
0x15c7   :  { %5588 = vmatmul.mubr.msk.f32.gmra.mrb[18].mxu0 %vm245_vm3, %v7105_v42  ;;  %6294 = vmatprep.subr.bf16.mxu1 %v6293_v28  ;;  %v1311_v42 = vld [vmem:[%s8164_s28] sm:$0xff] }
0x15c8   :  { %5590 = vmatprep.mubr.msk.f32.mxu0 %vm245_vm3, %v7088_v15  ;;  %6296 = vmatpush3.bf16.msra.mxu1 %v6293_v28  ;;  %v5012_v15 = vld [vmem:[%s8163_s2] ss:$0 sm:$0xff]  ;;  %v6298_v43 = vpack.c.bf16 %v1312_v12, %v1311_v42 }
0x15c9   :  { %6297 = vmatprep.subr.bf16.mxu1 %v6831_v2  ;;  %6308 = vmatpush3.bf16.msra.mxu0 %v7306_v23 }
0x15ca   :  { %6309 = vmatprep.subr.bf16.mxu0 %v6831_v2 }
0x15cb   :  { %5591 = vmatmul.mubr.msk.f32.gmra.mrb[20].mxu0 %vm245_vm3, %v7073_v54  ;;  %v1394_v54 = vld [vmem:[%s8162_s8] sm:$0xff] }
0x15cc   :  { %5642 = vmatprep.mubr.msk.f32.mxu0 %vm6832_vm2, %v6833_v10  ;;  %1396 = vrot.lane.b32.xlu0 %v1394_v54, %s6836_s23 }
0x15cd   :  { %6311 = vmatpush3.bf16.msra.mxu0 %v7316_v32 }
0x15ce   :  { %5664 = vmatprep.subr.mxu0 %v6833_v10 }
0x163e   :  { %v1397_v8 = vpop.permute.xlu0 %1396 }
0x1692   :  { %v5583_v40 = vpop.f32.mrb[14].mxu0 }
0x1693   :  { %v1134_v41 = vpop.f32.mrb[15].mxu0  ;;  %v1140_v44 = vadd.f32 %v5583_v40, %v5012_v15 }
0x1694   :  { %v1135_v31 = vadd.f32 %v5012_v15, %v1134_v41 }
0x1696   :  { %v5586_v45 = vpop.f32.mrb[16].mxu0  ;;  %5597 = vmatprep.mubr.msk.f32.mxu1 %vm1182_vm4, %v1135_v31 }
0x1697   :  { %v1144_v46 = vpop.f32.mrb[17].mxu0  ;;  %5598 = vmatmul.mubr.msk.f32.vlgmr.msra.gmra.mrb[10].mxu1 %vm1182_vm4, %v1140_v44  ;;  %v1150_v48 = vadd.f32 %v5586_v45, %v5012_v15  ;;  %v7337_v45 = vld [vmem:[%s8128_s19] sm:$0xf] }
0x1698   :  { %v1145_v47 = vadd.f32 %v5012_v15, %v1144_v46  ;;  %6299 = vmatpush3.bf16.msra.mxu1 %v6298_v43  ;;  %v1426_v46 = vld [vmem:[%s8129_s21] sm:$0xff] }
0x1699   :  { %5616 = vmatprep.subr.mxu1 %v6833_v10 }
0x169a   :  { %v5589_v49 = vpop.f32.mrb[18].mxu0  ;;  %5600 = vmatprep.mubr.msk.f32.mxu1 %vm1182_vm4, %v1145_v47  ;;  %v1427_v47 = vld [vmem:[%s8129_s21 + $0x8] sm:$0xff] }
0x169b   :  { %v1154_v26 = vpop.f32.mrb[19].mxu0  ;;  %5601 = vmatmul.mubr.msk.f32.gmra.mrb[12].mxu1 %vm1182_vm4, %v1150_v48  ;;  %v1160_v51 = vadd.f32 %v5589_v49, %v5012_v15  ;;  %v7355_v48 = vpack.c.bf16 %v1427_v47, %v1426_v46  ;;  %v1428_v49 = vld [vmem:[%s8129_s21 + $0x10] sm:$0xff] }
0x169c   :  { %v1155_v50 = vadd.f32 %v5012_v15, %v1154_v26  ;;  %v1429_v26 = vld [vmem:[%s8129_s21 + $0x18] sm:$0xff] }
0x169e   :  { %v5592_v52 = vpop.f32.mrb[20].mxu0  ;;  %5603 = vmatprep.mubr.msk.f32.mxu1 %vm1182_vm4, %v1155_v50  ;;  %v7365_v50 = vpack.c.bf16 %v1429_v26, %v1428_v49 }
0x169f   :  { %v1164_v53 = vpop.f32.mrb[21].mxu0  ;;  %5604 = vmatmul.mubr.msk.f32.gmra.mrb[14].mxu1 %vm1182_vm4, %v1160_v51  ;;  %v1170_v56 = vadd.f32 %v5592_v52, %v5012_v15  ;;  %v1430_v51 = vld [vmem:[%s8129_s21 + $0x20] sm:$0xff]  ;;  %v1431_v52 = vld [vmem:[%s8129_s21 + $0x28] sm:$0xff] }
0x16a0   :  { %v1165_v55 = vadd.f32 %v5012_v15, %v1164_v53  ;;  %v7375_v53 = vpack.c.bf16 %v1431_v52, %v1430_v51 }
0x16a2   :  { %5606 = vmatprep.mubr.msk.f32.mxu1 %vm1182_vm4, %v1165_v55  ;;  %v1415_v55 = vld [vmem:[%s8130_s17] sm:$0xff] }
0x16a3   :  { %5607 = vmatmul.mubr.msk.f32.gmra.mrb[16].mxu1 %vm1182_vm4, %v1170_v56  ;;  %v1416_v56 = vld [vmem:[%s8130_s17 + $0x8] sm:$0xff] }
0x16a4   :  { %5613 = vmatprep.mubr.msk.f32.mxu1 %vm6832_vm2, %v6833_v10 }
0x16a7   :  { %5614 = vmatmul.mubr.msk.f32.vlgmr.msra.gmra.mrb[18].mxu1 %vm1182_vm4, %v1135_v31 }
0x16a8   :  { %5618 = vmatprep.mubr.msk.f32.mxu1 %vm6832_vm2, %v6833_v10  ;;  %5617 = vmatpush3.msk.msra.mxu1 %vm1456_vm5, %v7238_v57 }
0x16a9   :  { %5621 = vmatprep.subr.mxu1 %v6833_v10 }
0x176e   :  { %v7243_v58 = vpop.f32.mrb[12].mxu1 }
0x176f   :  { %v7245_v59 = vpop.f32.mrb[13].mxu1 }
0x1772   :  { %v7247_v60 = vpop.f32.mrb[14].mxu1 }
0x1773   :  { %v7249_v61 = vpop.f32.mrb[15].mxu1 }
0x1776   :  { %v7251_v33 = vpop.f32.mrb[16].mxu1 }
0x1777   :  { %v7253_v63 = vpop.f32.mrb[17].mxu1 }
0x177a   :  { %v1386_v3 = vpop.f32.mrb[18].mxu1 }
0x177b   :  { %v1387_v4 = vadd.f32 %v5030_v0, %v1386_v3  ;;  %v5615_v5 = vpop.f32.mrb[19].mxu1  ;;  %v1432_v0 = vld [vmem:[%s8129_s21 + $0x30] sm:$0xff]  ;;  %v7388_v3 = vpack.c.bf16 %v1416_v56, %v1415_v55 }
0x177d   :  { %1391 = vst.msk [vmem:[%s8123_s25] sm:$0xff] %vm1390_vm6, %v1387_v4  ;;  %v1392_v6 = vmul.f32 1.442695, %v1387_v4 }
0x177f   :  { %6694 = vpow2.f32 %v1392_v6  ;;  %v1417_v6 = vld [vmem:[%s8130_s17 + $0x10] sm:$0xff] }
0x1789   :  { %v6695_v9 = vpop.eup %6694 }
0x178a   :  { %v1399_v19 = vmul.f32 %v6695_v9, %v1397_v8  ;;  %v1418_v8 = vld [vmem:[%s8130_s17 + $0x18] sm:$0xff]  ;;  %v1434_v9 = vld [vmem:[%s8129_s21 + $0x40] sm:$0xff] }
0x178c   :  { %1401 = vrot.lane.b32.xlu1 %v1399_v19, %s6837_s1  ;;  %v7408_v19 = vpack.c.bf16 %v1418_v8, %v1417_v6 }
0x17fe   :  { %v1402_v11 = vpop.permute.xlu1 %1401 }
0x17ff   :  { %v7262_v13 = vadd.f32 %v1402_v11, %v1387_v4  ;;  %v1433_v4 = vld [vmem:[%s8129_s21 + $0x38] sm:$0xff]  ;;  %v1435_v11 = vld [vmem:[%s8129_s21 + $0x48] sm:$0xff] }
0x1800   :  { %v7393_v5 = vpack.c.bf16 %v1433_v4, %v1432_v0  ;;  %v7413_v16 = vpack.c.bf16 %v1435_v11, %v1434_v9 }
0x1801   :  { %5619 = vmatmul.mubr.msk.f32.vlgmr.msra.gmra.mrb[20].mxu1 %vm1452_vm7, %v7262_v13 }
0x1802   :  { %5622 = vmatpush3.msk.msra.mxu1 %vm1456_vm5, %v7267_v14  ;;  %5623 = vmatprep.mubr.msk.f32.mxu1 %vm6832_vm2, %v6833_v10 }
0x1803   :  { %6312 = vmatprep.subr.bf16.mxu1 %v6831_v2 }
0x1805   :  { %5624 = vmatmul.mubr.msk.f32.vlgmr.msra.gmra.mrb[10].mxu1 %vm1452_vm7, %v7262_v13 }
0x1806   :  { %5661 = vmatprep.mubr.msk.f32.mxu1 %vm6832_vm2, %v6833_v10  ;;  %6314 = vmatpush3.bf16.msra.mxu1 %v7388_v3 }
0x1807   :  { %6315 = vmatprep.subr.bf16.mxu1 %v6831_v2 }
0x180a   :  { %6317 = vmatpush3.bf16.msra.mxu1 %v7408_v19 }
0x180b   :  { %6318 = vmatprep.subr.bf16.mxu1 %v6831_v2 }
0x180e   :  { %6320 = vmatpush3.bf16.msra.mxu1 %v7428_v25 }
0x180f   :  { %6321 = vmatprep.subr.bf16.mxu1 %v6831_v2 }
0x18d4   :  { %v1526_v34 = vpop.f32.mrb[20].mxu1 }
0x18d5   :  { %v1527_v35 = vadd.f32 %v7323_v21, %v1526_v34  ;;  %v5620_v36 = vpop.f32.mrb[21].mxu1  ;;  %v1422_v34 = vld [vmem:[%s8130_s17 + $0x38] sm:$0xff] }
0x18d6   :  { %v7448_v36 = vpack.c.bf16 %v1422_v34, %v1421_v30 }
0x18d7   :  { %v1530_v7 = vsub.f32 %v6979_v1, %v1527_v35  ;;  %v1438_v35 = vld [vmem:[%s8129_s21 + $0x60] sm:$0xff] }
0x18d8   :  { %v1604_v38 = vpop.f32.mrb[10].mxu1  ;;  %6323 = vmatpush3.bf16.msra.mxu1 %v7448_v36 }
0x18d9   :  { %v6636_v39 = vadd.f32 %v7330_v37, %v1604_v38  ;;  %v5625_v62 = vpop.f32.mrb[11].mxu1  ;;  %v1531_v28 = vmul.f32 %v1530_v7, %v1530_v7  ;;  %v1439_v7 = vld [vmem:[%s8129_s21 + $0x68] sm:$0xff]  ;;  %5704 = vmatprep.subr.mxu1 %v6833_v10 }
0x18da   :  { %v7453_v38 = vpack.c.bf16 %v1439_v7, %v1438_v35  ;;  %v1441_v62 = vld [vmem:[%s8129_s21 + $0x78] sm:$0xff]  ;;  %v7501_v35 = vld [vmem:[%s8134_s22] ss:$0 sm:$0xff] }
0x18db   :  { %v1609_v54 = vand.u32 2147483647, %v6636_v39  ;;  %v1532_v15 = vsel %vm105_vm1, %v1531_v28, 0.0  ;;  %v1608_v31 = vmax.f32 %v6636_v39, 0.0  ;;  %v1440_v39 = vld [vmem:[%s8129_s21 + $0x70] sm:$0xff] }
0x18dc   :  { %1533 = vadd.xlane.f32.xlu0 %v1532_v15  ;;  %v7465_v28 = vpack.c.bf16 %v1441_v62, %v1440_v39 }
0x18dd   :  { %v1610_v42 = vsub.f32 0.0, %v1609_v54  ;;  %v7472_v54 = vld [vmem:[%s8131_s16] ss:$0 sm:$0xff] }
0x18df   :  { %v1611_v12 = vmul.f32 1.442695, %v1610_v42 }
0x18e1   :  { %6696 = vpow2.f32 %v1611_v12 }
0x18eb   :  { %v6697_v40 = vpop.eup %6696 }
0x18ec   :  { %v1613_v41 = vadd.f32 1.0, %v6697_v40  ;;  %v7478_v40 = vld [vmem:[%s8132_s20] ss:$0 sm:$0xff] }
0x18ee   :  { %6698 = vlog2.f32 %v1613_v41 }
0x18f8   :  { %v6699_v1 = vpop.eup %6698 }
0x18f9   :  { %v1615_v43 = vmul.f32 0.6931472, %v6699_v1 }
0x18fb   :  { %v1616_v44 = vadd.f32 %v1615_v43, %v1608_v31 }
0x18fd   :  { %5643 = vmatmul.mubr.msk.f32.vlgmr.msra.gmra.mrb[22].mxu0 %vm1623_vm8, %v1616_v44 }
0x18fe   :  { %5665 = vmatpush3.msk.msra.mxu0 %vm1456_vm5, %v7337_v45  ;;  %5666 = vmatprep.mubr.msk.f32.mxu0 %vm6832_vm2, %v6833_v10 }
0x18ff   :  { %6324 = vmatprep.subr.bf16.mxu0 %v6831_v2 }
0x1901   :  { %5667 = vmatmul.mubr.msk.f32.vlgmr.msra.gmra.mrb[24].mxu0 %vm1452_vm7, %v7262_v13 }
0x1902   :  { %5701 = vmatprep.mubr.msk.f32.mxu0 %vm6832_vm2, %v6833_v10  ;;  %6326 = vmatpush3.bf16.msra.mxu0 %v7355_v48 }
0x1903   :  { %6327 = vmatprep.subr.bf16.mxu0 %v6831_v2 }
0x1906   :  { %6329 = vmatpush3.bf16.msra.mxu0 %v7365_v50 }
0x1907   :  { %6330 = vmatprep.subr.bf16.mxu0 %v6831_v2 }
0x190a   :  { %6332 = vmatpush3.bf16.msra.mxu0 %v7375_v53 }
0x190b   :  { %6333 = vmatprep.subr.bf16.mxu0 %v6831_v2 }
0x190e   :  { %6335 = vmatpush3.bf16.msra.mxu0 %v7393_v5 }
0x190f   :  { %6336 = vmatprep.subr.bf16.mxu0 %v6831_v2 }
0x1912   :  { %6338 = vmatpush3.bf16.msra.mxu0 %v7413_v16 }
0x1913   :  { %6339 = vmatprep.subr.bf16.mxu0 %v6831_v2 }
0x1916   :  { %6341 = vmatpush3.bf16.msra.mxu0 %v7433_v29 }
0x1917   :  { %6342 = vmatprep.subr.bf16.mxu0 %v6831_v2 }
0x191a   :  { %6344 = vmatpush3.bf16.msra.mxu0 %v7453_v38 }
0x191b   :  { %6345 = vmatprep.subr.bf16.mxu0 %v6831_v2 }
0x191e   :  { %6347 = vmatpush3.bf16.msra.mxu0 %v7465_v28 }
0x191f   :  { %5752 = vmatprep.subr.mxu0 %v6833_v10 }
0x19d0   :  { %v1693_v15 = vpop.f32.mrb[22].mxu0 }
0x19d1   :  { %v1694_v42 = vadd.f32 %v7472_v54, %v1693_v15  ;;  %v5644_v12 = vpop.f32.mrb[23].mxu0 }
0x19d3   :  { %v1698_v41 = vand.u32 2147483647, %v1694_v42  ;;  %v1697_v4 = vmax.f32 %v1694_v42, 0.0 }
0x19d4   :  { %v1860_v1 = vpop.f32.mrb[24].mxu0 }
0x19d5   :  { %v1699_v31 = vsub.f32 0.0, %v1698_v41  ;;  %v1861_v43 = vadd.f32 %v7478_v40, %v1860_v1  ;;  %v5668_v44 = vpop.f32.mrb[25].mxu0  ;;  %v7508_v1 = vstv %s8135_s0 }
0x19d7   :  { %v1700_v46 = vmul.f32 1.442695, %v1699_v31  ;;  %v1865_v47 = vand.u32 2147483647, %v1861_v43  ;;  %v1864_v11 = vmax.f32 %v1861_v43, 0.0  ;;  %v1970_v43 = vld [vmem:[%s8136_s3] sm:$0xff] }
0x19d9   :  { %6700 = vpow2.f32 %v1700_v46  ;;  %v1866_v49 = vsub.f32 0.0, %v1865_v47 }
0x19db   :  { %v1867_v26 = vmul.f32 1.442695, %v1866_v49 }
0x19dd   :  { %6702 = vpow2.f32 %v1867_v26 }
0x19e3   :  { %v6701_v51 = vpop.eup %6700 }
0x19e4   :  { %v1702_v52 = vadd.f32 1.0, %v6701_v51 }
0x19e6   :  { %6704 = vlog2.f32 %v1702_v52 }
0x19e7   :  { %v6703_v55 = vpop.eup %6702 }
0x19e8   :  { %v1869_v56 = vadd.f32 1.0, %v6703_v55 }
0x19ea   :  { %6706 = vlog2.f32 %v1869_v56 }
0x19f0   :  { %v6705_v0 = vpop.eup %6704 }
0x19f1   :  { %v1704_v6 = vmul.f32 0.6931472, %v6705_v0  ;;  %v5045_v0 = vld [vmem:[%s8156_s7 + $0x8] sm:$0xff] }
0x19f3   :  { %v1705_v8 = vadd.f32 %v1704_v6, %v1697_v4 }
0x19f4   :  { %v6707_v9 = vpop.eup %6706 }
0x19f5   :  { %v1871_v17 = vmul.f32 0.6931472, %v6707_v9  ;;  %5662 = vmatmul.mubr.msk.f32.vlgmr.msra.gmra.mrb[22].mxu1 %vm1623_vm8, %v1705_v8 }
0x19f6   :  { %5705 = vmatpush3.msk.msra.mxu1 %vm1456_vm5, %v7238_v57  ;;  %5706 = vmatprep.mubr.msk.f32.mxu1 %vm6832_vm2, %v6833_v10 }
0x19f7   :  { %v1872_v20 = vadd.f32 %v1871_v17, %v1864_v11  ;;  %5709 = vmatprep.subr.mxu1 %v6833_v10 }
0x19f9   :  { %5702 = vmatmul.mubr.f32.vlgmr.msra.gmra.mrb[26].mxu0 %v1872_v20  ;;  %v1283_v20 = vadd.f32 %v7330_v37, %v7245_v59 }
0x19fa   :  { %5753 = vmatpush3.msk.msra.mxu0 %vm1456_vm5, %v7337_v45  ;;  %5754 = vmatprep.mubr.msk.f32.mxu0 %vm6832_vm2, %v6833_v10 }
0x19fb   :  { %6372 = vmatprep.subr.bf16.mxu0 %v6831_v2 }
0x1ac8   :  { %v1781_v27 = vpop.f32.mrb[22].mxu1 }
0x1ac9   :  { %v1782_v30 = vadd.f32 %v7495_v22, %v1781_v27  ;;  %v5663_v34 = vpop.f32.mrb[23].mxu1 }
0x1acb   :  { %1956 = vrot.lane.b32.xlu1 %v1782_v30, %s6837_s1  ;;  %v1968_v31 = vmul.f32 %v7508_v1, %v1782_v30 }
0x1acc   :  { %v1945_v7 = vpop.f32.mrb[26].mxu0 }
0x1acd   :  { %v1946_v39 = vadd.f32 %v7501_v35, %v1945_v7  ;;  %v5703_v62 = vpop.f32.mrb[27].mxu0  ;;  %v1969_v46 = vadd.f32 %v1968_v31, %v7262_v13 }
0x1acf   :  { %v1949_v15 = vsub.f32 0.0, %v1946_v39 }
0x1ad1   :  { %v1950_v42 = vmul.f32 1.442695, %v1949_v15 }
0x1ad3   :  { %6708 = vpow2.f32 %v1950_v42 }
0x1add   :  { %v6709_v12 = vpop.eup %6708 }
0x1ade   :  { %v1952_v41 = vadd.f32 1.0, %v6709_v12 }
0x1ae0   :  { %6710 = vrcp.f32 %v1952_v41 }
0x1aea   :  { %v6711_v44 = vpop.eup %6710 }
0x1aeb   :  { %v1971_v47 = vmul.f32 %v6711_v44, %v1970_v43  ;;  %6712 = vrcp.f32 %v6711_v44 }
0x1aed   :  { %v7515_v49 = vadd.f32 %v1971_v47, %v1969_v46 }
0x1aef   :  { %5707 = vmatmul.mubr.msk.f32.vlgmr.msra.gmra.mrb[24].mxu1 %vm1452_vm7, %v7515_v49  ;;  %5755 = vmatmul.mubr.msk.f32.vlgmr.msra.gmra.mrb[28].mxu0 %vm1452_vm7, %v7515_v49 }
0x1af0   :  { %5710 = vmatpush3.msk.msra.mxu1 %vm1456_vm5, %v7267_v14  ;;  %5711 = vmatprep.mubr.msk.f32.mxu1 %vm6832_vm2, %v6833_v10 }
0x1af1   :  { %6374 = vmatpush3.bf16.msra.mxu0 %v7355_v48  ;;  %6348 = vmatprep.subr.bf16.mxu1 %v6831_v2 }
0x1af2   :  { %6375 = vmatprep.subr.bf16.mxu0 %v6831_v2  ;;  %5789 = vmatprep.mubr.msk.f32.mxu0 %vm6832_vm2, %v6833_v10 }
0x1af3   :  { %5712 = vmatmul.mubr.msk.f32.vlgmr.msra.gmra.mrb[26].mxu1 %vm1452_vm7, %v7515_v49 }
0x1af4   :  { %6350 = vmatpush3.bf16.msra.mxu1 %v7286_v18  ;;  %5730 = vmatprep.mubr.msk.f32.mxu1 %vm6832_vm2, %v6833_v10 }
0x1af5   :  { %6377 = vmatpush3.bf16.msra.mxu0 %v7365_v50  ;;  %6351 = vmatprep.subr.bf16.mxu1 %v6831_v2  ;;  %v6713_v51 = vpop.eup %6712 }
0x1af6   :  { %6378 = vmatprep.subr.bf16.mxu0 %v6831_v2 }
0x1af8   :  { %6353 = vmatpush3.bf16.msra.mxu1 %v7296_v24 }
0x1af9   :  { %6380 = vmatpush3.bf16.msra.mxu0 %v7375_v53  ;;  %6354 = vmatprep.subr.bf16.mxu1 %v6831_v2 }
0x1afa   :  { %6381 = vmatprep.subr.bf16.mxu0 %v6831_v2 }
0x1afc   :  { %6356 = vmatpush3.bf16.msra.mxu1 %v7306_v23 }
0x1afd   :  { %6383 = vmatpush3.bf16.msra.mxu0 %v7393_v5  ;;  %6357 = vmatprep.subr.bf16.mxu1 %v6831_v2 }
0x1afe   :  { %6384 = vmatprep.subr.bf16.mxu0 %v6831_v2 }
0x1b00   :  { %6359 = vmatpush3.bf16.msra.mxu1 %v7316_v32 }
0x1b01   :  { %6386 = vmatpush3.bf16.msra.mxu0 %v7413_v16  ;;  %6360 = vmatprep.subr.bf16.mxu1 %v6831_v2 }
0x1b02   :  { %6387 = vmatprep.subr.bf16.mxu0 %v6831_v2 }
0x1b05   :  { %6389 = vmatpush3.bf16.msra.mxu0 %v7433_v29 }
0x1b06   :  { %6390 = vmatprep.subr.bf16.mxu0 %v6831_v2 }
0x1b09   :  { %6392 = vmatpush3.bf16.msra.mxu0 %v7453_v38 }
0x1b0a   :  { %6393 = vmatprep.subr.bf16.mxu0 %v6831_v2 }
0x1b0d   :  { %6395 = vmatpush3.bf16.msra.mxu0 %v7465_v28 }
0x1b0e   :  { %5840 = vmatprep.subr.mxu0 %v6833_v10 }
0x1b3d   :  { %v1957_v13 = vpop.permute.xlu1 %1956 }
0x1b3e   :  { %v1959_v26 = vsub.f32 %v1782_v30, %v1957_v13 }
0x1b40   :  { %v1961_v52 = vmul.f32 %v6713_v51, %v1959_v26 }
0x1b42   :  { %v1962_v55 = vmul.f32 %v1961_v52, %v1961_v52 }
0x1b44   :  { %v1963_v56 = vsel %vm1452_vm7, %v1962_v55, 0.0 }
0x1b45   :  { %1964 = vadd.xlane.f32.xlu1 %v1963_v56 }
0x1bc2   :  { %v2044_v4 = vpop.f32.mrb[24].mxu1  ;;  %v2354_v6 = vpop.f32.mrb[28].mxu0 }
0x1bc3   :  { %v2045_v8 = vadd.f32 %v7323_v21, %v2044_v4  ;;  %v2355_v9 = vadd.f32 %v7478_v40, %v2354_v6  ;;  %v5708_v11 = vpop.f32.mrb[25].mxu1  ;;  %v5756_v17 = vpop.f32.mrb[29].mxu0 }
0x1bc5   :  { %v2048_v27 = vsub.f32 %v5045_v0, %v2045_v8  ;;  %v2359_v30 = vand.u32 2147483647, %v2355_v9  ;;  %v2358_v13 = vmax.f32 %v2355_v9, 0.0 }
0x1bc6   :  { %v2120_v34 = vpop.f32.mrb[26].mxu1 }
0x1bc7   :  { %v2360_v7 = vsub.f32 0.0, %v2359_v30  ;;  %v2121_v39 = vadd.f32 %v2120_v34, %v1283_v20  ;;  %v5713_v62 = vpop.f32.mrb[27].mxu1  ;;  %v2049_v15 = vmul.f32 %v2048_v27, %v2048_v27 }
0x1bc9   :  { %v2361_v42 = vmul.f32 1.442695, %v2360_v7  ;;  %v2125_v12 = vand.u32 2147483647, %v2121_v39  ;;  %v2050_v41 = vsel %vm105_vm1, %v2049_v15, 0.0  ;;  %v2124_v55 = vmax.f32 %v2121_v39, 0.0 }
0x1bca   :  { %2051 = vadd.xlane.f32.xlu0 %v2050_v41 }
0x1bcb   :  { %6714 = vpow2.f32 %v2361_v42  ;;  %v2126_v21 = vsub.f32 0.0, %v2125_v12 }
0x1bcd   :  { %v2127_v31 = vmul.f32 1.442695, %v2126_v21 }
0x1bcf   :  { %6716 = vpow2.f32 %v2127_v31 }
0x1bd5   :  { %v6715_v43 = vpop.eup %6714 }
0x1bd6   :  { %v2363_v44 = vadd.f32 1.0, %v6715_v43 }
0x1bd8   :  { %6718 = vlog2.f32 %v2363_v44 }
0x1bd9   :  { %v6717_v59 = vpop.eup %6716 }
0x1bda   :  { %v2129_v46 = vadd.f32 1.0, %v6717_v59 }
0x1bdc   :  { %6720 = vlog2.f32 %v2129_v46 }
0x1be2   :  { %v6719_v47 = vpop.eup %6718 }
0x1be3   :  { %v2365_v26 = vmul.f32 0.6931472, %v6719_v47  ;;  %v5054_v47 = vld [vmem:[%s8136_s3 + $0x8] sm:$0xff] }
0x1be5   :  { %v2366_v51 = vadd.f32 %v2365_v26, %v2358_v13 }
0x1be6   :  { %v6721_v52 = vpop.eup %6720 }
0x1be7   :  { %v2131_v56 = vmul.f32 0.6931472, %v6721_v52  ;;  %5790 = vmatmul.mubr.f32.vlgmr.msra.gmra.mrb[30].mxu0 %v2366_v51 }
0x1be8   :  { %5841 = vmatpush3.msk.msra.mxu0 %vm1456_vm5, %v7337_v45  ;;  %5842 = vmatprep.mubr.msk.f32.mxu0 %vm6832_vm2, %v6833_v10 }
0x1be9   :  { %v2132_v0 = vadd.f32 %v2131_v56, %v2124_v55  ;;  %6420 = vmatprep.subr.bf16.mxu0 %v6831_v2 }
0x1beb   :  { %5731 = vmatmul.mubr.msk.f32.vlgmr.msra.gmra.mrb[28].mxu1 %vm1623_vm8, %v2132_v0 }
0x1bec   :  { %6362 = vmatpush3.bf16.msra.mxu1 %v7388_v3  ;;  %5749 = vmatprep.mubr.msk.f32.mxu1 %vm6832_vm2, %v6833_v10 }
0x1bed   :  { %6363 = vmatprep.subr.bf16.mxu1 %v6831_v2 }
0x1bf0   :  { %6365 = vmatpush3.bf16.msra.mxu1 %v7408_v19 }
0x1bf1   :  { %6366 = vmatprep.subr.bf16.mxu1 %v6831_v2 }
0x1bf4   :  { %6368 = vmatpush3.bf16.msra.mxu1 %v7428_v25 }
0x1bf5   :  { %6369 = vmatprep.subr.bf16.mxu1 %v6831_v2 }
0x1bf8   :  { %6371 = vmatpush3.bf16.msra.mxu1 %v7448_v36 }
0x1bf9   :  { %5792 = vmatprep.subr.mxu1 %v6833_v10 }
0x1cba   :  { %v2433_v4 = vpop.f32.mrb[30].mxu0 }
0x1cbb   :  { %v5791_v6 = vpop.f32.mrb[31].mxu0  ;;  %v2434_v42 = vadd.f32 %v7501_v35, %v2433_v4 }
0x1cbd   :  { %v2437_v12 = vsub.f32 0.0, %v2434_v42 }
0x1cbe   :  { %v2202_v8 = vpop.f32.mrb[28].mxu1 }
0x1cbf   :  { %v2203_v9 = vadd.f32 %v7472_v54, %v2202_v8  ;;  %v5732_v11 = vpop.f32.mrb[29].mxu1  ;;  %v2438_v41 = vmul.f32 1.442695, %v2437_v12 }
0x1cc1   :  { %v2207_v17 = vand.u32 2147483647, %v2203_v9  ;;  %v2206_v39 = vmax.f32 %v2203_v9, 0.0 }
0x1cc3   :  { %v2208_v20 = vsub.f32 0.0, %v2207_v17 }
0x1cc5   :  { %v2209_v27 = vmul.f32 1.442695, %v2208_v20 }
0x1cc7   :  { %6722 = vpow2.f32 %v2209_v27 }
0x1cd1   :  { %v6723_v30 = vpop.eup %6722 }
0x1cd2   :  { %v2211_v34 = vadd.f32 1.0, %v6723_v30 }
0x1cd4   :  { %6724 = vlog2.f32 %v2211_v34  ;;  %v1288_v34 = vadd.f32 %v7243_v58, %v7330_v37 }
0x1cd5   :  { %6726 = vpow2.f32 %v2438_v41 }
0x1cde   :  { %v6725_v7 = vpop.eup %6724 }
0x1cdf   :  { %v2213_v62 = vmul.f32 0.6931472, %v6725_v7  ;;  %v6727_v21 = vpop.eup %6726 }
0x1ce0   :  { %v2440_v31 = vadd.f32 1.0, %v6727_v21 }
0x1ce1   :  { %v2214_v15 = vadd.f32 %v2213_v62, %v2206_v39 }
0x1ce2   :  { %6728 = vrcp.f32 %v2440_v31 }
0x1ce3   :  { %5750 = vmatmul.mubr.msk.f32.vlgmr.msra.gmra.mrb[30].mxu1 %vm1623_vm8, %v2214_v15 }
0x1ce4   :  { %5793 = vmatpush3.msk.msra.mxu1 %vm1456_vm5, %v7238_v57  ;;  %5794 = vmatprep.mubr.msk.f32.mxu1 %vm6832_vm2, %v6833_v10 }
0x1ce5   :  { %5797 = vmatprep.subr.mxu1 %v6833_v10 }
0x1cec   :  { %v6729_v46 = vpop.eup %6728 }
0x1ced   :  { %v2459_v51 = vmul.f32 %v6729_v46, %v5054_v47  ;;  %6730 = vrcp.f32 %v6729_v46 }
0x1cf7   :  { %v6731_v4 = vpop.eup %6730 }
0x1db6   :  { %v2284_v43 = vpop.f32.mrb[30].mxu1 }
0x1db7   :  { %v2285_v44 = vadd.f32 %v7495_v22, %v2284_v43  ;;  %v5751_v59 = vpop.f32.mrb[31].mxu1 }
0x1db9   :  { %v2455_v13 = vmul.f32 %v2285_v44, %v7508_v1  ;;  %2444 = vrot.lane.b32.xlu0 %v2285_v44, %s6837_s1 }
0x1dbb   :  { %v2456_v26 = vadd.f32 %v2455_v13, %v7515_v49  ;;  %v7637_v49 = vpop.xlane.xlu0 %1533 }
0x1dbd   :  { %v7596_v52 = vadd.f32 %v2459_v51, %v2456_v26 }
0x1dbf   :  { %5795 = vmatmul.mubr.msk.f32.vlgmr.msra.gmra.mrb[32].mxu1 %vm1452_vm7, %v7596_v52  ;;  %5843 = vmatmul.mubr.msk.f32.vlgmr.msra.gmra.mrb[32].mxu0 %vm1452_vm7, %v7596_v52  ;;  %v7639_v55 = vpop.xlane.xlu0 %2051 }
0x1dc0   :  { %5798 = vmatpush3.msk.msra.mxu1 %vm1456_vm5, %v7267_v14  ;;  %5799 = vmatprep.mubr.msk.f32.mxu1 %vm6832_vm2, %v6833_v10 }
0x1dc1   :  { %6422 = vmatpush3.bf16.msra.mxu0 %v7355_v48  ;;  %6396 = vmatprep.subr.bf16.mxu1 %v6831_v2 }
0x1dc2   :  { %6423 = vmatprep.subr.bf16.mxu0 %v6831_v2  ;;  %5877 = vmatprep.mubr.msk.f32.mxu0 %vm6832_vm2, %v6833_v10 }
0x1dc3   :  { %5800 = vmatmul.mubr.msk.f32.vlgmr.msra.gmra.mrb[34].mxu1 %vm1452_vm7, %v7596_v52 }
0x1dc4   :  { %6398 = vmatpush3.bf16.msra.mxu1 %v7286_v18  ;;  %5818 = vmatprep.mubr.msk.f32.mxu1 %vm6832_vm2, %v6833_v10 }
0x1dc5   :  { %6425 = vmatpush3.bf16.msra.mxu0 %v7365_v50  ;;  %6399 = vmatprep.subr.bf16.mxu1 %v6831_v2 }
0x1dc6   :  { %6426 = vmatprep.subr.bf16.mxu0 %v6831_v2 }
0x1dc8   :  { %6401 = vmatpush3.bf16.msra.mxu1 %v7296_v24 }
0x1dc9   :  { %6428 = vmatpush3.bf16.msra.mxu0 %v7375_v53  ;;  %6402 = vmatprep.subr.bf16.mxu1 %v6831_v2 }
0x1dca   :  { %6429 = vmatprep.subr.bf16.mxu0 %v6831_v2 }
0x1dcc   :  { %6404 = vmatpush3.bf16.msra.mxu1 %v7306_v23 }
0x1dcd   :  { %6431 = vmatpush3.bf16.msra.mxu0 %v7393_v5  ;;  %6405 = vmatprep.subr.bf16.mxu1 %v6831_v2 }
0x1dce   :  { %6432 = vmatprep.subr.bf16.mxu0 %v6831_v2 }
0x1dd0   :  { %6407 = vmatpush3.bf16.msra.mxu1 %v7316_v32 }
0x1dd1   :  { %6434 = vmatpush3.bf16.msra.mxu0 %v7413_v16  ;;  %6408 = vmatprep.subr.bf16.mxu1 %v6831_v2 }
0x1dd2   :  { %6435 = vmatprep.subr.bf16.mxu0 %v6831_v2 }
0x1dd5   :  { %6437 = vmatpush3.bf16.msra.mxu0 %v7433_v29 }
0x1dd6   :  { %6438 = vmatprep.subr.bf16.mxu0 %v6831_v2 }
0x1dd9   :  { %6440 = vmatpush3.bf16.msra.mxu0 %v7453_v38 }
0x1dda   :  { %6441 = vmatprep.subr.bf16.mxu0 %v6831_v2 }
0x1ddd   :  { %6443 = vmatpush3.bf16.msra.mxu0 %v7465_v28 }
0x1dde   :  { %6456 = vmatprep.subr.bf16.mxu0 %v6831_v2 }
0x1e2b   :  { %v2445_v56 = vpop.permute.xlu0 %2444 }
0x1e2c   :  { %v2447_v0 = vsub.f32 %v2285_v44, %v2445_v56 }
0x1e2e   :  { %v2449_v6 = vmul.f32 %v6731_v4, %v2447_v0 }
0x1e30   :  { %v2450_v8 = vmul.f32 %v2449_v6, %v2449_v6 }
0x1e32   :  { %v2451_v9 = vsel %vm1452_vm7, %v2450_v8, 0.0 }
0x1e33   :  { %2452 = vadd.xlane.f32.xlu1 %v2451_v9 }
0x1e92   :  { %v7642_v11 = vpop.f32.mrb[32].mxu1  ;;  %v2842_v17 = vpop.f32.mrb[32].mxu0 }
0x1e93   :  { %v2843_v20 = vadd.f32 %v7478_v40, %v2842_v17  ;;  %v5796_v27 = vpop.f32.mrb[33].mxu1  ;;  %v5844_v30 = vpop.f32.mrb[33].mxu0 }
0x1e95   :  { %v2847_v7 = vand.u32 2147483647, %v2843_v20  ;;  %v2846_v13 = vmax.f32 %v2843_v20, 0.0 }
0x1e96   :  { %v2608_v39 = vpop.f32.mrb[34].mxu1 }
0x1e97   :  { %v2848_v62 = vsub.f32 0.0, %v2847_v7  ;;  %v2609_v15 = vadd.f32 %v2608_v39, %v1288_v34  ;;  %v5801_v42 = vpop.f32.mrb[35].mxu1 }
0x1e99   :  { %v2849_v12 = vmul.f32 1.442695, %v2848_v62  ;;  %v2613_v41 = vand.u32 2147483647, %v2609_v15  ;;  %v2612_v56 = vmax.f32 %v2609_v15, 0.0 }
0x1e9b   :  { %6732 = vpow2.f32 %v2849_v12  ;;  %v2614_v21 = vsub.f32 0.0, %v2613_v41 }
0x1e9d   :  { %v2615_v31 = vmul.f32 1.442695, %v2614_v21 }
0x1e9f   :  { %6734 = vpow2.f32 %v2615_v31 }
0x1ea5   :  { %v6733_v43 = vpop.eup %6732 }
0x1ea6   :  { %v2851_v44 = vadd.f32 1.0, %v6733_v43 }
0x1ea8   :  { %6736 = vlog2.f32 %v2851_v44 }
0x1ea9   :  { %v6735_v59 = vpop.eup %6734 }
0x1eaa   :  { %v2617_v46 = vadd.f32 1.0, %v6735_v59 }
0x1eac   :  { %6738 = vlog2.f32 %v2617_v46 }
0x1eb2   :  { %v6737_v47 = vpop.eup %6736 }
0x1eb3   :  { %v2853_v58 = vmul.f32 0.6931472, %v6737_v47 }
0x1eb5   :  { %v2854_v26 = vadd.f32 %v2853_v58, %v2846_v13 }
0x1eb6   :  { %v6739_v51 = vpop.eup %6738 }
0x1eb7   :  { %v2619_v0 = vmul.f32 0.6931472, %v6739_v51  ;;  %5878 = vmatmul.mubr.f32.vlgmr.msra.gmra.mrb[34].mxu0 %v2854_v26 }
0x1eb8   :  { %6458 = vmatpush3.bf16.msra.mxu0 %v7388_v3  ;;  %5925 = vmatprep.mubr.msk.f32.mxu0 %vm6832_vm2, %v6833_v10 }
0x1eb9   :  { %v2620_v4 = vadd.f32 %v2619_v0, %v2612_v56  ;;  %6459 = vmatprep.subr.bf16.mxu0 %v6831_v2  ;;  %v1293_v0 = vadd.f32 %v7330_v37, %v7249_v61 }
0x1ebb   :  { %5819 = vmatmul.mubr.msk.f32.vlgmr.msra.gmra.mrb[36].mxu1 %vm1623_vm8, %v2620_v4 }
0x1ebc   :  { %6410 = vmatpush3.bf16.msra.mxu1 %v7388_v3  ;;  %5837 = vmatprep.mubr.msk.f32.mxu1 %vm6832_vm2, %v6833_v10 }
0x1ebd   :  { %6411 = vmatprep.subr.bf16.mxu1 %v6831_v2  ;;  %6461 = vmatpush3.bf16.msra.mxu0 %v7408_v19 }
0x1ebe   :  { %6462 = vmatprep.subr.bf16.mxu0 %v6831_v2 }
0x1ec0   :  { %6413 = vmatpush3.bf16.msra.mxu1 %v7408_v19 }
0x1ec1   :  { %6414 = vmatprep.subr.bf16.mxu1 %v6831_v2  ;;  %6464 = vmatpush3.bf16.msra.mxu0 %v7428_v25 }
0x1ec2   :  { %6465 = vmatprep.subr.bf16.mxu0 %v6831_v2 }
0x1ec4   :  { %6416 = vmatpush3.bf16.msra.mxu1 %v7428_v25 }
0x1ec5   :  { %6417 = vmatprep.subr.bf16.mxu1 %v6831_v2  ;;  %6467 = vmatpush3.bf16.msra.mxu0 %v7448_v36 }
0x1ec6   :  { %5968 = vmatprep.subr.mxu0 %v6833_v10 }
0x1ec8   :  { %6419 = vmatpush3.bf16.msra.mxu1 %v7448_v36 }
0x1ec9   :  { %5880 = vmatprep.subr.mxu1 %v6833_v10 }
0x1f8a   :  { %v2921_v6 = vpop.f32.mrb[34].mxu0 }
0x1f8b   :  { %v5879_v8 = vpop.f32.mrb[35].mxu0  ;;  %v2922_v41 = vadd.f32 %v7501_v35, %v2921_v6 }
0x1f8d   :  { %v2925_v21 = vsub.f32 0.0, %v2922_v41 }
0x1f8e   :  { %v2690_v9 = vpop.f32.mrb[36].mxu1 }
0x1f8f   :  { %v2691_v17 = vadd.f32 %v7472_v54, %v2690_v9  ;;  %v5820_v20 = vpop.f32.mrb[37].mxu1  ;;  %v2926_v31 = vmul.f32 1.442695, %v2925_v21 }
0x1f91   :  { %v2695_v27 = vand.u32 2147483647, %v2691_v17  ;;  %v2694_v15 = vmax.f32 %v2691_v17, 0.0 }
0x1f93   :  { %v2696_v30 = vsub.f32 0.0, %v2695_v27 }
0x1f95   :  { %v2697_v34 = vmul.f32 1.442695, %v2696_v30 }
0x1f97   :  { %6740 = vpow2.f32 %v2697_v34 }
0x1fa1   :  { %v6741_v7 = vpop.eup %6740 }
0x1fa2   :  { %v2699_v39 = vadd.f32 1.0, %v6741_v7 }
0x1fa4   :  { %6742 = vlog2.f32 %v2699_v39 }
0x1fa5   :  { %6744 = vpow2.f32 %v2926_v31 }
0x1fae   :  { %v6743_v62 = vpop.eup %6742 }
0x1faf   :  { %v2701_v42 = vmul.f32 0.6931472, %v6743_v62  ;;  %v6745_v43 = vpop.eup %6744 }
0x1fb0   :  { %v2928_v44 = vadd.f32 1.0, %v6745_v43 }
0x1fb1   :  { %v2702_v12 = vadd.f32 %v2701_v42, %v2694_v15 }
0x1fb2   :  { %6746 = vrcp.f32 %v2928_v44 }
0x1fb3   :  { %5838 = vmatmul.mubr.msk.f32.vlgmr.msra.gmra.mrb[38].mxu1 %vm1623_vm8, %v2702_v12 }
0x1fb4   :  { %5881 = vmatpush3.msk.msra.mxu1 %vm1456_vm5, %v7238_v57  ;;  %5882 = vmatprep.mubr.msk.f32.mxu1 %vm6832_vm2, %v6833_v10  ;;  %v5064_v57 = vld [vmem:[%s8136_s3 + $0x10] sm:$0xff] }
0x1fb5   :  { %5885 = vmatprep.subr.mxu1 %v6833_v10 }
0x1fbc   :  { %v7679_v13 = vpop.eup %6746 }
0x1fbd   :  { %v2947_v51 = vmul.f32 %v7679_v13, %v5064_v57 }
0x2086   :  { %v2772_v59 = vpop.f32.mrb[38].mxu1 }
0x2087   :  { %v7677_v46 = vadd.f32 %v7495_v22, %v2772_v59  ;;  %v5839_v47 = vpop.f32.mrb[39].mxu1 }
0x2089   :  { %v2943_v58 = vmul.f32 %v7677_v46, %v7508_v1  ;;  %2932 = vrot.lane.b32.xlu1 %v7677_v46, %s6837_s1 }
0x208b   :  { %v2944_v26 = vadd.f32 %v2943_v58, %v7596_v52 }
0x208d   :  { %v7690_v56 = vadd.f32 %v2947_v51, %v2944_v26 }
0x208f   :  { %5883 = vmatmul.mubr.msk.f32.vlgmr.msra.gmra.mrb[40].mxu1 %vm1452_vm7, %v7690_v56 }
0x2090   :  { %5886 = vmatpush3.msk.msra.mxu1 %vm1456_vm5, %v7267_v14  ;;  %5887 = vmatprep.mubr.msk.f32.mxu1 %vm6832_vm2, %v6833_v10 }
0x2091   :  { %6444 = vmatprep.subr.bf16.mxu1 %v6831_v2 }
0x2093   :  { %5888 = vmatmul.mubr.msk.f32.vlgmr.msra.gmra.mrb[42].mxu1 %vm1452_vm7, %v7690_v56 }
0x2094   :  { %6446 = vmatpush3.bf16.msra.mxu1 %v7286_v18  ;;  %5906 = vmatprep.mubr.msk.f32.mxu1 %vm6832_vm2, %v6833_v10 }
0x2095   :  { %6447 = vmatprep.subr.bf16.mxu1 %v6831_v2 }
0x2098   :  { %6449 = vmatpush3.bf16.msra.mxu1 %v7296_v24 }
0x2099   :  { %6450 = vmatprep.subr.bf16.mxu1 %v6831_v2 }
0x209c   :  { %6452 = vmatpush3.bf16.msra.mxu1 %v7306_v23 }
0x209d   :  { %6453 = vmatprep.subr.bf16.mxu1 %v6831_v2 }
0x20a0   :  { %6455 = vmatpush3.bf16.msra.mxu1 %v7316_v32 }
0x20a1   :  { %5928 = vmatprep.subr.mxu1 %v6833_v10 }
0x2162   :  { %v7711_v14 = vpop.f32.mrb[40].mxu1 }
0x2163   :  { %v5884_v52 = vpop.f32.mrb[41].mxu1 }
0x2166   :  { %v3096_v4 = vpop.f32.mrb[42].mxu1 }
0x2167   :  { %v3097_v6 = vadd.f32 %v3096_v4, %v1293_v0  ;;  %v5889_v8 = vpop.f32.mrb[43].mxu1 }
0x2169   :  { %v3101_v9 = vand.u32 2147483647, %v3097_v6  ;;  %v3100_v7 = vmax.f32 %v3097_v6, 0.0 }
0x216b   :  { %v3102_v17 = vsub.f32 0.0, %v3101_v9 }
0x216d   :  { %v3103_v20 = vmul.f32 1.442695, %v3102_v17  ;;  %v7747_v17 = vld [vmem:[%s8165_s30] sm:$0xf] }
0x216f   :  { %6748 = vpow2.f32 %v3103_v20 }
0x2179   :  { %v6749_v27 = vpop.eup %6748 }
0x217a   :  { %v3105_v30 = vadd.f32 1.0, %v6749_v27 }
0x217c   :  { %6750 = vlog2.f32 %v3105_v30 }
0x2186   :  { %v6751_v34 = vpop.eup %6750 }
0x2187   :  { %v3107_v39 = vmul.f32 0.6931472, %v6751_v34 }
0x2189   :  { %v3108_v62 = vadd.f32 %v3107_v39, %v3100_v7 }
0x218b   :  { %5907 = vmatmul.mubr.msk.f32.vlgmr.msra.gmra.mrb[44].mxu1 %vm1623_vm8, %v3108_v62 }
0x218c   :  { %5929 = vmatpush3.msk.msra.mxu1 %vm1456_vm5, %v7337_v45  ;;  %5930 = vmatprep.mubr.msk.f32.mxu1 %vm6832_vm2, %v6833_v10 }
0x218d   :  { %6468 = vmatprep.subr.bf16.mxu1 %v6831_v2 }
0x218f   :  { %5931 = vmatmul.mubr.msk.f32.vlgmr.msra.gmra.mrb[46].mxu1 %vm1452_vm7, %v7690_v56 }
0x2190   :  { %6470 = vmatpush3.bf16.msra.mxu1 %v7355_v48  ;;  %5965 = vmatprep.mubr.msk.f32.mxu1 %vm6832_vm2, %v6833_v10 }
0x2191   :  { %6471 = vmatprep.subr.bf16.mxu1 %v6831_v2 }
0x2194   :  { %6473 = vmatpush3.bf16.msra.mxu1 %v7365_v50 }
0x2195   :  { %6474 = vmatprep.subr.bf16.mxu1 %v6831_v2 }
0x2198   :  { %6476 = vmatpush3.bf16.msra.mxu1 %v7375_v53 }
0x2199   :  { %6477 = vmatprep.subr.bf16.mxu1 %v6831_v2 }
0x219c   :  { %6479 = vmatpush3.bf16.msra.mxu1 %v7393_v5 }
0x219d   :  { %6480 = vmatprep.subr.bf16.mxu1 %v6831_v2 }
0x21a0   :  { %6482 = vmatpush3.bf16.msra.mxu1 %v7413_v16 }
0x21a1   :  { %6483 = vmatprep.subr.bf16.mxu1 %v6831_v2 }
0x21a4   :  { %6485 = vmatpush3.bf16.msra.mxu1 %v7433_v29 }
0x21a5   :  { %6486 = vmatprep.subr.bf16.mxu1 %v6831_v2 }
0x21a8   :  { %6488 = vmatpush3.bf16.msra.mxu1 %v7453_v38 }
0x21a9   :  { %6489 = vmatprep.subr.bf16.mxu1 %v6831_v2 }
0x21ac   :  { %6491 = vmatpush3.bf16.msra.mxu1 %v7465_v28 }
0x21ad   :  { %6504 = vmatprep.subr.bf16.mxu1 %v6831_v2 }
0x225e   :  { %v3178_v61 = vpop.f32.mrb[44].mxu1 }
0x225f   :  { %v3179_v37 = vadd.f32 %v7472_v54, %v3178_v61  ;;  %v5908_v45 = vpop.f32.mrb[45].mxu1 }
0x2261   :  { %v3183_v15 = vand.u32 2147483647, %v3179_v37  ;;  %v3182_v52 = vmax.f32 %v3179_v37, 0.0 }
0x2262   :  { %v3330_v42 = vpop.f32.mrb[46].mxu1 }
0x2263   :  { %v3184_v12 = vsub.f32 0.0, %v3183_v15  ;;  %v3331_v41 = vadd.f32 %v7478_v40, %v3330_v42  ;;  %v5932_v21 = vpop.f32.mrb[47].mxu1 }
0x2265   :  { %v3185_v31 = vmul.f32 1.442695, %v3184_v12  ;;  %v3335_v43 = vand.u32 2147483647, %v3331_v41  ;;  %v3334_v8 = vmax.f32 %v3331_v41, 0.0  ;;  %v5074_v12 = vld [vmem:[%s8136_s3 + $0x18] sm:$0xff] }
0x2267   :  { %6752 = vpow2.f32 %v3185_v31  ;;  %v3336_v44 = vsub.f32 0.0, %v3335_v43 }
0x2269   :  { %v3337_v59 = vmul.f32 1.442695, %v3336_v44  ;;  %v7786_v44 = vld [vmem:[%s8124_s12] sm:$0xf] }
0x226b   :  { %6754 = vpow2.f32 %v3337_v59 }
0x2271   :  { %v6753_v47 = vpop.eup %6752 }
0x2272   :  { %v3187_v57 = vadd.f32 1.0, %v6753_v47  ;;  %v7810_v47 = vld [vmem:[%s8127_s14] ss:$0 sm:$0xff] }
0x2274   :  { %6756 = vlog2.f32 %v3187_v57  ;;  %v1298_v57 = vadd.f32 %v7810_v47, %v7247_v60  ;;  %v7818_v60 = vld [vmem:[%s8128_s19] sm:$0xf] }
0x2275   :  { %v6755_v58 = vpop.eup %6754 }
0x2276   :  { %v3339_v26 = vadd.f32 1.0, %v6755_v58 }
0x2278   :  { %6758 = vlog2.f32 %v3339_v26 }
0x227e   :  { %v6757_v51 = vpop.eup %6756 }
0x227f   :  { %v3189_v0 = vmul.f32 0.6931472, %v6757_v51 }
0x2281   :  { %v3190_v4 = vadd.f32 %v3189_v0, %v3182_v52 }
0x2282   :  { %v6759_v6 = vpop.eup %6758 }
0x2283   :  { %v3341_v9 = vmul.f32 0.6931472, %v6759_v6  ;;  %5926 = vmatmul.mubr.msk.f32.vlgmr.msra.gmra.mrb[36].mxu0 %vm1623_vm8, %v3190_v4 }
0x2284   :  { %5969 = vmatpush3.msk.msra.mxu0 %vm1456_vm5, %v7747_v17  ;;  %5970 = vmatprep.mubr.msk.f32.mxu0 %vm6832_vm2, %v6833_v10 }
0x2285   :  { %v3342_v20 = vadd.f32 %v3341_v9, %v3334_v8  ;;  %5973 = vmatprep.subr.mxu0 %v6833_v10 }
0x2287   :  { %5966 = vmatmul.mubr.f32.vlgmr.msra.gmra.mrb[48].mxu1 %v3342_v20 }
0x2288   :  { %6506 = vmatpush3.bf16.msra.mxu1 %v7388_v3  ;;  %6013 = vmatprep.mubr.msk.f32.mxu1 %vm6832_vm2, %v6833_v10 }
0x2289   :  { %6507 = vmatprep.subr.bf16.mxu1 %v6831_v2 }
0x228c   :  { %6509 = vmatpush3.bf16.msra.mxu1 %v7408_v19 }
0x228d   :  { %6510 = vmatprep.subr.bf16.mxu1 %v6831_v2 }
0x2290   :  { %6512 = vmatpush3.bf16.msra.mxu1 %v7428_v25 }
0x2291   :  { %6513 = vmatprep.subr.bf16.mxu1 %v6831_v2 }
0x2294   :  { %6515 = vmatpush3.bf16.msra.mxu1 %v7448_v36 }
0x2295   :  { %6056 = vmatprep.subr.mxu1 %v6833_v10 }
0x2356   :  { %v3260_v27 = vpop.f32.mrb[36].mxu0 }
0x2357   :  { %v7765_v30 = vadd.f32 %v7495_v22, %v3260_v27  ;;  %v5927_v34 = vpop.f32.mrb[37].mxu0 }
0x2359   :  { %3420 = vrot.lane.b32.xlu0 %v7765_v30, %s6837_s1  ;;  %v3431_v42 = vmul.f32 %v7765_v30, %v7508_v1 }
0x235a   :  { %v3409_v7 = vpop.f32.mrb[48].mxu1 }
0x235b   :  { %v3410_v39 = vadd.f32 %v7501_v35, %v3409_v7  ;;  %v5967_v62 = vpop.f32.mrb[49].mxu1  ;;  %v3432_v21 = vadd.f32 %v3431_v42, %v7690_v56 }
0x235d   :  { %v3413_v61 = vsub.f32 0.0, %v3410_v39 }
0x235f   :  { %v3414_v37 = vmul.f32 1.442695, %v3413_v61 }
0x2361   :  { %6760 = vpow2.f32 %v3414_v37 }
0x236b   :  { %v6761_v45 = vpop.eup %6760 }
0x236c   :  { %v3416_v15 = vadd.f32 1.0, %v6761_v45 }
0x236e   :  { %6762 = vrcp.f32 %v3416_v15 }
0x2378   :  { %v7775_v41 = vpop.eup %6762 }
0x2379   :  { %v3435_v31 = vmul.f32 %v7775_v41, %v5074_v12 }
0x237b   :  { %v7779_v43 = vadd.f32 %v3435_v31, %v3432_v21 }
0x237d   :  { %5971 = vmatmul.mubr.msk.f32.vlgmr.msra.gmra.mrb[38].mxu0 %vm1452_vm7, %v7779_v43 }
0x237e   :  { %5974 = vmatpush3.msk.msra.mxu0 %vm1456_vm5, %v7786_v44  ;;  %5975 = vmatprep.mubr.msk.f32.mxu0 %vm6832_vm2, %v6833_v10 }
0x237f   :  { %6492 = vmatprep.subr.bf16.mxu0 %v6831_v2 }
0x2381   :  { %5976 = vmatmul.mubr.msk.f32.vlgmr.msra.gmra.mrb[40].mxu0 %vm1452_vm7, %v7779_v43 }
0x2382   :  { %6494 = vmatpush3.bf16.msra.mxu0 %v7286_v18  ;;  %5994 = vmatprep.mubr.msk.f32.mxu0 %vm6832_vm2, %v6833_v10 }
0x2383   :  { %6495 = vmatprep.subr.bf16.mxu0 %v6831_v2 }
0x2386   :  { %6497 = vmatpush3.bf16.msra.mxu0 %v7296_v24 }
0x2387   :  { %6498 = vmatprep.subr.bf16.mxu0 %v6831_v2 }
0x238a   :  { %6500 = vmatpush3.bf16.msra.mxu0 %v7306_v23 }
0x238b   :  { %6501 = vmatprep.subr.bf16.mxu0 %v6831_v2 }
0x238e   :  { %6503 = vmatpush3.bf16.msra.mxu0 %v7316_v32 }
0x238f   :  { %6016 = vmatprep.subr.mxu0 %v6833_v10 }
0x2450   :  { %v7805_v56 = vpop.f32.mrb[38].mxu0 }
0x2451   :  { %v5972_v59 = vpop.f32.mrb[39].mxu0 }
0x2454   :  { %v3584_v58 = vpop.f32.mrb[40].mxu0 }
0x2455   :  { %v3585_v26 = vadd.f32 %v3584_v58, %v1298_v57  ;;  %v5977_v51 = vpop.f32.mrb[41].mxu0 }
0x2457   :  { %v3589_v52 = vand.u32 2147483647, %v3585_v26  ;;  %v3588_v20 = vmax.f32 %v3585_v26, 0.0 }
0x2459   :  { %v3590_v0 = vsub.f32 0.0, %v3589_v52 }
0x245b   :  { %v3591_v4 = vmul.f32 1.442695, %v3590_v0 }
0x245d   :  { %6764 = vpow2.f32 %v3591_v4 }
0x2467   :  { %v6765_v6 = vpop.eup %6764 }
0x2468   :  { %v3593_v8 = vadd.f32 1.0, %v6765_v6 }
0x246a   :  { %6766 = vlog2.f32 %v3593_v8 }
0x2474   :  { %v6767_v9 = vpop.eup %6766 }
0x2475   :  { %v3595_v27 = vmul.f32 0.6931472, %v6767_v9 }
0x2477   :  { %v3596_v34 = vadd.f32 %v3595_v27, %v3588_v20 }
0x2479   :  { %5995 = vmatmul.mubr.msk.f32.vlgmr.msra.gmra.mrb[42].mxu0 %vm1623_vm8, %v3596_v34 }
0x247a   :  { %6017 = vmatpush3.msk.msra.mxu0 %vm1456_vm5, %v7818_v60  ;;  %6018 = vmatprep.mubr.msk.f32.mxu0 %vm6832_vm2, %v6833_v10 }
0x247b   :  { %6516 = vmatprep.subr.bf16.mxu0 %v6831_v2 }
0x247d   :  { %6019 = vmatmul.mubr.msk.f32.vlgmr.msra.gmra.mrb[44].mxu0 %vm1452_vm7, %v7779_v43 }
0x247e   :  { %6518 = vmatpush3.bf16.msra.mxu0 %v7355_v48  ;;  %6053 = vmatprep.mubr.msk.f32.mxu0 %vm6832_vm2, %v6833_v10 }
0x247f   :  { %6519 = vmatprep.subr.bf16.mxu0 %v6831_v2 }
0x2482   :  { %6521 = vmatpush3.bf16.msra.mxu0 %v7365_v50 }
0x2483   :  { %6522 = vmatprep.subr.bf16.mxu0 %v6831_v2 }
0x2486   :  { %6524 = vmatpush3.bf16.msra.mxu0 %v7375_v53 }
0x2487   :  { %6525 = vmatprep.subr.bf16.mxu0 %v6831_v2 }
0x248a   :  { %6527 = vmatpush3.bf16.msra.mxu0 %v7393_v5 }
0x248b   :  { %6528 = vmatprep.subr.bf16.mxu0 %v6831_v2 }
0x248e   :  { %6530 = vmatpush3.bf16.msra.mxu0 %v7413_v16 }
0x248f   :  { %6531 = vmatprep.subr.bf16.mxu0 %v6831_v2 }
0x2492   :  { %6533 = vmatpush3.bf16.msra.mxu0 %v7433_v29 }
0x2493   :  { %6534 = vmatprep.subr.bf16.mxu0 %v6831_v2 }
0x2496   :  { %6536 = vmatpush3.bf16.msra.mxu0 %v7453_v38 }
0x2497   :  { %6537 = vmatprep.subr.bf16.mxu0 %v6831_v2 }
0x249a   :  { %6539 = vmatpush3.bf16.msra.mxu0 %v7465_v28 }
0x249b   :  { %6552 = vmatprep.subr.bf16.mxu0 %v6831_v2 }
0x254c   :  { %v3666_v7 = vpop.f32.mrb[42].mxu0 }
0x254d   :  { %v3667_v39 = vadd.f32 %v7472_v54, %v3666_v7  ;;  %v5996_v62 = vpop.f32.mrb[43].mxu0 }
0x254f   :  { %v3671_v61 = vand.u32 2147483647, %v3667_v39  ;;  %v3670_v52 = vmax.f32 %v3667_v39, 0.0 }
0x2550   :  { %v3818_v37 = vpop.f32.mrb[44].mxu0 }
0x2551   :  { %v3672_v45 = vsub.f32 0.0, %v3671_v61  ;;  %v3819_v15 = vadd.f32 %v7478_v40, %v3818_v37  ;;  %v6020_v42 = vpop.f32.mrb[45].mxu0 }
0x2553   :  { %v3673_v12 = vmul.f32 1.442695, %v3672_v45  ;;  %v3823_v21 = vand.u32 2147483647, %v3819_v15  ;;  %v3822_v8 = vmax.f32 %v3819_v15, 0.0 }
0x2555   :  { %6768 = vpow2.f32 %v3673_v12  ;;  %v3824_v31 = vsub.f32 0.0, %v3823_v21 }
0x2557   :  { %v3825_v59 = vmul.f32 1.442695, %v3824_v31 }
0x2559   :  { %6770 = vpow2.f32 %v3825_v59 }
0x255f   :  { %v6769_v57 = vpop.eup %6768 }
0x2560   :  { %v3675_v58 = vadd.f32 1.0, %v6769_v57  ;;  %v1303_v57 = vadd.f32 %v7810_v47, %v7253_v63 }
0x2562   :  { %6772 = vlog2.f32 %v3675_v58 }
0x2563   :  { %v6771_v26 = vpop.eup %6770 }
0x2564   :  { %v3827_v51 = vadd.f32 1.0, %v6771_v26 }
0x2566   :  { %6774 = vlog2.f32 %v3827_v51 }
0x256c   :  { %v6773_v54 = vpop.eup %6772 }
0x256d   :  { %v3677_v0 = vmul.f32 0.6931472, %v6773_v54 }
0x256f   :  { %v3678_v4 = vadd.f32 %v3677_v0, %v3670_v52 }
0x2570   :  { %v6775_v6 = vpop.eup %6774 }
0x2571   :  { %v3829_v40 = vmul.f32 0.6931472, %v6775_v6  ;;  %6014 = vmatmul.mubr.msk.f32.vlgmr.msra.gmra.mrb[50].mxu1 %vm1623_vm8, %v3678_v4 }
0x2572   :  { %6057 = vmatpush3.msk.msra.mxu1 %vm1456_vm5, %v7747_v17  ;;  %6058 = vmatprep.mubr.msk.f32.mxu1 %vm6832_vm2, %v6833_v10 }
0x2573   :  { %v3830_v9 = vadd.f32 %v3829_v40, %v3822_v8  ;;  %6061 = vmatprep.subr.mxu1 %v6833_v10 }
0x2575   :  { %6054 = vmatmul.mubr.f32.vlgmr.msra.gmra.mrb[46].mxu0 %v3830_v9 }
0x2576   :  { %6554 = vmatpush3.bf16.msra.mxu0 %v7388_v3  ;;  %6101 = vmatprep.mubr.msk.f32.mxu0 %vm6832_vm2, %v6833_v10 }
0x2577   :  { %6555 = vmatprep.subr.bf16.mxu0 %v6831_v2 }
0x257a   :  { %6557 = vmatpush3.bf16.msra.mxu0 %v7408_v19 }
0x257b   :  { %6558 = vmatprep.subr.bf16.mxu0 %v6831_v2 }
0x257e   :  { %6560 = vmatpush3.bf16.msra.mxu0 %v7428_v25 }
0x257f   :  { %6561 = vmatprep.subr.bf16.mxu0 %v6831_v2 }
0x2582   :  { %6563 = vmatpush3.bf16.msra.mxu0 %v7448_v36 }
0x2583   :  { %6144 = vmatprep.subr.mxu0 %v6833_v10 }
0x2644   :  { %v3748_v20 = vpop.f32.mrb[50].mxu1 }
0x2645   :  { %v7864_v27 = vadd.f32 %v7495_v22, %v3748_v20  ;;  %v6015_v34 = vpop.f32.mrb[51].mxu1  ;;  %v5084_v22 = vld [vmem:[%s8136_s3 + $0x20] sm:$0xff] }
0x2646   :  { %v7932_v34 = vld [vmem:[%s8131_s16] ss:$0 sm:$0xff] }
0x2647   :  { %3908 = vrot.lane.b32.xlu0 %v7864_v27, %s6837_s1  ;;  %v3919_v42 = vmul.f32 %v7864_v27, %v7508_v1 }
0x2648   :  { %v3897_v7 = vpop.f32.mrb[46].mxu0 }
0x2649   :  { %v3898_v39 = vadd.f32 %v7501_v35, %v3897_v7  ;;  %v6055_v62 = vpop.f32.mrb[47].mxu0  ;;  %v3920_v21 = vadd.f32 %v3919_v42, %v7779_v43 }
0x264b   :  { %v3901_v61 = vsub.f32 0.0, %v3898_v39 }
0x264d   :  { %v3902_v37 = vmul.f32 1.442695, %v3901_v61 }
0x264f   :  { %6776 = vpow2.f32 %v3902_v37 }
0x2659   :  { %v6777_v45 = vpop.eup %6776 }
0x265a   :  { %v3904_v15 = vadd.f32 1.0, %v6777_v45  ;;  %v7938_v45 = vld [vmem:[%s8132_s20] ss:$0 sm:$0xff] }
0x265c   :  { %6778 = vrcp.f32 %v3904_v15 }
0x2666   :  { %v7874_v12 = vpop.eup %6778 }
0x2667   :  { %v3923_v35 = vmul.f32 %v7874_v12, %v5084_v22 }
0x2669   :  { %v7878_v31 = vadd.f32 %v3923_v35, %v3920_v21 }
0x266b   :  { %6059 = vmatmul.mubr.msk.f32.vlgmr.msra.gmra.mrb[52].mxu1 %vm1452_vm7, %v7878_v31 }
0x266c   :  { %6062 = vmatpush3.msk.msra.mxu1 %vm1456_vm5, %v7786_v44  ;;  %6063 = vmatprep.mubr.msk.f32.mxu1 %vm6832_vm2, %v6833_v10 }
0x266d   :  { %6540 = vmatprep.subr.bf16.mxu1 %v6831_v2 }
0x266f   :  { %6064 = vmatmul.mubr.msk.f32.vlgmr.msra.gmra.mrb[54].mxu1 %vm1452_vm7, %v7878_v31 }
0x2670   :  { %6542 = vmatpush3.bf16.msra.mxu1 %v7286_v18  ;;  %6082 = vmatprep.mubr.msk.f32.mxu1 %vm6832_vm2, %v6833_v10 }
0x2671   :  { %6543 = vmatprep.subr.bf16.mxu1 %v6831_v2 }
0x2674   :  { %6545 = vmatpush3.bf16.msra.mxu1 %v7296_v24 }
0x2675   :  { %6546 = vmatprep.subr.bf16.mxu1 %v6831_v2 }
0x2678   :  { %6548 = vmatpush3.bf16.msra.mxu1 %v7306_v23 }
0x2679   :  { %6549 = vmatprep.subr.bf16.mxu1 %v6831_v2 }
0x267c   :  { %6551 = vmatpush3.bf16.msra.mxu1 %v7316_v32 }
0x267d   :  { %6104 = vmatprep.subr.mxu1 %v6833_v10 }
0x273e   :  { %v7899_v43 = vpop.f32.mrb[52].mxu1 }
0x273f   :  { %v6060_v59 = vpop.f32.mrb[53].mxu1 }
0x2742   :  { %v4072_v58 = vpop.f32.mrb[54].mxu1 }
0x2743   :  { %v4073_v26 = vadd.f32 %v4072_v58, %v1303_v57  ;;  %v6065_v51 = vpop.f32.mrb[55].mxu1 }
0x2745   :  { %v4077_v54 = vand.u32 2147483647, %v4073_v26  ;;  %v4076_v40 = vmax.f32 %v4073_v26, 0.0 }
0x2747   :  { %v4078_v52 = vsub.f32 0.0, %v4077_v54 }
0x2749   :  { %v4079_v0 = vmul.f32 1.442695, %v4078_v52 }
0x274b   :  { %6780 = vpow2.f32 %v4079_v0 }
0x2755   :  { %v6781_v4 = vpop.eup %6780 }
0x2756   :  { %v4081_v6 = vadd.f32 1.0, %v6781_v4 }
0x2758   :  { %6782 = vlog2.f32 %v4081_v6 }
0x2762   :  { %v6783_v8 = vpop.eup %6782 }
0x2763   :  { %v4083_v9 = vmul.f32 0.6931472, %v6783_v8 }
0x2765   :  { %v4084_v20 = vadd.f32 %v4083_v9, %v4076_v40 }
0x2767   :  { %6083 = vmatmul.mubr.msk.f32.vlgmr.msra.gmra.mrb[56].mxu1 %vm1623_vm8, %v4084_v20 }
0x2768   :  { %6105 = vmatpush3.msk.msra.mxu1 %vm1456_vm5, %v7818_v60  ;;  %6106 = vmatprep.mubr.msk.f32.mxu1 %vm6832_vm2, %v6833_v10 }
0x2769   :  { %6564 = vmatprep.subr.bf16.mxu1 %v6831_v2 }
0x276b   :  { %6107 = vmatmul.mubr.msk.f32.vlgmr.msra.gmra.mrb[58].mxu1 %vm1452_vm7, %v7878_v31 }
0x276c   :  { %6566 = vmatpush3.bf16.msra.mxu1 %v7355_v48  ;;  %6141 = vmatprep.mubr.msk.f32.mxu1 %vm6832_vm2, %v6833_v10 }
0x276d   :  { %6567 = vmatprep.subr.bf16.mxu1 %v6831_v2 }
0x2770   :  { %6569 = vmatpush3.bf16.msra.mxu1 %v7365_v50 }
0x2771   :  { %6570 = vmatprep.subr.bf16.mxu1 %v6831_v2 }
0x2774   :  { %6572 = vmatpush3.bf16.msra.mxu1 %v7375_v53 }
0x2775   :  { %6573 = vmatprep.subr.bf16.mxu1 %v6831_v2 }
0x2778   :  { %6575 = vmatpush3.bf16.msra.mxu1 %v7393_v5 }
0x2779   :  { %6576 = vmatprep.subr.bf16.mxu1 %v6831_v2 }
0x277c   :  { %6578 = vmatpush3.bf16.msra.mxu1 %v7413_v16 }
0x277d   :  { %6579 = vmatprep.subr.bf16.mxu1 %v6831_v2 }
0x2780   :  { %6581 = vmatpush3.bf16.msra.mxu1 %v7433_v29 }
0x2781   :  { %6582 = vmatprep.subr.bf16.mxu1 %v6831_v2 }
0x2784   :  { %6584 = vmatpush3.bf16.msra.mxu1 %v7453_v38 }
0x2785   :  { %6585 = vmatprep.subr.bf16.mxu1 %v6831_v2 }
0x2788   :  { %6587 = vmatpush3.bf16.msra.mxu1 %v7465_v28 }
0x2789   :  { %6600 = vmatprep.subr.bf16.mxu1 %v6831_v2 }
0x283a   :  { %v4154_v63 = vpop.f32.mrb[56].mxu1 }
0x283b   :  { %v4155_v7 = vadd.f32 %v7932_v34, %v4154_v63  ;;  %v6084_v39 = vpop.f32.mrb[57].mxu1 }
0x283d   :  { %v4159_v62 = vand.u32 2147483647, %v4155_v7  ;;  %v4158_v52 = vmax.f32 %v4155_v7, 0.0 }
0x283e   :  { %v4306_v61 = vpop.f32.mrb[58].mxu1 }
0x283f   :  { %v4160_v37 = vsub.f32 0.0, %v4159_v62  ;;  %v4307_v15 = vadd.f32 %v7938_v45, %v4306_v61  ;;  %v6108_v42 = vpop.f32.mrb[59].mxu1 }
0x2840   :  { %v7977_v42 = vld [vmem:[%s8126_s24] ss:$0 sm:$0xff] }
0x2841   :  { %v4161_v22 = vmul.f32 1.442695, %v4160_v37  ;;  %v4311_v21 = vand.u32 2147483647, %v4307_v15  ;;  %v4310_v8 = vmax.f32 %v4307_v15, 0.0 }
0x2843   :  { %6784 = vpow2.f32 %v4161_v22  ;;  %v4312_v35 = vsub.f32 0.0, %v4311_v21  ;;  %v2533_v22 = vadd.f32 %v7977_v42, %v7642_v11  ;;  %v5055_v21 = vld [vmem:[%s8156_s7 + $0x10] sm:$0xff] }
0x2845   :  { %v4313_v59 = vmul.f32 1.442695, %v4312_v35  ;;  %v3421_v35 = vpop.permute.xlu0 %3420 }
0x2847   :  { %6786 = vpow2.f32 %v4313_v59  ;;  %v2536_v59 = vsub.f32 %v5055_v21, %v2533_v22 }
0x284d   :  { %v6785_v57 = vpop.eup %6784 }
0x284e   :  { %v4163_v58 = vadd.f32 1.0, %v6785_v57  ;;  %v3423_v57 = vsub.f32 %v7765_v30, %v3421_v35 }
0x2850   :  { %6788 = vlog2.f32 %v4163_v58 }
0x2851   :  { %v6787_v26 = vpop.eup %6786 }
0x2852   :  { %v4315_v51 = vadd.f32 1.0, %v6787_v26  ;;  %v5094_v26 = vld [vmem:[%s8136_s3 + $0x28] sm:$0xff] }
0x2854   :  { %6790 = vlog2.f32 %v4315_v51 }
0x285a   :  { %v6789_v54 = vpop.eup %6788 }
0x285b   :  { %v4165_v0 = vmul.f32 0.6931472, %v6789_v54 }
0x285d   :  { %v4166_v4 = vadd.f32 %v4165_v0, %v4158_v52  ;;  %v2537_v0 = vmul.f32 %v2536_v59, %v2536_v59 }
0x285e   :  { %v6791_v6 = vpop.eup %6790 }
0x285f   :  { %v4317_v40 = vmul.f32 0.6931472, %v6791_v6  ;;  %6102 = vmatmul.mubr.msk.f32.vlgmr.msra.gmra.mrb[48].mxu0 %vm1623_vm8, %v4166_v4 }
0x2860   :  { %6145 = vmatpush3.msk.msra.mxu0 %vm1456_vm5, %v7747_v17  ;;  %6146 = vmatprep.mubr.msk.f32.mxu0 %vm6832_vm2, %v6833_v10 }
0x2861   :  { %v4318_v9 = vadd.f32 %v4317_v40, %v4310_v8  ;;  %6149 = vmatprep.subr.mxu0 %v6833_v10  ;;  %v2538_v40 = vsel %vm105_vm1, %v2537_v0, 0.0 }
0x2863   :  { %6142 = vmatmul.mubr.f32.vlgmr.msra.gmra.mrb[60].mxu1 %v4318_v9 }
0x2864   :  { %6602 = vmatpush3.bf16.msra.mxu1 %v7388_v3  ;;  %6189 = vmatprep.mubr.msk.f32.mxu1 %vm6832_vm2, %v6833_v10  ;;  %v7960_v3 = vld [vmem:[%s8133_s18] ss:$0 sm:$0xff] }
0x2865   :  { %6603 = vmatprep.subr.bf16.mxu1 %v6831_v2 }
0x2868   :  { %6605 = vmatpush3.bf16.msra.mxu1 %v7408_v19 }
0x2869   :  { %6606 = vmatprep.subr.bf16.mxu1 %v6831_v2 }
0x286c   :  { %6608 = vmatpush3.bf16.msra.mxu1 %v7428_v25 }
0x286d   :  { %6609 = vmatprep.subr.bf16.mxu1 %v6831_v2 }
0x2870   :  { %6611 = vmatpush3.bf16.msra.mxu1 %v7448_v36  ;;  %v7970_v36 = vld [vmem:[%s8134_s22] ss:$0 sm:$0xff] }
0x2871   :  { %6232 = vmatprep.subr.mxu1 %v6833_v10 }
0x2932   :  { %v4236_v20 = vpop.f32.mrb[48].mxu0 }
0x2933   :  { %v7963_v63 = vadd.f32 %v7960_v3, %v4236_v20  ;;  %v6103_v19 = vpop.f32.mrb[49].mxu0 }
0x2935   :  { %4396 = vrot.lane.b32.xlu1 %v7963_v63, %s6837_s1  ;;  %v4407_v58 = vmul.f32 %v7963_v63, %v7508_v1 }
0x2936   :  { %v4385_v25 = vpop.f32.mrb[60].mxu1 }
0x2937   :  { %v4386_v7 = vadd.f32 %v7970_v36, %v4385_v25  ;;  %v6143_v39 = vpop.f32.mrb[61].mxu1  ;;  %v4408_v4 = vadd.f32 %v4407_v58, %v7878_v31 }
0x2939   :  { %v4389_v62 = vsub.f32 0.0, %v4386_v7 }
0x293b   :  { %v4390_v61 = vmul.f32 1.442695, %v4389_v62 }
0x293d   :  { %6792 = vpow2.f32 %v4390_v61 }
0x293e   :  { %6794 = vrcp.f32 %v7775_v41  ;;  %v3909_v41 = vpop.permute.xlu0 %3908 }
0x293f   :  { %v3911_v52 = vsub.f32 %v7864_v27, %v3909_v41 }
0x2947   :  { %v6793_v37 = vpop.eup %6792 }
0x2948   :  { %v4392_v15 = vadd.f32 1.0, %v6793_v37  ;;  %v6795_v51 = vpop.eup %6794  ;;  %v1308_v37 = vadd.f32 %v7810_v47, %v7251_v33 }
0x2949   :  { %v3425_v54 = vmul.f32 %v6795_v51, %v3423_v57 }
0x294a   :  { %6796 = vrcp.f32 %v4392_v15 }
0x294b   :  { %6798 = vrcp.f32 %v7874_v12  ;;  %v3426_v9 = vmul.f32 %v3425_v54, %v3425_v54 }
0x294d   :  { %v3427_v27 = vsel %vm1452_vm7, %v3426_v9, 0.0 }
0x2954   :  { %v6797_v11 = vpop.eup %6796 }
0x2955   :  { %v4411_v12 = vmul.f32 %v6797_v11, %v5094_v26  ;;  %v6799_v6 = vpop.eup %6798  ;;  %6800 = vrcp.f32 %v6797_v11 }
0x2956   :  { %v3913_v30 = vmul.f32 %v6799_v6, %v3911_v52 }
0x2957   :  { %v7993_v8 = vadd.f32 %v4411_v12, %v4408_v4 }
0x2958   :  { %v3914_v31 = vmul.f32 %v3913_v30, %v3913_v30 }
0x2959   :  { %2539 = vadd.xlane.f32.xlu1 %v2538_v40  ;;  %6147 = vmatmul.mubr.msk.f32.vlgmr.msra.gmra.mrb[50].mxu0 %vm1452_vm7, %v7993_v8 }
0x295a   :  { %6150 = vmatpush3.msk.msra.mxu0 %vm1456_vm5, %v7786_v44  ;;  %6151 = vmatprep.mubr.msk.f32.mxu0 %vm6832_vm2, %v6833_v10  ;;  %v3915_v44 = vsel %vm1452_vm7, %v3914_v31, 0.0 }
0x295b   :  { %6588 = vmatprep.subr.bf16.mxu0 %v6831_v2 }
0x295d   :  { %3428 = vadd.xlane.f32.xlu1 %v3427_v27  ;;  %6152 = vmatmul.mubr.msk.f32.vlgmr.msra.gmra.mrb[52].mxu0 %vm1452_vm7, %v7993_v8 }
0x295e   :  { %6590 = vmatpush3.bf16.msra.mxu0 %v7286_v18  ;;  %6170 = vmatprep.mubr.msk.f32.mxu0 %vm6832_vm2, %v6833_v10  ;;  %v8017_v18 = vpop.xlane.xlu1 %1964 }
0x295f   :  { %6591 = vmatprep.subr.bf16.mxu0 %v6831_v2  ;;  %v6801_v7 = vpop.eup %6800 }
0x2961   :  { %3916 = vadd.xlane.f32.xlu1 %v3915_v44 }
0x2962   :  { %6593 = vmatpush3.bf16.msra.mxu0 %v7296_v24  ;;  %v8019_v20 = vpop.xlane.xlu1 %2452 }
0x2963   :  { %6594 = vmatprep.subr.bf16.mxu0 %v6831_v2 }
0x2966   :  { %6596 = vmatpush3.bf16.msra.mxu0 %v7306_v23  ;;  %v8021_v19 = vpop.permute.xlu1 %2932 }
0x2967   :  { %6597 = vmatprep.subr.bf16.mxu0 %v6831_v2 }
0x296a   :  { %6599 = vmatpush3.bf16.msra.mxu0 %v7316_v32 }
0x296b   :  { %6192 = vmatprep.subr.mxu0 %v6833_v10 }
0x29a7   :  { %v4397_v25 = vpop.permute.xlu1 %4396 }
0x29a8   :  { %v4399_v24 = vsub.f32 %v7963_v63, %v4397_v25 }
0x29aa   :  { %v4401_v39 = vmul.f32 %v6801_v7, %v4399_v24 }
0x29ac   :  { %v4402_v62 = vmul.f32 %v4401_v39, %v4401_v39 }
0x29ae   :  { %v4403_v23 = vsel %vm1452_vm7, %v4402_v62, 0.0 }
0x29af   :  { %4404 = vadd.xlane.f32.xlu1 %v4403_v23 }
0x2a2c   :  { %v8025_v61 = vpop.f32.mrb[50].mxu0 }
0x2a2d   :  { %v6148_v32 = vpop.f32.mrb[51].mxu0 }
0x2a30   :  { %v4560_v15 = vpop.f32.mrb[52].mxu0 }
0x2a31   :  { %v4561_v22 = vadd.f32 %v4560_v15, %v1308_v37  ;;  %v6153_v21 = vpop.f32.mrb[53].mxu0 }
0x2a32   :  { %v3509_v21 = vadd.f32 %v7977_v42, %v7805_v56  ;;  %v5085_v56 = vld [vmem:[%s8156_s7 + $0x28] sm:$0xff] }
0x2a33   :  { %v4565_v35 = vand.u32 2147483647, %v4561_v22  ;;  %v4564_v26 = vmax.f32 %v4561_v22, 0.0 }
0x2a35   :  { %v4566_v59 = vsub.f32 0.0, %v4565_v35 }
0x2a37   :  { %v4567_v57 = vmul.f32 1.442695, %v4566_v59 }
0x2a39   :  { %6802 = vpow2.f32 %v4567_v57  ;;  %v3997_v57 = vadd.f32 %v7977_v42, %v7899_v43  ;;  %v5095_v43 = vld [vmem:[%s8156_s7 + $0x30] sm:$0xff] }
0x2a43   :  { %v6803_v63 = vpop.eup %6802 }
0x2a44   :  { %v4569_v41 = vadd.f32 1.0, %v6803_v63 }
0x2a46   :  { %6804 = vlog2.f32 %v4569_v41 }
0x2a50   :  { %v6805_v58 = vpop.eup %6804 }
0x2a51   :  { %v4571_v51 = vmul.f32 0.6931472, %v6805_v58 }
0x2a53   :  { %v4572_v11 = vadd.f32 %v4571_v51, %v4564_v26  ;;  %v4000_v51 = vsub.f32 %v5085_v56, %v3997_v57 }
0x2a55   :  { %6171 = vmatmul.mubr.msk.f32.vlgmr.msra.gmra.mrb[54].mxu0 %vm1623_vm8, %v4572_v11  ;;  %v4485_v11 = vadd.f32 %v7977_v42, %v8025_v61 }
0x2a56   :  { %6193 = vmatpush3.msk.msra.mxu0 %vm1456_vm5, %v7818_v60  ;;  %6194 = vmatprep.mubr.msk.f32.mxu0 %vm6832_vm2, %v6833_v10 }
0x2a57   :  { %6612 = vmatprep.subr.bf16.mxu0 %v6831_v2 }
0x2a59   :  { %6195 = vmatmul.mubr.msk.f32.vlgmr.msra.gmra.mrb[56].mxu0 %vm1452_vm7, %v7993_v8 }
0x2a5a   :  { %6614 = vmatpush3.bf16.msra.mxu0 %v7355_v48  ;;  %6229 = vmatprep.mubr.msk.f32.mxu0 %vm6832_vm2, %v6833_v10 }
0x2a5b   :  { %6615 = vmatprep.subr.bf16.mxu0 %v6831_v2 }
0x2a5e   :  { %6617 = vmatpush3.bf16.msra.mxu0 %v7365_v50 }
0x2a5f   :  { %6618 = vmatprep.subr.bf16.mxu0 %v6831_v2 }
0x2a62   :  { %6620 = vmatpush3.bf16.msra.mxu0 %v7375_v53 }
0x2a63   :  { %6621 = vmatprep.subr.bf16.mxu0 %v6831_v2 }
0x2a66   :  { %6623 = vmatpush3.bf16.msra.mxu0 %v7393_v5 }
0x2a67   :  { %6624 = vmatprep.subr.bf16.mxu0 %v6831_v2 }
0x2a6a   :  { %6626 = vmatpush3.bf16.msra.mxu0 %v7413_v16 }
0x2a6b   :  { %6627 = vmatprep.subr.bf16.mxu0 %v6831_v2 }
0x2a6e   :  { %6629 = vmatpush3.bf16.msra.mxu0 %v7433_v29 }
0x2a6f   :  { %6630 = vmatprep.subr.bf16.mxu0 %v6831_v2 }
0x2a72   :  { %6632 = vmatpush3.bf16.msra.mxu0 %v7453_v38 }
0x2a73   :  { %6633 = vmatprep.subr.bf16.mxu0 %v6831_v2 }
0x2a76   :  { %6635 = vmatpush3.bf16.msra.mxu0 %v7465_v28 }
0x2b28   :  { %v4642_v33 = vpop.f32.mrb[54].mxu0 }
0x2b29   :  { %v4643_v48 = vadd.f32 %v7932_v34, %v4642_v33  ;;  %v6172_v50 = vpop.f32.mrb[55].mxu0 }
0x2b2a   :  { %v4488_v50 = vsub.f32 %v5095_v43, %v4485_v11 }
0x2b2b   :  { %v4647_v53 = vand.u32 2147483647, %v4643_v48  ;;  %v4646_v12 = vmax.f32 %v4643_v48, 0.0 }
0x2b2c   :  { %v4794_v5 = vpop.f32.mrb[56].mxu0 }
0x2b2d   :  { %v4648_v47 = vsub.f32 0.0, %v4647_v53  ;;  %v4795_v16 = vadd.f32 %v7938_v45, %v4794_v5  ;;  %v6196_v60 = vpop.f32.mrb[57].mxu0 }
0x2b2f   :  { %v4649_v54 = vmul.f32 1.442695, %v4648_v47  ;;  %v4799_v29 = vand.u32 2147483647, %v4795_v16  ;;  %v4798_v9 = vmax.f32 %v4795_v16, 0.0  ;;  %v4489_v47 = vmul.f32 %v4488_v50, %v4488_v50 }
0x2b31   :  { %6806 = vpow2.f32 %v4649_v54  ;;  %v4800_v52 = vsub.f32 0.0, %v4799_v29  ;;  %v4490_v61 = vsel %vm105_vm1, %v4489_v47, 0.0 }
0x2b33   :  { %v4801_v0 = vmul.f32 1.442695, %v4800_v52 }
0x2b35   :  { %6808 = vpow2.f32 %v4801_v0 }
0x2b3b   :  { %v6807_v38 = vpop.eup %6806 }
0x2b3c   :  { %v4651_v2 = vadd.f32 1.0, %v6807_v38  ;;  %v5105_v38 = vld [vmem:[%s8156_s7 + $0x38] sm:$0xff] }
0x2b3e   :  { %6810 = vlog2.f32 %v4651_v2 }
0x2b3f   :  { %v6809_v28 = vpop.eup %6808 }
0x2b40   :  { %v4803_v4 = vadd.f32 1.0, %v6809_v28 }
0x2b42   :  { %6812 = vlog2.f32 %v4803_v4 }
0x2b48   :  { %v6811_v34 = vpop.eup %6810 }
0x2b49   :  { %v4653_v6 = vmul.f32 0.6931472, %v6811_v34 }
0x2b4b   :  { %v4654_v30 = vadd.f32 %v4653_v6, %v4646_v12 }
0x2b4c   :  { %v6813_v40 = vpop.eup %6812 }
0x2b4d   :  { %v4805_v45 = vmul.f32 0.6931472, %v6813_v40  ;;  %6190 = vmatmul.mubr.msk.f32.vlgmr.msra.gmra.mrb[62].mxu1 %vm1623_vm8, %v4654_v30  ;;  %v2540_v40 = vpop.xlane.xlu1 %2539 }
0x2b4e   :  { %6233 = vmatpush3.msk.msra.mxu1 %vm1456_vm5, %v7747_v17  ;;  %6234 = vmatprep.mubr.msk.f32.mxu1 %vm6832_vm2, %v6833_v10  ;;  %v2935_v10 = vsub.f32 %v7677_v46, %v8021_v19  ;;  %v5075_v46 = vld [vmem:[%s8156_s7 + $0x20] sm:$0xff] }
0x2b4f   :  { %v4806_v27 = vadd.f32 %v4805_v45, %v4798_v9  ;;  %v3512_v59 = vsub.f32 %v5075_v46, %v3509_v21 }
0x2b51   :  { %6230 = vmatmul.mubr.f32.vlgmr.msra.gmra.mrb[58].mxu0 %v4806_v27  ;;  %v3513_v48 = vmul.f32 %v3512_v59, %v3512_v59  ;;  %v3429_v45 = vpop.xlane.xlu1 %3428 }
0x2b53   :  { %v3514_v53 = vsel %vm105_vm1, %v3513_v48, 0.0 }
0x2c20   :  { %v4724_v31 = vpop.f32.mrb[62].mxu1 }
0x2c21   :  { %v4725_v44 = vadd.f32 %v7960_v3, %v4724_v31  ;;  %v6191_v25 = vpop.f32.mrb[63].mxu1  ;;  %v3021_v3 = vadd.f32 %v7977_v42, %v7711_v14  ;;  %v5104_v14 = vld [vmem:[%s8136_s3 + $0x30] sm:$0xff]  ;;  %v2454_v31 = vadd.f32 %v8019_v20, %v8017_v18 }
0x2c22   :  { %v2053_v25 = vadd.f32 %v7639_v55, %v7637_v49 }
0x2c23   :  { %4884 = vrot.lane.b32.xlu0 %v4725_v44, %s6837_s1  ;;  %v4895_v19 = vmul.f32 %v4725_v44, %v7508_v1 }
0x2c24   :  { %v4873_v24 = vpop.f32.mrb[58].mxu0 }
0x2c25   :  { %v4874_v7 = vadd.f32 %v7970_v36, %v4873_v24  ;;  %v6231_v39 = vpop.f32.mrb[59].mxu0  ;;  %v5065_v36 = vld [vmem:[%s8156_s7 + $0x18] sm:$0xff]  ;;  %v4896_v58 = vadd.f32 %v4895_v19, %v7993_v8  ;;  %v4001_v8 = vmul.f32 %v4000_v51, %v4000_v51  ;;  %v3917_v24 = vpop.xlane.xlu1 %3916 }
0x2c26   :  { %v3024_v22 = vsub.f32 %v5065_v36, %v3021_v3 }
0x2c27   :  { %v4877_v62 = vsub.f32 0.0, %v4874_v7  ;;  %v4002_v5 = vsel %vm105_vm1, %v4001_v8, 0.0  ;;  %v2541_v7 = vadd.f32 %v2540_v40, %v2053_v25 }
0x2c28   :  { %v3025_v35 = vmul.f32 %v3024_v22, %v3024_v22 }
0x2c29   :  { %v4878_v23 = vmul.f32 1.442695, %v4877_v62 }
0x2c2a   :  { %v3026_v26 = vsel %vm105_vm1, %v3025_v35, 0.0 }
0x2c2b   :  { %6814 = vpow2.f32 %v4878_v23  ;;  %v4405_v23 = vpop.xlane.xlu1 %4404 }
0x2c2c   :  { %6816 = vrcp.f32 %v7679_v13 }
0x2c35   :  { %v6815_v17 = vpop.eup %6814 }
0x2c36   :  { %v4880_v32 = vadd.f32 1.0, %v6815_v17  ;;  %v6817_v37 = vpop.eup %6816 }
0x2c37   :  { %v2937_v15 = vmul.f32 %v6817_v37, %v2935_v10 }
0x2c38   :  { %6818 = vrcp.f32 %v4880_v32 }
0x2c39   :  { %v2938_v13 = vmul.f32 %v2937_v15, %v2937_v15 }
0x2c3b   :  { %v2939_v63 = vsel %vm1452_vm7, %v2938_v13, 0.0 }
0x2c42   :  { %v6819_v41 = vpop.eup %6818  ;;  %2940 = vadd.xlane.f32.xlu0 %v2939_v63 }
0x2c43   :  { %v4899_v1 = vmul.f32 %v6819_v41, %v5104_v14  ;;  %6820 = vrcp.f32 %v6819_v41 }
0x2c45   :  { %v4900_v33 = vadd.f32 %v4899_v1, %v4896_v58 }
0x2c46   :  { %3027 = vadd.xlane.f32.xlu0 %v3026_v26 }
0x2c47   :  { %6235 = vmatmul.mubr.msk.f32.vlgmr.msra.gmra.mrb[64].mxu1 %vm1452_vm7, %v4900_v33 }
0x2c4a   :  { %3515 = vadd.xlane.f32.xlu0 %v3514_v53 }
0x2c4d   :  { %v6821_v54 = vpop.eup %6820 }
0x2c4e   :  { %4003 = vadd.xlane.f32.xlu0 %v4002_v5 }
0x2c52   :  { %4491 = vadd.xlane.f32.xlu0 %v4490_v61 }
0x2c95   :  { %v4885_v16 = vpop.permute.xlu0 %4884 }
0x2c96   :  { %v4887_v60 = vsub.f32 %v4725_v44, %v4885_v16 }
0x2c98   :  { %v4889_v29 = vmul.f32 %v6821_v54, %v4887_v60 }
0x2c9a   :  { %v4890_v52 = vmul.f32 %v4889_v29, %v4889_v29 }
0x2c9c   :  { %v4891_v0 = vsel %vm1452_vm7, %v4890_v52, 0.0 }
0x2c9d   :  { %4892 = vadd.xlane.f32.xlu1 %v4891_v0 }
0x2ccf   :  { %v2941_v30 = vpop.xlane.xlu0 %2940 }
0x2cd0   :  { %v2942_v44 = vadd.f32 %v2941_v30, %v2454_v31 }
0x2cd2   :  { %v3430_v39 = vadd.f32 %v3429_v45, %v2942_v44 }
0x2cd3   :  { %v3028_v9 = vpop.xlane.xlu0 %3027 }
0x2cd4   :  { %v3029_v62 = vadd.f32 %v3028_v9, %v2541_v7  ;;  %v3918_v10 = vadd.f32 %v3917_v24, %v3430_v39 }
0x2cd6   :  { %v4406_v36 = vadd.f32 %v4405_v23, %v3918_v10 }
0x2cd7   :  { %v3516_v27 = vpop.xlane.xlu0 %3515 }
0x2cd8   :  { %v3517_v17 = vadd.f32 %v3516_v27, %v3029_v62 }
0x2d1a   :  { %v4972_v2 = vpop.f32.mrb[64].mxu1 }
0x2d1b   :  { %v4973_v28 = vadd.f32 %v7977_v42, %v4972_v2  ;;  %v6236_v4 = vpop.f32.mrb[65].mxu1  ;;  %v4004_v42 = vpop.xlane.xlu0 %4003 }
0x2d1c   :  { %v4005_v37 = vadd.f32 %v4004_v42, %v3517_v17 }
0x2d1d   :  { %v4976_v34 = vsub.f32 %v5105_v38, %v4973_v28 }
0x2d1f   :  { %v4977_v12 = vmul.f32 %v4976_v34, %v4976_v34  ;;  %v4492_v32 = vpop.xlane.xlu0 %4491 }
0x2d20   :  { %v4493_v15 = vadd.f32 %v4492_v32, %v4005_v37 }
0x2d21   :  { %v4978_v6 = vsel %vm105_vm1, %v4977_v12, 0.0 }
0x2d22   :  { %4979 = vadd.xlane.f32.xlu0 %v4978_v6 }
0x2d2a   :  { %v4893_v3 = vpop.xlane.xlu1 %4892 }
0x2d2b   :  { %v4894_v18 = vadd.f32 %v4893_v3, %v4406_v36 }
0x2daf   :  { %v4980_v22 = vpop.xlane.xlu0 %4979 }
0x2db0   :  { %v4981_v20 = vadd.f32 %v4980_v22, %v4493_v15 }
0x2db2   :  { %v4983_v21 = vsel %vm4982_vm9, %v4981_v20, %v4894_v18 }
0x2db3   :  { %4985 = vst.msk [vmem:[%s8137_s26] sm:$0xff] %vm4984_vm10, %v4983_v21 }

</bundles_post_ra>
